<compile_context>
chip_gen: v7x
topology: tpu7x:2x2x1
jax: 0.10.0
libtpu: 0.0.40
codegen_flags: <defaults>
</compile_context>

<pallas_src>
import jax
import jax.numpy as jnp
from jax.experimental import pallas as pl
from jax.experimental.pallas import tpu as pltpu


def gmf_kernel(uidx_ref, iidx_ref, user_tab_ref, item_tab_ref, out_ref):
    # uidx_ref / iidx_ref : (TILE_B, 1) int32 index tiles (VMEM)
    # user_tab_ref        : (num_users, D) full table, VMEM-resident
    # item_tab_ref        : (num_items, D) full table, VMEM-resident
    # out_ref             : (TILE_B, D)
    tile_b = out_ref.shape[0]
    num_users = user_tab_ref.shape[0]
    num_items = item_tab_ref.shape[0]

    uidx = uidx_ref[...]  # (TILE_B, 1)
    iidx = iidx_ref[...]  # (TILE_B, 1)

    # Build one-hot selection matrices and gather via the MXU.
    u_iota = jax.lax.broadcasted_iota(jnp.int32, (tile_b, num_users), 1)
    i_iota = jax.lax.broadcasted_iota(jnp.int32, (tile_b, num_items), 1)
    u_onehot = (u_iota == uidx).astype(user_tab_ref.dtype)  # (TILE_B, num_users)
    i_onehot = (i_iota == iidx).astype(item_tab_ref.dtype)  # (TILE_B, num_items)

    user_vecs = jnp.dot(
        u_onehot,
        user_tab_ref[...],
        preferred_element_type=jnp.float32,
        precision=jax.lax.Precision.HIGHEST,
    )
    item_vecs = jnp.dot(
        i_onehot,
        item_tab_ref[...],
        preferred_element_type=jnp.float32,
        precision=jax.lax.Precision.HIGHEST,
    )

    out_ref[...] = (user_vecs * item_vecs).astype(out_ref.dtype)


def gmf_forward(user_indices, item_indices, user_embedding, item_embedding,
                *, tile_b=128):
    """Pallas GMF forward.

    user_indices, item_indices : (B,) int32
    user_embedding             : (num_users, D) float32
    item_embedding             : (num_items, D) float32
    returns                    : (B, D) float32
    """
    batch = user_indices.shape[0]
    num_users, latent_dim = user_embedding.shape
    num_items = item_embedding.shape[0]

    # Pad the batch up to a multiple of tile_b (pad index = 0, a valid row;
    # the padded output rows are sliced off below).
    num_tiles = pl.cdiv(batch, tile_b)
    b_pad = num_tiles * tile_b
    pad = b_pad - batch
    uidx = jnp.pad(user_indices.astype(jnp.int32), (0, pad)).reshape(b_pad, 1)
    iidx = jnp.pad(item_indices.astype(jnp.int32), (0, pad)).reshape(b_pad, 1)

    out = pl.pallas_call(
        gmf_kernel,
        out_shape=jax.ShapeDtypeStruct((b_pad, latent_dim), user_embedding.dtype),
        grid_spec=pltpu.PrefetchScalarGridSpec(
            num_scalar_prefetch=0,
            grid=(num_tiles,),
            in_specs=[
                # Per-tile index blocks (sublane-dense: TILE_B multiple of 8).
                pl.BlockSpec((tile_b, 1), lambda t: (t, 0)),
                pl.BlockSpec((tile_b, 1), lambda t: (t, 0)),
                # Full tables, constant block index -> fetched to VMEM once.
                pl.BlockSpec((num_users, latent_dim), lambda t: (0, 0)),
                pl.BlockSpec((num_items, latent_dim), lambda t: (0, 0)),
            ],
            # Dense (TILE_B, D) output tile: unmasked stores, one writeback
            # DMA per tile instead of per row.
            out_specs=pl.BlockSpec((tile_b, latent_dim), lambda t: (t, 0)),
        ),
        compiler_params=pltpu.CompilerParams(
            # Batch tiles are independent -> shard across TCs on v7x.
            dimension_semantics=("parallel",),
            # Above the v5e 16 MiB scoped default; well under v7x's 64 MiB.
            vmem_limit_bytes=32 * 1024 * 1024,
        ),
    )(uidx, iidx, user_embedding, item_embedding)

    return out[:batch]


if __name__ == "__main__":
    num_users = 128
    num_items = 256
    latent_dim = 128
    batch = 500  # deliberately not a multiple of TILE_B to exercise padding

    key = jax.random.PRNGKey(0)
    k_user, k_item, k_ui, k_ii = jax.random.split(key, 4)

    # Deterministic parameter init (stands in for nn.Embedding weights).
    user_embedding = jax.random.normal(k_user, (num_users, latent_dim), jnp.float32)
    item_embedding = jax.random.normal(k_item, (num_items, latent_dim), jnp.float32)

    user_indices = jax.random.randint(k_ui, (batch,), 0, num_users, jnp.int32)
    item_indices = jax.random.randint(k_ii, (batch,), 0, num_items, jnp.int32)

    out = gmf_forward(user_indices, item_indices, user_embedding, item_embedding)
    out = jax.block_until_ready(out)

    # Reference check (plain JAX): embedding lookup + elementwise multiply.
    ref = user_embedding[user_indices] * item_embedding[item_indices]
    assert out.shape == (batch, latent_dim)
    assert jnp.allclose(out, ref, atol=1e-5, rtol=1e-5), "mismatch vs reference"

    print("KERNEL_OK")
</pallas_src>

<mosaic_0001>
module attributes {stable_mosaic.version = 11 : i64} {
  func.func @gmf_kernel(%arg0: i32, %arg1: memref<128x1xi32, #tpu.memory_space<vmem>>, %arg2: memref<128x1xi32, #tpu.memory_space<vmem>>, %arg3: memref<128x128xf32, #tpu.memory_space<vmem>>, %arg4: memref<256x128xf32, #tpu.memory_space<vmem>>, %arg5: memref<128x128xf32, #tpu.memory_space<vmem>>) attributes {dimension_semantics = [#tpu.dimension_semantics<parallel>], iteration_bounds = array<i64: 4>, scalar_prefetch = 0 : i64, scratch_operands = 0 : i64, tpu.core_type = #tpu.core_type<tc>, window_params = [{transform_indices = @transform_0, window_bounds = array<i64: 128, 1>}, {transform_indices = @transform_1, window_bounds = array<i64: 128, 1>}, {pipeline_mode = #tpu.pipeline_mode<synchronous>, transform_indices = @transform_2, window_bounds = array<i64: 128, 128>}, {pipeline_mode = #tpu.pipeline_mode<synchronous>, transform_indices = @transform_3, window_bounds = array<i64: 256, 128>}, {transform_indices = @transform_4, window_bounds = array<i64: 128, 128>}]} {
    %c0 = arith.constant 0 : index
    %c0_0 = arith.constant 0 : index
    %0 = vector.load %arg1[%c0, %c0_0] : memref<128x1xi32, #tpu.memory_space<vmem>>, vector<128x1xi32>
    %c0_1 = arith.constant 0 : index
    %c0_2 = arith.constant 0 : index
    %1 = vector.load %arg2[%c0_1, %c0_2] : memref<128x1xi32, #tpu.memory_space<vmem>>, vector<128x1xi32>
    %2 = tpu.iota {dimensions = array<i32: 1>} : vector<128x128xi32>
    %3 = tpu.iota {dimensions = array<i32: 1>} : vector<128x256xi32>
    %4 = vector.broadcast %0 : vector<128x1xi32> to vector<128x128xi32>
    %5 = arith.cmpi eq, %2, %4 : vector<128x128xi32>
    %6 = arith.extui %5 : vector<128x128xi1> to vector<128x128xi32>
    %7 = arith.sitofp %6 : vector<128x128xi32> to vector<128x128xf32>
    %8 = vector.broadcast %1 : vector<128x1xi32> to vector<128x256xi32>
    %9 = arith.cmpi eq, %3, %8 : vector<128x256xi32>
    %10 = arith.extui %9 : vector<128x256xi1> to vector<128x256xi32>
    %11 = arith.sitofp %10 : vector<128x256xi32> to vector<128x256xf32>
    %c0_3 = arith.constant 0 : index
    %c0_4 = arith.constant 0 : index
    %12 = vector.load %arg3[%c0_3, %c0_4] : memref<128x128xf32, #tpu.memory_space<vmem>>, vector<128x128xf32>
    %cst = arith.constant dense<0.000000e+00> : vector<128x128xf32>
    %13 = tpu.matmul %7, %12, %cst {dimension_numbers = #tpu.dot_dimension_numbers<[1], [0], [0], [1], [0, 0, 1, 1], [], []>, precision = #tpu.contract_precision<fp32>} : vector<128x128xf32>, vector<128x128xf32>, vector<128x128xf32> -> vector<128x128xf32>
    %c0_5 = arith.constant 0 : index
    %c0_6 = arith.constant 0 : index
    %14 = vector.load %arg4[%c0_5, %c0_6] : memref<256x128xf32, #tpu.memory_space<vmem>>, vector<256x128xf32>
    %cst_7 = arith.constant dense<0.000000e+00> : vector<128x128xf32>
    %15 = tpu.matmul %11, %14, %cst_7 {dimension_numbers = #tpu.dot_dimension_numbers<[1], [0], [0], [1], [0, 0, 1, 1], [], []>, precision = #tpu.contract_precision<fp32>} : vector<128x256xf32>, vector<256x128xf32>, vector<128x128xf32> -> vector<128x128xf32>
    %16 = arith.mulf %13, %15 : vector<128x128xf32>
    %c0_8 = arith.constant 0 : index
    %c0_9 = arith.constant 0 : index
    %17 = vector.load %arg5[%c0_8, %c0_9] : memref<128x128xf32, #tpu.memory_space<vmem>>, vector<128x128xf32>
    tpu.vector_store %arg5[%c0_8, %c0_9], %16 {strides = array<i32>} : memref<128x128xf32, #tpu.memory_space<vmem>>, vector<128x128xf32>,
    return
  }
  func.func @transform_0(%arg0: i32) -> (i32, i32) {
    %c0_i32 = arith.constant 0 : i32
    %c0_i32_0 = arith.constant 0 : i32
    return %arg0, %c0_i32 : i32, i32
  }
  func.func @transform_1(%arg0: i32) -> (i32, i32) {
    %c0_i32 = arith.constant 0 : i32
    %c0_i32_0 = arith.constant 0 : i32
    return %arg0, %c0_i32 : i32, i32
  }
  func.func @transform_2(%arg0: i32) -> (i32, i32) {
    %c0_i32 = arith.constant 0 : i32
    %c0_i32_0 = arith.constant 0 : i32
    %c0_i32_1 = arith.constant 0 : i32
    return %c0_i32, %c0_i32_0 : i32, i32
  }
  func.func @transform_3(%arg0: i32) -> (i32, i32) {
    %c0_i32 = arith.constant 0 : i32
    %c0_i32_0 = arith.constant 0 : i32
    %c0_i32_1 = arith.constant 0 : i32
    return %c0_i32, %c0_i32_0 : i32, i32
  }
  func.func @transform_4(%arg0: i32) -> (i32, i32) {
    %c0_i32 = arith.constant 0 : i32
    %c0_i32_0 = arith.constant 0 : i32
    return %arg0, %c0_i32 : i32, i32
  }
}

</mosaic_0001>

<bundles_post_ra>
// kernel: tpu_custom_call.1
= control target key start
LH: loop header
LB: loop body
LE: loop exit
PB: predicated region body
PF: predicated region fallthrough
CT: control target
= control target key end

     0   :  { %9 = vsyncpa [#allocation3], 0  ;;  %s8097_s0 = inlined_call_operand.vmem [shape: s32[512,1], index: 0, kind: input, shape index: {}]   ;;  %s8098_s1 = inlined_call_operand.vmem [shape: s32[512,1], index: 1, kind: input, shape index: {}]   ;;  %s8099_s2 = inlined_call_operand.vmem [shape: f32[128,128], index: 2, kind: input, shape index: {}]   ;;  %s8100_s3 = inlined_call_operand.vmem [shape: f32[256,128], index: 3, kind: input, shape index: {}]   ;;  %s8101_s4 = inlined_call_operand.hbm [shape: f32[512,128], index: 4, kind: output, shape index: {}]  }
   0x1   :  { %11 = vsyncpa [#allocation3 + $0x1], 0  ;;  %s5472_s15 = smov 0   ;;  %s5474_s16 = smov 0  }
   0x2   :  { %s5476_s17 = smov 0   ;;  %s5478_s18 = smov 0  }
   0x3 LB: > { %s5493_s19 = sadd.s32 4294967295, %s5439_s18   ;;  %s3652_s20 = sadd.s32 4294967294, %s5439_s18   ;;  %s5439_s18 = sphi %s5478_s18, %s8968_s18   ;;  %s5435_s17 = sphi %s5476_s17, %s8967_s17   ;;  %s5431_s16 = sphi %s5474_s16, %s8966_s16   ;;  %s5427_s15 = sphi %s5472_s15, %s8965_s15  }
   0x4   : > { %s5497_s21 = sadd.s32 1, %s5439_s18   ;;  %s118_s22 = sadd.s32 1, %s5435_s17 }
   0x5   : > { %s115_s23 = ssub.s32 %s5439_s18, %s5497_s21  ;;  %p128_p0 = scmp.ne.s32.totalorder %s5435_s17, %s5431_s16 }
   0x6   : > { %p116_p1 = scmp.eq.s32.totalorder %s115_s23, 0  ;;  %p129_p2 = scmp.eq.s32.totalorder %s5493_s19, 3 }
   0x7   : > { %p134_p3 = scmp.ne.s32.totalorder %s5431_s16, %s5427_s15  ;;  %p135_p4 = scmp.eq.s32.totalorder %s3652_s20, 3 }
   0x8   : > { %s5508_s24 = scalar_select %p116_p1, %s5435_s17, %s118_s22  }
   0x9   : > { %p5510_p5 = por %p129_p2, %p128_p0  ;;  %p5514_p6 = por %p135_p4, %p134_p3 }
   0xa   : > { %p3655_p7 = scmp.ge.s32.totalorder %s5439_s18, 1  ;;  %p177_p8 = scmp.lt.s32.totalorder %s5439_s18, 5 }
   0xc   : > { %p178_p9 = pnand %p3655_p7, %p177_p8 }
   0xe   : > { %181 = sbr.rel (%p178_p9) target bundleno = 706 (0x2c2), region = 36 }
  0x15   : > { %s3657_s27 = sshll.u32 %s5493_s19, 4  ;;  %v496_v0 = vld [vmem:[%s8099_s2] sm:$0xff]  ;;  %v497_v1 = vld [vmem:[%s8099_s2 + $0x8] sm:$0xff]  ;;  %v498_v2 = vld [vmem:[%s8099_s2 + $0x10] sm:$0xff]  ;;  %v5441_v3 = vmov 0   ;;  %s205_s7 = sand.u32 1, %s5431_s16  }
  0x16   : > { %5376 = vset.pattern.permute.xlu1 %v5441_v3  ;;  %5375 = vset.pattern.permute.xlu0 %v5441_v3  ;;  %p209_p10 = scmp.lt.s32.totalorder %s3657_s27, 63  ;;  %v513_v4 = vand.u32 4294901760, %v496_v0  ;;  %v516_v5 = vand.u32 4294901760, %v497_v1  ;;  %v499_v6 = vld [vmem:[%s8099_s2 + $0x18] sm:$0xff]  ;;  %v519_v7 = vand.u32 4294901760, %v498_v2  ;;  %v500_v8 = vld [vmem:[%s8099_s2 + $0x20] sm:$0xff] }
  0x17   : > { %v522_v9 = vand.u32 4294901760, %v499_v6  ;;  %v501_v10 = vld [vmem:[%s8099_s2 + $0x28] sm:$0xff]  ;;  %v525_v11 = vand.u32 4294901760, %v500_v8  ;;  %v502_v12 = vld [vmem:[%s8099_s2 + $0x30] sm:$0xff]  ;;  %v503_v21 = vld [vmem:[%s8099_s2 + $0x38] sm:$0xff]  ;;  %s3656_s8 = sshll.u32 %s205_s7, 7 }
  0x18   : > { %s8970_s27 = smov (!%p209_p10, %s3657_s27), 63  ;;  %v5544_v13 = vpack.c.bf16 %v516_v5, %v513_v4  ;;  %v5546_v14 = vsub.f32 %v496_v0, %v513_v4  ;;  %v5548_v15 = vsub.f32 %v497_v1, %v516_v5  ;;  %v5550_v16 = vsub.f32 %v498_v2, %v519_v7  ;;  %v504_v40 = vld [vmem:[%s8099_s2 + $0x40] sm:$0xff]  ;;  %v505_v41 = vld [vmem:[%s8099_s2 + $0x48] sm:$0xff]  ;;  %v506_v48 = vld [vmem:[%s8099_s2 + $0x50] sm:$0xff]  ;;  %s7998_s9 = scalar_lea.vmem [#allocation2], %s3656_s8 }
  0x19   : > { %v5552_v17 = vpack.c.bf16 %v522_v9, %v519_v7  ;;  %v5554_v18 = vsub.f32 %v499_v6, %v522_v9  ;;  %v528_v19 = vand.u32 4294901760, %v501_v10  ;;  %v5556_v20 = vsub.f32 %v500_v8, %v525_v11  ;;  %s3658_s28 = sshll.u32 %s8970_s27, 3  ;;  %v507_v57 = vld [vmem:[%s8099_s2 + $0x58] sm:$0xff]  ;;  %v508_v62 = vld [vmem:[%s8099_s2 + $0x60] sm:$0xff]  ;;  %v509_v5 = vld [vmem:[%s8099_s2 + $0x68] sm:$0xff]  ;;  %s3858_s10 = sshll.u32 %s5493_s19, 11 }
  0x1a   : > { %8439 = vst [vmem:[#allocation5_spill] sm:$0xff] %v5544_v13  ;;  %8440 = vst [vmem:[#allocation6_spill] sm:$0xff] %v5550_v16  ;;  %v8119_v22 = vand.u32 4294901760, %v5546_v14  ;;  %v8118_v23 = vand.u32 4294901760, %v5548_v15  ;;  %v8117_v24 = vand.u32 4294901760, %v5550_v16  ;;  %4868 = vmatprep.subr.bf16.mxu1 %v5544_v13  ;;  %v531_v25 = vand.u32 4294901760, %v502_v12  ;;  %s5571_s5 = scalar_lea.vmem %s8097_s0, %s3658_s28  ;;  %s5755_s14 = scalar_lea.vmem %s8098_s1, %s3658_s28 }
  0x1b   : > { %8441 = vst [vmem:[#allocation7_spill] sm:$0xff] %v5552_v17  ;;  %8442 = vst [vmem:[#allocation8_spill] sm:$0xff] %v5554_v18  ;;  %v8116_v26 = vand.u32 4294901760, %v5554_v18  ;;  %v5574_v27 = vpack.c.bf16 %v528_v19, %v525_v11  ;;  %v8115_v28 = vand.u32 4294901760, %v5556_v20  ;;  %v5577_v29 = vsub.f32 %v501_v10, %v528_v19  ;;  %4870 = vmatpush3.bf16.msra.mxu1 %v5544_v13  ;;  %v223_v30 = vld [vmem:[%s5571_s5 + $0x10] sm:$0xff]  ;;  %v221_v31 = vld [vmem:[%s5571_s5] sm:$0xff] }
  0x1c   : > { %8443 = vst [vmem:[#allocation9_spill] sm:$0xff] %v5556_v20  ;;  %v757_v32 = vsub.f32 %v5546_v14, %v8119_v22  ;;  %v764_v33 = vsub.f32 %v5548_v15, %v8118_v23  ;;  %v771_v34 = vsub.f32 %v5550_v16, %v8117_v24  ;;  %4872 = vmatprep.subr.bf16.mxu1 %v5552_v17  ;;  %v534_v35 = vand.u32 4294901760, %v503_v21  ;;  %v224_v42 = vld [vmem:[%s5571_s5 + $0x18] sm:$0xff]  ;;  %v222_v43 = vld [vmem:[%s5571_s5 + $0x8] sm:$0xff]  ;;  %v225_v0 = vld [vmem:[%s5571_s5 + $0x20] sm:$0xff]  ;;  %s3578_s11 = sshll.u32 %s7998_s9, 4  ;;  %s8050_s11 = int_to_ptr.vmem [resolvable:$true] %s3578_s11 }
  0x1d   : > { %8444 = vst [vmem:[#allocation10_spill] sm:$0xff] %v5574_v27  ;;  %8445 = vst [vmem:[#allocation11_spill] sm:$0xff] %v5577_v29  ;;  %263 = vperm.xlu1 %5376, %v223_v30   ;;  %257 = vperm.xlu0 %5375, %v221_v31   ;;  %v778_v36 = vsub.f32 %v5554_v18, %v8116_v26  ;;  %v785_v37 = vsub.f32 %v5556_v20, %v8115_v28  ;;  %v8114_v38 = vand.u32 4294901760, %v5577_v29  ;;  %v226_v63 = vld [vmem:[%s5571_s5 + $0x28] sm:$0xff]  ;;  %v228_v31 = vld [vmem:[%s5571_s5 + $0x38] sm:$0xff]  ;;  %s8056_s27 = scalar_lea.sflag [#allocation3], %s205_s7 }
  0x1e   : > { %v5599_v39 = vsub.f32 %v502_v12, %v531_v25  ;;  %v758_v44 = vand.u32 4294901760, %v757_v32  ;;  %v765_v45 = vand.u32 4294901760, %v764_v33  ;;  %v772_v46 = vand.u32 4294901760, %v771_v34  ;;  %v227_v32 = vld [vmem:[%s5571_s5 + $0x30] sm:$0xff]  ;;  %s5377_s19 = scalar_lea.vmem %s8050_s11, 2048  ;;  %s5444_s28 = smov [#allocation2]  }
  0x1f   : > { %v5609_v47 = vpack.c.bf16 %v534_v35, %v531_v25  ;;  %v779_v49 = vand.u32 4294901760, %v778_v36  ;;  %v786_v50 = vand.u32 4294901760, %v785_v37  ;;  %v792_v51 = vsub.f32 %v5577_v29, %v8114_v38  ;;  %4874 = vmatpush3.bf16.msra.mxu1 %v5552_v17  ;;  %v510_v37 = vld [vmem:[%s8099_s2 + $0x70] sm:$0xff]  ;;  %p5378_p11 = scmp.ne.s32.totalorder %s8050_s11, %s5377_s19 }
  0x20   : > { %8446 = vst [vmem:[#allocation12_spill] sm:$0xff] %v5599_v39  ;;  %v8113_v52 = vand.u32 4294901760, %v5599_v39  ;;  %v4899_v53 = vpack.c.bf16 %v765_v45, %v758_v44  ;;  %v5619_v54 = vsub.f32 %v503_v21, %v534_v35  ;;  %4876 = vmatprep.subr.bf16.mxu1 %v5574_v27  ;;  %v537_v55 = vand.u32 4294901760, %v504_v40  ;;  %v511_v44 = vld [vmem:[%s8099_s2 + $0x78] sm:$0xff] }
  0x21   : > { %8447 = vst [vmem:[#allocation13_spill] sm:$0xff] %v5609_v47  ;;  %v540_v56 = vand.u32 4294901760, %v505_v41  ;;  %266 = vperm.xlu1 %5376, %v224_v42   ;;  %260 = vperm.xlu0 %5375, %v222_v43   ;;  %v4903_v58 = vpack.c.bf16 %v779_v49, %v772_v46  ;;  %v793_v59 = vand.u32 4294901760, %v792_v51  ;;  %v543_v61 = vand.u32 4294901760, %v506_v48  ;;  %p5379_p12 = pnand %p5378_p11, %p5510_p5 }
  0x22   : > { %8448 = vst [vmem:[#allocation14_spill] sm:$0xff] %v5619_v54  ;;  %v799_v60 = vsub.f32 %v5599_v39, %v8113_v52  ;;  %4900 = vmatprep.subr.bf16.mxu0 %v4899_v53  ;;  %v8112_v1 = vand.u32 4294901760, %v5619_v54  ;;  %v5636_v3 = vsub.f32 %v504_v40, %v537_v55  ;;  %v546_v8 = vand.u32 4294901760, %v507_v57 }
  0x23   : > { %v5634_v2 = vpack.c.bf16 %v540_v56, %v537_v55  ;;  %v5638_v4 = vsub.f32 %v505_v41, %v540_v56  ;;  %4902 = vmatpush3.bf16.msra.mxu0 %v4899_v53  ;;  %v4907_v6 = vpack.c.bf16 %v793_v59, %v786_v50  ;;  %4878 = vmatpush3.bf16.msra.mxu1 %v5574_v27  ;;  %v549_v19 = vand.u32 4294901760, %v508_v62  ;;  %v230_v55 = vld [vmem:[%s5571_s5 + $0x48] sm:$0xff]  ;;  %v229_v56 = vld [vmem:[%s5571_s5 + $0x40] sm:$0xff]  ;;  %p5380_p13 = pneg %p5379_p12 }
  0x24   : > { %8450 = vst [vmem:[#allocation16_spill] sm:$0xff] %v5636_v3  ;;  %v800_v7 = vand.u32 4294901760, %v799_v60  ;;  %v5644_v9 = vsub.f32 %v506_v48, %v543_v61  ;;  %4904 = vmatprep.subr.bf16.mxu0 %v4903_v58  ;;  %v806_v10 = vsub.f32 %v5619_v54, %v8112_v1  ;;  %v8111_v11 = vand.u32 4294901760, %v5636_v3  ;;  %4880 = vmatprep.subr.bf16.mxu1 %v5609_v47 }
  0x25   : > { %8449 = vst [vmem:[#allocation15_spill] sm:$0xff] %v5634_v2  ;;  %8451 = vst [vmem:[#allocation17_spill] sm:$0xff] %v5638_v4  ;;  %v8110_v12 = vand.u32 4294901760, %v5638_v4  ;;  %272 = vperm.xlu1 %5376, %v226_v63   ;;  %269 = vperm.xlu0 %5375, %v225_v0   ;;  %v5653_v25 = vsub.f32 %v507_v57, %v546_v8  ;;  %v552_v30 = vand.u32 4294901760, %v509_v5  ;;  %v555_v53 = vand.u32 4294901760, %v510_v37  ;;  %v1814_v0 = vld [vmem:[%s8100_s3 + $0x80] sm:$0xff] }
  0x26   : > { %8452 = vst [vmem:[#allocation18_spill] sm:$0xff] %v5644_v9  ;;  %v8109_v21 = vand.u32 4294901760, %v5644_v9  ;;  %v807_v33 = vand.u32 4294901760, %v806_v10  ;;  %v813_v34 = vsub.f32 %v5636_v3, %v8111_v11  ;;  %v5663_v36 = vsub.f32 %v508_v62, %v549_v19 }
  0x27   : > { %8453 = vst [vmem:[#allocation19_spill] sm:$0xff] %v5653_v25  ;;  %v820_v35 = vsub.f32 %v5638_v4, %v8110_v12  ;;  %4906 = vmatpush3.bf16.msra.mxu0 %v4903_v58  ;;  %v5668_v40 = vpack.c.bf16 %v546_v8, %v543_v61  ;;  %v8108_v42 = vand.u32 4294901760, %v5653_v25  ;;  %4882 = vmatpush3.bf16.msra.mxu1 %v5609_v47  ;;  %v558_v59 = vand.u32 4294901760, %v511_v44  ;;  %v1815_v8 = vld [vmem:[%s8100_s3 + $0x88] sm:$0xff]  ;;  %v1821_v12 = vld [vmem:[%s8100_s3 + $0xb8] sm:$0xff] }
  0x28   : > { %8454 = vst [vmem:[#allocation20_spill] sm:$0xff] %v5663_v36  ;;  %v827_v41 = vsub.f32 %v5644_v9, %v8109_v21  ;;  %v5675_v43 = vsub.f32 %v509_v5, %v552_v30  ;;  %4908 = vmatprep.subr.bf16.mxu0 %v4907_v6  ;;  %v4911_v45 = vpack.c.bf16 %v807_v33, %v800_v7  ;;  %v814_v46 = vand.u32 4294901760, %v813_v34  ;;  %v1820_v21 = vld [vmem:[%s8100_s3 + $0xb0] sm:$0xff] }
  0x29   : > { %8455 = vst [vmem:[#allocation21_spill] sm:$0xff] %v5668_v40  ;;  %v821_v48 = vand.u32 4294901760, %v820_v35  ;;  %4884 = vmatprep.subr.bf16.mxu1 %v5634_v2  ;;  %v8107_v49 = vand.u32 4294901760, %v5663_v36  ;;  %278 = vperm.xlu1 %5376, %v228_v31   ;;  %v834_v50 = vsub.f32 %v5653_v25, %v8108_v42  ;;  %v5688_v57 = vpack.c.bf16 %v552_v30, %v549_v19  ;;  %v232_v30 = vld [vmem:[%s5571_s5 + $0x58] sm:$0xff]  ;;  %v231_v31 = vld [vmem:[%s5571_s5 + $0x50] sm:$0xff] }
  0x2a   : > { %8456 = vst [vmem:[#allocation22_spill] sm:$0xff] %v5675_v43  ;;  %275 = vperm.xlu0 %5375, %v227_v32   ;;  %v8106_v51 = vand.u32 4294901760, %v5675_v43  ;;  %v828_v61 = vand.u32 4294901760, %v827_v41  ;;  %v5694_v63 = vsub.f32 %v510_v37, %v555_v53  ;;  %v5707_v7 = vpack.c.bf16 %v5554_v18, %v5550_v16 }
  0x2b   : > { %8457 = vst [vmem:[#allocation23_spill] sm:$0xff] %v5688_v57  ;;  %v841_v58 = vsub.f32 %v5663_v36, %v8107_v49  ;;  %4910 = vmatpush3.bf16.msra.mxu0 %v4907_v6  ;;  %v4915_v60 = vpack.c.bf16 %v821_v48, %v814_v46  ;;  %v835_v62 = vand.u32 4294901760, %v834_v50  ;;  %4886 = vmatpush3.bf16.msra.mxu1 %v5634_v2  ;;  %v1879_v34 = vand.u32 4294901760, %v1814_v0 }
  0x2c   : > { %8458 = vst [vmem:[#allocation24_spill] sm:$0xff] %v5694_v63  ;;  %4912 = vmatprep.subr.bf16.mxu0 %v4911_v45  ;;  %v848_v5 = vsub.f32 %v5675_v43, %v8106_v51  ;;  %4888 = vmatprep.subr.bf16.mxu1 %v5668_v40  ;;  %v5703_v6 = vsub.f32 %v511_v44, %v558_v59  ;;  %v8105_v10 = vand.u32 4294901760, %v5694_v63  ;;  %v1882_v41 = vand.u32 4294901760, %v1815_v8 }
  0x2d   : > { %284 = vperm.xlu1 %5376, %v230_v55   ;;  %v5715_v19 = vpack.c.bf16 %v5577_v29, %v5556_v20  ;;  %v842_v32 = vand.u32 4294901760, %v841_v58  ;;  %v4919_v35 = vpack.c.bf16 %v835_v62, %v828_v61  ;;  %v5720_v37 = vpack.c.bf16 %v558_v59, %v555_v53  ;;  %v234_v55 = vld [vmem:[%s5571_s5 + $0x68] sm:$0xff]  ;;  %v1810_v20 = vld [vmem:[%s8100_s3 + $0x60] sm:$0xff] }
  0x2e   : > { %8459 = vst [vmem:[#allocation25_spill] sm:$0xff] %v5703_v6  ;;  %281 = vperm.xlu0 %5375, %v229_v56   ;;  %v8104_v33 = vand.u32 4294901760, %v5703_v6  ;;  %v5725_v44 = vpack.c.bf16 %v5619_v54, %v5599_v39  ;;  %v849_v46 = vand.u32 4294901760, %v848_v5  ;;  %v855_v48 = vsub.f32 %v5694_v63, %v8105_v10  ;;  %v233_v56 = vld [vmem:[%s5571_s5 + $0x60] sm:$0xff]  ;;  %v236_v5 = vld [vmem:[%s5571_s5 + $0x78] sm:$0xff]  ;;  %v1827_v39 = vld [vmem:[%s8100_s3 + $0xe8] sm:$0xff] }
  0x2f   : > { %4914 = vmatpush3.bf16.msra.mxu0 %v4911_v45  ;;  %8460 = vst [vmem:[#allocation26_spill] sm:$0xff] %v5720_v37  ;;  %4890 = vmatpush3.bf16.msra.mxu1 %v5668_v40  ;;  %v5734_v50 = vsub.f32 %v1814_v0, %v1879_v34  ;;  %v5736_v53 = vsub.f32 %v1815_v8, %v1882_v41  ;;  %v235_v8 = vld [vmem:[%s5571_s5 + $0x70] sm:$0xff]  ;;  %v1826_v54 = vld [vmem:[%s8100_s3 + $0xe0] sm:$0xff]  ;;  %v1918_v29 = vand.u32 4294901760, %v1827_v39  ;;  %s5381_s5 = sshll.u32 %s5444_s28, 4  ;;  %s5382_s5 = int_to_ptr.vmem [resolvable:$false] %s5381_s5 }
  0x30   : > { %4916 = vmatprep.subr.bf16.mxu0 %v4915_v60  ;;  %v862_v45 = vsub.f32 %v5703_v6, %v8104_v33  ;;  %4892 = vmatprep.subr.bf16.mxu1 %v5688_v57  ;;  %v5743_v58 = vpack.c.bf16 %v5638_v4, %v5636_v3  ;;  %v4923_v59 = vpack.c.bf16 %v849_v46, %v842_v32  ;;  %v856_v61 = vand.u32 4294901760, %v855_v48  ;;  %v237_v32 = vld [vmem:[%s5755_s14] sm:$0xff]  ;;  %v239_v46 = vld [vmem:[%s5755_s14 + $0x10] sm:$0xff]  ;;  %v1803_v33 = vld [vmem:[%s8100_s3 + $0x28] sm:$0xff]  ;;  %s5383_s20 = scalar_lea.vmem %s5382_s5, 4096  ;;  %p5384_p0 = scmp.lt.s32.totalorder %s8050_s11, %s5382_s5 }
  0x31   : > { %8461 = vst [vmem:[#allocation27_spill] sm:$0xff] %v5734_v50  ;;  %290 = vperm.xlu1 %5376, %v232_v30   ;;  %8462 = vst [vmem:[#allocation28_spill] sm:$0xff] %v5736_v53  ;;  %v5746_v0 = vpack.c.bf16 %v1882_v41, %v1879_v34  ;;  %v5767_v34 = vpack.c.bf16 %v5675_v43, %v5663_v36  ;;  %v240_v41 = vld [vmem:[%s5755_s14 + $0x18] sm:$0xff]  ;;  %v5777_v48 = vpack.c.bf16 %v5703_v6, %v5694_v63  ;;  %v1804_v63 = vld [vmem:[%s8100_s3 + $0x30] sm:$0xff]  ;;  %p5385_p1 = scmp.lt.s32.totalorder %s5383_s20, %s5377_s19 }
  0x32   : > { %287 = vperm.xlu0 %5375, %v231_v31   ;;  %v863_v62 = vand.u32 4294901760, %v862_v45  ;;  %v238_v31 = vld [vmem:[%s5755_s14 + $0x8] sm:$0xff]  ;;  %v1846_v24 = vand.u32 4294901760, %v1803_v33  ;;  %v1900_v6 = vand.u32 4294901760, %v1821_v12  ;;  %v1915_v17 = vand.u32 4294901760, %v1826_v54 }
  0x33   : > { %4918 = vmatpush3.bf16.msra.mxu0 %v4915_v60  ;;  %4894 = vmatpush3.bf16.msra.mxu1 %v5688_v57  ;;  %8463 = vst [vmem:[#allocation29_spill] sm:$0xff] %v5746_v0  ;;  %v5760_v60 = vpack.c.bf16 %v5653_v25, %v5644_v9  ;;  %8465 = vst [vmem:[#allocation31_spill] sm:$0xff] %v5767_v34  ;;  %v242_v45 = vld [vmem:[%s5755_s14 + $0x28] sm:$0xff]  ;;  %v1809_v9 = vld [vmem:[%s8100_s3 + $0x58] sm:$0xff]  ;;  %p5386_p2 = por %p5385_p1, %p5384_p0 }
  0x34   : > { %4920 = vmatprep.subr.bf16.mxu0 %v4919_v35  ;;  %4896 = vmatprep.subr.bf16.mxu1 %v5720_v37  ;;  %v4927_v30 = vpack.c.bf16 %v863_v62, %v856_v61  ;;  %8466 = vst [vmem:[#allocation32_spill] sm:$0xff] %v5777_v48  ;;  %v246_v61 = vld [vmem:[%s5755_s14 + $0x48] sm:$0xff]  ;;  %v245_v62 = vld [vmem:[%s5755_s14 + $0x40] sm:$0xff]  ;;  %v5898_v4 = vsub.f32 %v1803_v33, %v1846_v24 }
  0x35   : > { %296 = vperm.xlu1 %5376, %v234_v55   ;;  %8464 = vst [vmem:[#allocation30_spill] sm:$0xff] %v5760_v60  ;;  %v241_v55 = vld [vmem:[%s5755_s14 + $0x20] sm:$0xff]  ;;  %v5910_v57 = vsub.f32 %v1821_v12, %v1900_v6  ;;  %p5387_p3 = pnand %p5386_p2, %p5380_p13 }
  0x36   : > { %293 = vperm.xlu0 %5375, %v233_v56   ;;  %v244_v56 = vld [vmem:[%s5755_s14 + $0x38] sm:$0xff]  ;;  %8482 = vst [vmem:[#allocation48_spill] sm:$0xff] %v5898_v4 }
  0x37   : > { %4922 = vmatpush3.bf16.msra.mxu0 %v4919_v35  ;;  %4898 = vmatpush3.bf16.msra.mxu1 %v5720_v37  ;;  %v5771_v35 = vpack.c.bf16 %v5548_v15, %v5546_v14  ;;  %8485 = vst [vmem:[#allocation51_spill] sm:$0xff] %v5910_v57 }
  0x38   : > { %4924 = vmatprep.subr.bf16.mxu0 %v4923_v59  ;;  %5060 = vmatprep.subr.bf16.mxu1 %v5746_v0  ;;  %v1897_v0 = vand.u32 4294901760, %v1820_v21 }
  0x39   : > { %302 = vperm.xlu1 %5376, %v236_v5   ;;  %v8102_v5 = vand.u32 4294901760, %v5734_v50 }
  0x3a   : > { %299 = vperm.xlu0 %5375, %v235_v8   ;;  %v8103_v8 = vand.u32 4294901760, %v5736_v53  ;;  %v5900_v3 = vpack.c.bf16 %v1900_v6, %v1897_v0  ;;  %v5908_v37 = vsub.f32 %v1820_v21, %v1897_v0  ;;  %v1811_v21 = vld [vmem:[%s8100_s3 + $0x68] sm:$0xff] }
  0x3b   : > { %4926 = vmatpush3.bf16.msra.mxu0 %v4923_v59  ;;  %v243_v59 = vld [vmem:[%s5755_s14 + $0x30] sm:$0xff] }
  0x3c   : > { %4928 = vmatprep.subr.bf16.mxu0 %v4927_v30  ;;  %8483 = vst [vmem:[#allocation49_spill] sm:$0xff] %v5900_v3  ;;  %8484 = vst [vmem:[#allocation50_spill] sm:$0xff] %v5908_v37 }
  0x3d   : > { %356 = vperm.xlu1 %5376, %v238_v31   ;;  %v247_v31 = vld [vmem:[%s5755_s14 + $0x50] sm:$0xff] }
  0x3e   : > { %353 = vperm.xlu0 %5375, %v237_v32   ;;  %v2283_v32 = vsub.f32 %v5734_v50, %v8102_v5  ;;  %v1798_v5 = vld [vmem:[%s8100_s3] sm:$0xff] }
  0x3f   : > { %4930 = vmatpush3.bf16.msra.mxu0 %v4927_v30  ;;  %v248_v30 = vld [vmem:[%s5755_s14 + $0x58] sm:$0xff] }
  0x40   : > { %4932 = vmatprep.subr.bf16.mxu0 %v5771_v35 }
  0x41   : > { %362 = vperm.xlu1 %5376, %v240_v41   ;;  %v2290_v41 = vsub.f32 %v5736_v53, %v8103_v8  ;;  %v1802_v8 = vld [vmem:[%s8100_s3 + $0x20] sm:$0xff] }
  0x42   : > { %359 = vperm.xlu0 %5375, %v239_v46   ;;  %v2284_v46 = vand.u32 4294901760, %v2283_v32  ;;  %v253_v32 = vlaneseq  ;;  %v1843_v26 = vand.u32 4294901760, %v1802_v8 }
  0x44   : > { %v5838_v11 = vand.u32 127, %v253_v32  ;;  %v1805_v32 = vld [vmem:[%s8100_s3 + $0x38] sm:$0xff] }
  0x45   : > { %368 = vperm.xlu1 %5376, %v242_v45   ;;  %v250_v45 = vld [vmem:[%s5755_s14 + $0x68] sm:$0xff] }
  0x46   : > { %365 = vperm.xlu0 %5375, %v241_v55   ;;  %v249_v55 = vld [vmem:[%s5755_s14 + $0x60] sm:$0xff] }
  0x49   : > { %374 = vperm.xlu1 %5376, %v244_v56   ;;  %v2291_v56 = vand.u32 4294901760, %v2290_v41  ;;  %v1817_v41 = vld [vmem:[%s8100_s3 + $0x98] sm:$0xff] }
  0x4a   : > { %371 = vperm.xlu0 %5375, %v243_v59   ;;  %v1888_v51 = vand.u32 4294901760, %v1817_v41 }
  0x4b   : > { %v5798_v59 = vpack.c.bf16 %v2291_v56, %v2284_v46  ;;  %v1800_v46 = vld [vmem:[%s8100_s3 + $0x10] sm:$0xff] }
  0x4c   : > { %v1837_v49 = vand.u32 4294901760, %v1800_v46 }
  0x4d   : > { %380 = vperm.xlu1 %5376, %v246_v61   ;;  %8467 = vst [vmem:[#allocation33_spill] sm:$0xff] %v5798_v59  ;;  %v252_v61 = vld [vmem:[%s5755_s14 + $0x78] sm:$0xff]  ;;  %v1864_v59 = vand.u32 4294901760, %v1809_v9 }
  0x4e   : > { %377 = vperm.xlu0 %5375, %v245_v62   ;;  %v251_v62 = vld [vmem:[%s5755_s14 + $0x70] sm:$0xff]  ;;  %s8048_s14 = scalar_lea.hbm %s8101_s4, %s3858_s10 }
  0x51   : > { %386 = vperm.xlu1 %5376, %v248_v30   ;;  %v1799_v30 = vld [vmem:[%s8100_s3 + $0x8] sm:$0xff] }
  0x52   : > { %383 = vperm.xlu0 %5375, %v247_v31   ;;  %v1816_v31 = vld [vmem:[%s8100_s3 + $0x90] sm:$0xff]  ;;  %v1834_v56 = vand.u32 4294901760, %v1799_v30 }
  0x53   : > { %v1885_v10 = vand.u32 4294901760, %v1816_v31 }
  0x54   : > { %v5844_v23 = vsub.f32 %v1799_v30, %v1834_v56  ;;  %v5860_v30 = vsub.f32 %v1800_v46, %v1837_v49  ;;  %v1824_v46 = vld [vmem:[%s8100_s3 + $0xd0] sm:$0xff] }
  0x55   : > { %392 = vperm.xlu1 %5376, %v250_v45   ;;  %v1801_v45 = vld [vmem:[%s8100_s3 + $0x18] sm:$0xff]  ;;  %v5846_v22 = vsub.f32 %v1816_v31, %v1885_v10  ;;  %v5854_v43 = vpack.c.bf16 %v1888_v51, %v1885_v10  ;;  %v1822_v31 = vld [vmem:[%s8100_s3 + $0xc0] sm:$0xff] }
  0x56   : > { %389 = vperm.xlu0 %5375, %v249_v55   ;;  %v1831_v55 = vand.u32 4294901760, %v1798_v5  ;;  %v1840_v42 = vand.u32 4294901760, %v1801_v45  ;;  %8470 = vst [vmem:[#allocation36_spill] sm:$0xff] %v5844_v23  ;;  %8475 = vst [vmem:[#allocation41_spill] sm:$0xff] %v5860_v30 }
  0x57   : > { %8471 = vst [vmem:[#allocation37_spill] sm:$0xff] %v5846_v22  ;;  %8472 = vst [vmem:[#allocation38_spill] sm:$0xff] %v5854_v43 }
  0x58   : > { %v5840_v38 = vpack.c.bf16 %v1834_v56, %v1831_v55  ;;  %v5842_v28 = vsub.f32 %v1798_v5, %v1831_v55  ;;  %v5856_v5 = vsub.f32 %v1817_v41, %v1888_v51  ;;  %v5858_v55 = vpack.c.bf16 %v1840_v42, %v1837_v49  ;;  %v1823_v56 = vld [vmem:[%s8100_s3 + $0xc8] sm:$0xff]  ;;  %v1806_v49 = vld [vmem:[%s8100_s3 + $0x40] sm:$0xff] }
  0x59   : > { %398 = vperm.xlu1 %5376, %v252_v61   ;;  %v1818_v61 = vld [vmem:[%s8100_s3 + $0xa0] sm:$0xff]  ;;  %v5868_v36 = vsub.f32 %v1801_v45, %v1840_v42  ;;  %v1807_v41 = vld [vmem:[%s8100_s3 + $0x48] sm:$0xff]  ;;  %v5885_v42 = vpack.c.bf16 %v1846_v24, %v1843_v26  ;;  %v5887_v45 = vsub.f32 %v1802_v8, %v1843_v26  ;;  %v1903_v26 = vand.u32 4294901760, %v1822_v31 }
  0x5a   : > { %395 = vperm.xlu0 %5375, %v251_v62   ;;  %v1819_v62 = vld [vmem:[%s8100_s3 + $0xa8] sm:$0xff]  ;;  %v1891_v1 = vand.u32 4294901760, %v1818_v61  ;;  %8468 = vst [vmem:[#allocation34_spill] sm:$0xff] %v5840_v38  ;;  %8469 = vst [vmem:[#allocation35_spill] sm:$0xff] %v5842_v28  ;;  %v1906_v8 = vand.u32 4294901760, %v1823_v56  ;;  %v1855_v40 = vand.u32 4294901760, %v1806_v49 }
  0x5b   : > { %v1894_v52 = vand.u32 4294901760, %v1819_v62  ;;  %8473 = vst [vmem:[#allocation39_spill] sm:$0xff] %v5856_v5  ;;  %8474 = vst [vmem:[#allocation40_spill] sm:$0xff] %v5858_v55  ;;  %v1858_v2 = vand.u32 4294901760, %v1807_v41  ;;  %v1909_v24 = vand.u32 4294901760, %v1824_v46  ;;  %v5928_v48 = vsub.f32 %v1822_v31, %v1903_v26  ;;  %v1829_v31 = vld [vmem:[%s8100_s3 + $0xf8] sm:$0xff] }
  0x5c   : > { %8476 = vst [vmem:[#allocation42_spill] sm:$0xff] %v5868_v36  ;;  %v5872_v10 = vsub.f32 %v1818_v61, %v1891_v1  ;;  %8480 = vst [vmem:[#allocation46_spill] sm:$0xff] %v5885_v42  ;;  %v1852_v61 = vand.u32 4294901760, %v1805_v32  ;;  %v5926_v13 = vpack.c.bf16 %v1906_v8, %v1903_v26  ;;  %v5930_v18 = vsub.f32 %v1823_v56, %v1906_v8 }
  0x5d   : > { %v5870_v25 = vpack.c.bf16 %v1894_v52, %v1891_v1  ;;  %v5874_v51 = vsub.f32 %v1819_v62, %v1894_v52  ;;  %8481 = vst [vmem:[#allocation47_spill] sm:$0xff] %v5887_v45  ;;  %v1849_v1 = vand.u32 4294901760, %v1804_v63  ;;  %v1825_v52 = vld [vmem:[%s8100_s3 + $0xd8] sm:$0xff]  ;;  %v1808_v62 = vld [vmem:[%s8100_s3 + $0x50] sm:$0xff]  ;;  %8490 = vst [vmem:[#allocation56_spill] sm:$0xff] %v5928_v48  ;;  %v5932_v16 = vpack.c.bf16 %v1858_v2, %v1855_v40 }
  0x5e   : > { %8478 = vst [vmem:[#allocation44_spill] sm:$0xff] %v5872_v10  ;;  %v1912_v33 = vand.u32 4294901760, %v1825_v52  ;;  %v1861_v47 = vand.u32 4294901760, %v1808_v62  ;;  %v5924_v0 = vsub.f32 %v1805_v32, %v1852_v61  ;;  %8489 = vst [vmem:[#allocation55_spill] sm:$0xff] %v5926_v13  ;;  %v5934_v34 = vsub.f32 %v1806_v49, %v1855_v40  ;;  %v1828_v32 = vld [vmem:[%s8100_s3 + $0xf0] sm:$0xff] }
  0x5f   : > { %8477 = vst [vmem:[#allocation43_spill] sm:$0xff] %v5870_v25  ;;  %8479 = vst [vmem:[#allocation45_spill] sm:$0xff] %v5874_v51  ;;  %v5912_v27 = vpack.c.bf16 %v1852_v61, %v1849_v1  ;;  %v5922_v6 = vsub.f32 %v1804_v63, %v1849_v1  ;;  %v1867_v63 = vand.u32 4294901760, %v1810_v20  ;;  %v1870_v1 = vand.u32 4294901760, %v1811_v21  ;;  %v1813_v61 = vld [vmem:[%s8100_s3 + $0x78] sm:$0xff] }
  0x60   : > { %8488 = vst [vmem:[#allocation54_spill] sm:$0xff] %v5924_v0  ;;  %8491 = vst [vmem:[#allocation57_spill] sm:$0xff] %v5930_v18  ;;  %v5938_v3 = vpack.c.bf16 %v1912_v33, %v1909_v24  ;;  %v5940_v60 = vpack.c.bf16 %v1864_v59, %v1861_v47  ;;  %v5948_v56 = vsub.f32 %v1824_v46, %v1909_v24  ;;  %v8163_v46 = vand.u32 4294901760, %v5842_v28 }
  0x61   : > { %8486 = vst [vmem:[#allocation52_spill] sm:$0xff] %v5912_v27  ;;  %8487 = vst [vmem:[#allocation53_spill] sm:$0xff] %v5922_v6  ;;  %v5936_v27 = vsub.f32 %v1807_v41, %v1858_v2  ;;  %v5950_v40 = vsub.f32 %v1825_v52, %v1912_v33  ;;  %v5952_v2 = vsub.f32 %v1808_v62, %v1861_v47  ;;  %v1812_v41 = vld [vmem:[%s8100_s3 + $0x70] sm:$0xff]  ;;  %v8164_v52 = vand.u32 4294901760, %v5844_v23 }
  0x62   : > { %8492 = vst [vmem:[#allocation58_spill] sm:$0xff] %v5932_v16  ;;  %8493 = vst [vmem:[#allocation59_spill] sm:$0xff] %v5934_v34  ;;  %v5954_v49 = vpack.c.bf16 %v1918_v29, %v1915_v17  ;;  %v5962_v26 = vsub.f32 %v1809_v9, %v1864_v59  ;;  %v5964_v8 = vsub.f32 %v1826_v54, %v1915_v17  ;;  %v1921_v62 = vand.u32 4294901760, %v1828_v32 }
  0x63   : > { %8494 = vst [vmem:[#allocation60_spill] sm:$0xff] %v5936_v27  ;;  %8495 = vst [vmem:[#allocation61_spill] sm:$0xff] %v5938_v3  ;;  %v5968_v47 = vsub.f32 %v1827_v39, %v1918_v29  ;;  %v1924_v24 = vand.u32 4294901760, %v1829_v31  ;;  %v1873_v12 = vand.u32 4294901760, %v1812_v41  ;;  %v1876_v50 = vand.u32 4294901760, %v1813_v61 }
  0x64   : > { %8496 = vst [vmem:[#allocation62_spill] sm:$0xff] %v5940_v60  ;;  %8497 = vst [vmem:[#allocation63_spill] sm:$0xff] %v5948_v56  ;;  %v5973_v9 = vpack.c.bf16 %v1870_v1, %v1867_v63  ;;  %v5978_v29 = vsub.f32 %v1810_v20, %v1867_v63  ;;  %v5980_v39 = vsub.f32 %v1811_v21, %v1870_v1  ;;  %v8510_v59 = vand.u32 4294901760, %v5846_v22 }
  0x65   : > { %8498 = vst [vmem:[#allocation64_spill] sm:$0xff] %v5950_v40  ;;  %8499 = vst [vmem:[#allocation65_spill] sm:$0xff] %v5952_v2  ;;  %v2171_v33 = vsub.f32 %v5842_v28, %v8163_v46  ;;  %v2178_v2 = vsub.f32 %v5844_v23, %v8164_v52  ;;  %v5988_v53 = vpack.c.bf16 %v1924_v24, %v1921_v62  ;;  %v8513_v1 = vand.u32 4294901760, %v5856_v5 }
  0x66   : > { %8500 = vst [vmem:[#allocation66_spill] sm:$0xff] %v5954_v49  ;;  %8501 = vst [vmem:[#allocation67_spill] sm:$0xff] %v5962_v26  ;;  %v5992_v17 = vsub.f32 %v1829_v31, %v1924_v24  ;;  %v2297_v20 = vsub.f32 %v5846_v22, %v8510_v59  ;;  %v5997_v21 = vpack.c.bf16 %v1876_v50, %v1873_v12  ;;  %v8514_v52 = vand.u32 4294901760, %v5860_v30 }
  0x67   : > { %8502 = vst [vmem:[#allocation68_spill] sm:$0xff] %v5964_v8  ;;  %8503 = vst [vmem:[#allocation69_spill] sm:$0xff] %v5968_v47  ;;  %v5990_v47 = vsub.f32 %v1828_v32, %v1921_v62  ;;  %v5999_v63 = vsub.f32 %v1812_v41, %v1873_v12  ;;  %v2304_v46 = vsub.f32 %v5856_v5, %v8513_v1  ;;  %v8518_v24 = vand.u32 4294901760, %v5868_v36 }
  0x68   : > { %8504 = vst [vmem:[#allocation70_spill] sm:$0xff] %v5973_v9  ;;  %8505 = vst [vmem:[#allocation71_spill] sm:$0xff] %v5978_v29  ;;  %v2185_v54 = vsub.f32 %v5860_v30, %v8514_v52  ;;  %v6011_v62 = vsub.f32 %v1813_v61, %v1876_v50  ;;  %v8519_v12 = vand.u32 4294901760, %v5872_v10  ;;  %v8520_v1 = vand.u32 4294901760, %v5874_v51 }
  0x69   : > { %8506 = vst [vmem:[#allocation72_spill] sm:$0xff] %v5980_v39  ;;  %8507 = vst [vmem:[#allocation73_spill] sm:$0xff] %v5988_v53  ;;  %v2192_v59 = vsub.f32 %v5868_v36, %v8518_v24  ;;  %v2172_v50 = vand.u32 4294901760, %v2171_v33  ;;  %v2179_v61 = vand.u32 4294901760, %v2178_v2  ;;  %v8179_v52 = vmov 0.0  }
  0x6a   : > { %8508 = vst [vmem:[#allocation74_spill] sm:$0xff] %v5990_v47  ;;  %8509 = vst [vmem:[#allocation75_spill] sm:$0xff] %v5992_v17  ;;  %v2311_v41 = vsub.f32 %v5872_v10, %v8519_v12  ;;  %v2318_v5 = vsub.f32 %v5874_v51, %v8520_v1  ;;  %v8186_v1 = vmov 1.0   ;;  %v2298_v51 = vand.u32 4294901760, %v2297_v20 }
  0x6b   : > { %8511 = vst [vmem:[#allocation76_spill] sm:$0xff] %v5997_v21  ;;  %8512 = vst [vmem:[#allocation77_spill] sm:$0xff] %v5999_v63  ;;  %v8185_v2 = vand.u32 4294901760, %v5887_v45  ;;  %v2305_v36 = vand.u32 4294901760, %v2304_v46  ;;  %v2186_v30 = vand.u32 4294901760, %v2185_v54  ;;  %v8523_v46 = vmov 0.0  }
  0x6c   : > { %8517 = vst [vmem:[#allocation80_spill] sm:$0xff] %v6011_v62  ;;  %v2312_v28 = vand.u32 4294901760, %v2311_v41  ;;  %v2319_v62 = vand.u32 4294901760, %v2318_v5 }
  0x6d   : > { %v2199_v41 = vsub.f32 %v5887_v45, %v8185_v2 }
  0x6e   : > { %v6092_v2 = vpack.c.bf16 %v2319_v62, %v2312_v28 }
  0x9c   : > { %v6007_v32 = vpop.permute.xlu1 %263  ;;  %v6009_v31 = vpop.permute.xlu0 %257 }
  0x9d   : > { %8515 = vst [vmem:[#allocation78_spill] sm:$0xff] %v6007_v32  ;;  %8516 = vst [vmem:[#allocation79_spill] sm:$0xff] %v6009_v31  ;;  %vm306_vm0 = vcmp.eq.s32.totalorder %v5838_v11, %v6007_v32  ;;  %vm304_vm1 = vcmp.eq.s32.totalorder %v5838_v11, %v6009_v31  ;;  %v8532_v32 = vand.u32 4294901760, %v5546_v14 }
  0x9e   : > { %v3663_v24 = vsel %vm306_vm0, 1.0, %v8179_v52  ;;  %v3661_v12 = vsel %vm304_vm1, 1.0, %v8179_v52  ;;  %4619 = vmatprep.mubr.msk.f32.mxu0 %vm304_vm1, %v8186_v1  ;;  %v2193_v52 = vand.u32 4294901760, %v2192_v59 }
  0x9f   : > { %v6039_v33 = vsub.f32 %v3663_v24, %v3663_v24  ;;  %v6041_v10 = vsub.f32 %v3661_v12, %v3661_v12  ;;  %v6053_v24 = vpack.c.bf16 %v2179_v61, %v2172_v50 }
  0xa0   : > { %v6043_v22 = vpop.permute.xlu1 %266  ;;  %v6045_v23 = vpop.permute.xlu0 %260 }
  0xa1   : > { %8521 = vst [vmem:[#allocation81_spill] sm:$0xff] %v6043_v22  ;;  %8522 = vst [vmem:[#allocation82_spill] sm:$0xff] %v6045_v23  ;;  %vm307_vm2 = vcmp.eq.s32.totalorder %v5838_v11, %v6043_v22  ;;  %vm305_vm3 = vcmp.eq.s32.totalorder %v5838_v11, %v6045_v23  ;;  %v8188_v20 = vand.u32 4294901760, %v6041_v10  ;;  %v2200_v22 = vand.u32 4294901760, %v2199_v41 }
  0xa2   : > { %v3664_v54 = vsel %vm307_vm2, 1.0, %v8523_v46  ;;  %v3662_v5 = vsel %vm305_vm3, 1.0, %v8523_v46  ;;  %4620 = vmatmul.mubr.msk.f32.vlgmr.msra.gmra.mrb[0].mxu0 %vm305_vm3, %v8186_v1 }
  0xa3   : > { %v6071_v50 = vsub.f32 %v3664_v54, %v3664_v54  ;;  %v6073_v61 = vsub.f32 %v3662_v5, %v3662_v5  ;;  %4622 = vmatprep.mubr.msk.f32.mxu0 %vm306_vm0, %v8186_v1  ;;  %4934 = vmatpush3.bf16.msra.mxu0 %v5771_v35  ;;  %v596_v12 = vsub.f32 %v6041_v10, %v8188_v20  ;;  %v8526_v1 = vand.u32 4294901760, %v5898_v4 }
  0xa4   : > { %v6083_v59 = vpop.permute.xlu1 %272  ;;  %v6085_v63 = vpop.permute.xlu0 %269  ;;  %4936 = vmatprep.subr.bf16.mxu0 %v5707_v7  ;;  %v6088_v54 = vpack.c.bf16 %v2305_v36, %v2298_v51  ;;  %v6090_v5 = vpack.c.bf16 %v2193_v52, %v2186_v30  ;;  %v8527_v30 = vmov 1.0   ;;  %v8528_v51 = vand.u32 4294901760, %v6039_v33 }
  0xa5   : > { %8524 = vst [vmem:[#allocation83_spill] sm:$0xff] %v6083_v59  ;;  %8525 = vst [vmem:[#allocation84_spill] sm:$0xff] %v6085_v63  ;;  %v2206_v35 = vsub.f32 %v5898_v4, %v8526_v1  ;;  %vm309_vm4 = vcmp.eq.s32.totalorder %v5838_v11, %v6083_v59  ;;  %vm308_vm5 = vcmp.eq.s32.totalorder %v5838_v11, %v6085_v63  ;;  %v597_v20 = vand.u32 4294901760, %v596_v12 }
  0xa6   : > { %v8201_v45 = vand.u32 4294901760, %v6073_v61  ;;  %v3666_v36 = vsel %vm309_vm4, 1.0, %v8523_v46  ;;  %v3665_v28 = vsel %vm308_vm5, 1.0, %v8523_v46  ;;  %4623 = vmatmul.mubr.msk.f32.gmra.mrb[2].mxu0 %vm307_vm2, %v8527_v30  ;;  %v616_v62 = vsub.f32 %v6039_v33, %v8528_v51 }
  0xa7   : > { %v6118_v1 = vsub.f32 %v3666_v36, %v3666_v36  ;;  %v6120_v12 = vsub.f32 %v3665_v28, %v3665_v28  ;;  %4563 = vmatprep.mubr.f32.mxu1 %v597_v20  ;;  %4625 = vmatprep.mubr.msk.f32.mxu0 %vm308_vm5, %v8527_v30  ;;  %v8531_v36 = vand.u32 4294901760, %v6071_v50  ;;  %v2207_v28 = vand.u32 4294901760, %v2206_v35 }
  0xa8   : > { %v606_v4 = vsub.f32 %v6073_v61, %v8201_v45  ;;  %4938 = vmatpush3.bf16.msra.mxu0 %v5707_v7  ;;  %v6130_v51 = vpop.permute.xlu1 %278  ;;  %v8533_v63 = vand.u32 4294901760, %v5548_v15  ;;  %v617_v41 = vand.u32 4294901760, %v616_v62 }
  0xa9   : > { %8529 = vst [vmem:[#allocation85_spill] sm:$0xff] %v6130_v51  ;;  %v6132_v52 = vpop.permute.xlu0 %275  ;;  %v626_v20 = vsub.f32 %v6071_v50, %v8531_v36  ;;  %vm311_vm6 = vcmp.eq.s32.totalorder %v5838_v11, %v6130_v51  ;;  %4940 = vmatprep.subr.bf16.mxu0 %v5715_v19  ;;  %v8205_v35 = vand.u32 4294901760, %v6120_v12 }
  0xaa   : > { %8530 = vst [vmem:[#allocation86_spill] sm:$0xff] %v6132_v52  ;;  %v6141_v23 = vpack.c.bf16 %v8533_v63, %v8532_v32  ;;  %vm310_vm7 = vcmp.eq.s32.totalorder %v5838_v11, %v6132_v52  ;;  %v607_v7 = vand.u32 4294901760, %v606_v4  ;;  %v3668_v14 = vsel %vm311_vm6, 1.0, %v8523_v46  ;;  %4626 = vmatmul.mubr.msk.f32.gmra.mrb[4].mxu0 %vm309_vm4, %v8527_v30 }
  0xab   : > { %v3667_v15 = vsel %vm310_vm7, 1.0, %v8523_v46  ;;  %v8204_v63 = vand.u32 4294901760, %v6118_v1  ;;  %v6165_v32 = vsub.f32 %v3668_v14, %v3668_v14  ;;  %4628 = vmatprep.mubr.msk.f32.mxu0 %vm310_vm7, %v8527_v30  ;;  %v636_v45 = vsub.f32 %v6120_v12, %v8205_v35 }
  0xac   : > { %v6167_v36 = vsub.f32 %v3667_v15, %v3667_v15  ;;  %4564 = vmatmul.mubr.f32.vlgmr.msra.gmra.mrb[0].mxu1 %v607_v7  ;;  %4942 = vmatpush3.bf16.msra.mxu0 %v5715_v19  ;;  %v6178_v4 = vpop.permute.xlu1 %284  ;;  %v627_v15 = vand.u32 4294901760, %v626_v20  ;;  %v6185_v52 = vpack.c.bf16 %v2207_v28, %v2200_v22 }
  0xad   : > { %5062 = vmatpush3.bf16.msra.mxu1 %v5840_v38  ;;  %8534 = vst [vmem:[#allocation87_spill] sm:$0xff] %v6178_v4  ;;  %v6180_v14 = vpop.permute.xlu0 %281  ;;  %v646_v7 = vsub.f32 %v6118_v1, %v8204_v63  ;;  %vm8306_vm8 = vcmp.eq.s32.totalorder %v5838_v11, %v6178_v4  ;;  %4566 = vmatprep.mubr.f32.mxu1 %v617_v41  ;;  %v637_v19 = vand.u32 4294901760, %v636_v45  ;;  %v8212_v45 = vand.u32 4294901760, %v6165_v32 }
  0xae   : > { %8535 = vst [vmem:[#allocation88_spill] sm:$0xff] %v6180_v14  ;;  %vm312_vm9 = vcmp.eq.s32.totalorder %v5838_v11, %v6180_v14  ;;  %4944 = vmatprep.subr.bf16.mxu0 %v5725_v44  ;;  %v8213_v20 = vand.u32 4294901760, %v6167_v36  ;;  %v3670_v22 = vsel %vm8306_vm8, 1.0, %v8523_v46  ;;  %4629 = vmatmul.mubr.msk.f32.gmra.mrb[6].mxu0 %vm311_vm6, %v8527_v30  ;;  %v8536_v41 = vand.u32 4294901760, %v5908_v37 }
  0xaf   : > { %v3669_v28 = vsel %vm312_vm9, 1.0, %v8523_v46  ;;  %5064 = vmatprep.subr.bf16.mxu1 %v5854_v43  ;;  %v6213_v35 = vsub.f32 %v3670_v22, %v3670_v22  ;;  %4631 = vmatprep.mubr.msk.f32.mxu0 %vm312_vm9, %v8527_v30 }
  0xb0   : > { %v6211_v63 = vsub.f32 %v5908_v37, %v8536_v41  ;;  %v6215_v62 = vsub.f32 %v3669_v28, %v3669_v28  ;;  %4567 = vmatmul.mubr.f32.gmra.mrb[2].mxu1 %v627_v15  ;;  %v656_v43 = vsub.f32 %v6167_v36, %v8213_v20  ;;  %4946 = vmatpush3.bf16.msra.mxu0 %v5725_v44  ;;  %v6226_v41 = vpop.permute.xlu1 %290  ;;  %v647_v28 = vand.u32 4294901760, %v646_v7 }
  0xb1   : > { %5066 = vmatpush3.bf16.msra.mxu1 %v5858_v55  ;;  %8537 = vst [vmem:[#allocation89_spill] sm:$0xff] %v6226_v41  ;;  %v6228_v22 = vpop.permute.xlu0 %287  ;;  %v666_v15 = vsub.f32 %v6165_v32, %v8212_v45  ;;  %vm8270_vm10 = vcmp.eq.s32.totalorder %v5838_v11, %v6226_v41  ;;  %4569 = vmatprep.mubr.f32.mxu1 %v637_v19  ;;  %v8539_v19 = vand.u32 4294901760, %v5910_v57 }
  0xb2   : > { %8538 = vst [vmem:[#allocation90_spill] sm:$0xff] %v6228_v22  ;;  %vm8293_vm11 = vcmp.eq.s32.totalorder %v5838_v11, %v6228_v22  ;;  %4948 = vmatprep.subr.bf16.mxu0 %v5743_v58  ;;  %v657_v44 = vand.u32 4294901760, %v656_v43  ;;  %v3672_v45 = vsel %vm8270_vm10, 1.0, %v8523_v46  ;;  %4632 = vmatmul.mubr.msk.f32.gmra.mrb[8].mxu0 %vm8306_vm8, %v8527_v30  ;;  %v8540_v55 = vand.u32 4294901760, %v6215_v62 }
  0xb3   : > { %v3671_v37 = vsel %vm8293_vm11, 1.0, %v8523_v46  ;;  %5068 = vmatprep.subr.bf16.mxu1 %v5870_v25  ;;  %v6259_v20 = vsub.f32 %v5910_v57, %v8539_v19  ;;  %v6261_v38 = vsub.f32 %v3672_v45, %v3672_v45  ;;  %4634 = vmatprep.mubr.msk.f32.mxu0 %vm8293_vm11, %v8527_v30  ;;  %v6273_v43 = vadd.s32 128, %v5838_v11 }
  0xb4   : > { %v6263_v7 = vsub.f32 %v3671_v37, %v3671_v37  ;;  %4570 = vmatmul.mubr.f32.gmra.mrb[4].mxu1 %v647_v28  ;;  %v676_v25 = vsub.f32 %v6215_v62, %v8540_v55  ;;  %4950 = vmatpush3.bf16.msra.mxu0 %v5743_v58  ;;  %v6277_v45 = vpop.permute.xlu1 %296  ;;  %v667_v28 = vand.u32 4294901760, %v666_v15  ;;  %v8543_v19 = vand.u32 4294901760, %v6213_v35  ;;  %v8545_v58 = vld [vmem:[#allocation30_spill] sm:$0xff] }
  0xb5   : > { %5070 = vmatpush3.bf16.msra.mxu1 %v5885_v42  ;;  %8541 = vst [vmem:[#allocation91_spill] sm:$0xff] %v6277_v45  ;;  %v6279_v37 = vpop.permute.xlu0 %293  ;;  %v8544_v22 = vand.u32 4294901760, %v5922_v6  ;;  %vm8247_vm12 = vcmp.eq.s32.totalorder %v5838_v11, %v6277_v45  ;;  %4572 = vmatprep.mubr.f32.mxu1 %v657_v44  ;;  %v8546_v44 = vld [vmem:[#allocation49_spill] sm:$0xff]  ;;  %v2333_v4 = vand.u32 4294901760, %v6259_v20  ;;  %v8556_v45 = vld [vmem:[#allocation8_spill] sm:$0xff] }
  0xb6   : > { %8542 = vst [vmem:[#allocation92_spill] sm:$0xff] %v6279_v37  ;;  %v686_v57 = vsub.f32 %v6213_v35, %v8543_v19  ;;  %vm8248_vm13 = vcmp.eq.s32.totalorder %v5838_v11, %v6279_v37  ;;  %4952 = vmatprep.subr.bf16.mxu0 %v8545_v58  ;;  %v677_v15 = vand.u32 4294901760, %v676_v25  ;;  %4635 = vmatmul.mubr.msk.f32.gmra.mrb[10].mxu0 %vm8270_vm10, %v8527_v30  ;;  %v8547_v14 = vand.u32 4294901760, %v6263_v7  ;;  %v8548_v25 = vld [vmem:[#allocation52_spill] sm:$0xff] }
  0xb7   : > { %v6287_v55 = vsub.f32 %v5922_v6, %v8544_v22  ;;  %v3674_v22 = vsel %vm8247_vm12, 1.0, %v8523_v46  ;;  %v3673_v19 = vsel %vm8248_vm13, 1.0, %v8523_v46  ;;  %5072 = vmatprep.subr.bf16.mxu1 %v8546_v44  ;;  %4637 = vmatprep.mubr.msk.f32.mxu0 %vm8248_vm13, %v8527_v30  ;;  %v8551_v37 = vand.u32 4294901760, %v5924_v0 }
  0xb8   : > { %v6311_v42 = vsub.f32 %v3674_v22, %v3674_v22  ;;  %v6313_v6 = vsub.f32 %v3673_v19, %v3673_v19  ;;  %4573 = vmatmul.mubr.f32.gmra.mrb[6].mxu1 %v667_v28  ;;  %v696_v41 = vsub.f32 %v6263_v7, %v8547_v14  ;;  %4954 = vmatpush3.bf16.msra.mxu0 %v8545_v58  ;;  %v6325_v22 = vpop.permute.xlu1 %302  ;;  %v8552_v58 = vld [vmem:[#allocation31_spill] sm:$0xff]  ;;  %v687_v44 = vand.u32 4294901760, %v686_v57  ;;  %v8554_v14 = vld [vmem:[#allocation6_spill] sm:$0xff] }
  0xb9   : > { %5074 = vmatpush3.bf16.msra.mxu1 %v8548_v25  ;;  %8549 = vst [vmem:[#allocation30_spill] sm:$0xff] %v6325_v22  ;;  %v6327_v19 = vpop.permute.xlu0 %299  ;;  %v6334_v51 = vsub.f32 %v5924_v0, %v8551_v37  ;;  %4575 = vmatprep.mubr.f32.mxu1 %v677_v15  ;;  %vm8257_vm15 = vcmp.eq.s32.totalorder %v5838_v11, %v6325_v22  ;;  %v8553_v57 = vand.u32 4294901760, %v6261_v38  ;;  %v2214_v15 = vand.u32 4294901760, %v6287_v55 }
  0xba   : > { %8550 = vst [vmem:[#allocation93_spill] sm:$0xff] %v6327_v19  ;;  %vm8246_vm14 = vcmp.eq.s32.totalorder %v5838_v11, %v6327_v19  ;;  %4956 = vmatprep.subr.bf16.mxu0 %v8552_v58  ;;  %v697_v25 = vand.u32 4294901760, %v696_v41  ;;  %4638 = vmatmul.mubr.msk.f32.gmra.mrb[12].mxu0 %vm8247_vm12, %v8527_v30  ;;  %v8555_v28 = vand.u32 4294901760, %v8554_v14  ;;  %v8557_v0 = vand.u32 4294901760, %v8556_v45 }
  0xbb   : > { %v3675_v20 = vsel %vm8246_vm14, 1.0, %v8523_v46  ;;  %5076 = vmatprep.subr.bf16.mxu1 %v5926_v13  ;;  %v706_v41 = vsub.f32 %v6261_v38, %v8553_v57  ;;  %4640 = vmatprep.mubr.msk.f32.mxu0 %vm8246_vm14, %v8527_v30  ;;  %v8559_v13 = vand.u32 4294901760, %v5928_v48  ;;  %v8560_v37 = vand.u32 4294901760, %v5930_v18 }
  0xbc   : > { %4576 = vmatmul.mubr.f32.gmra.mrb[8].mxu1 %v687_v44  ;;  %v6366_v59 = vpack.c.bf16 %v8557_v0, %v8555_v28  ;;  %v6374_v31 = vsub.f32 %v3675_v20, %v3675_v20  ;;  %4958 = vmatpush3.bf16.msra.mxu0 %v8552_v58  ;;  %v6378_v55 = vpop.permute.xlu1 %356  ;;  %v8563_v0 = vand.u32 4294901760, %v6313_v6  ;;  %v3676_v20 = vsel %vm8257_vm15, 1.0, %v8523_v46 }
  0xbd   : > { %v2339_v57 = vsub.f32 %v5928_v48, %v8559_v13  ;;  %v2346_v44 = vsub.f32 %v5930_v18, %v8560_v37  ;;  %5078 = vmatpush3.bf16.msra.mxu1 %v5932_v16  ;;  %8561 = vst [vmem:[#allocation6_spill] sm:$0xff] %v6378_v55  ;;  %v6380_v14 = vpop.permute.xlu0 %353  ;;  %v2221_v13 = vand.u32 4294901760, %v6334_v51  ;;  %4578 = vmatprep.mubr.f32.mxu1 %v697_v25  ;;  %v8564_v25 = vld [vmem:[#allocation32_spill] sm:$0xff]  ;;  %v707_v37 = vand.u32 4294901760, %v706_v41 }
  0xbe   : > { %8558 = vst [vmem:[#allocation31_spill] sm:$0xff] %v6366_v59  ;;  %8562 = vst [vmem:[#allocation8_spill] sm:$0xff] %v6380_v14  ;;  %v716_v45 = vsub.f32 %v6313_v6, %v8563_v0  ;;  %vm8383_vm14 = vcmp.eq.s32.totalorder %v5838_v11, %v6380_v14  ;;  %vm8380_vm12 = vcmp.eq.s32.totalorder %v6273_v43, %v6380_v14  ;;  %4641 = vmatmul.mubr.msk.f32.gmra.mrb[14].mxu0 %vm8257_vm15, %v8527_v30  ;;  %v8573_v14 = vld [vmem:[#allocation9_spill] sm:$0xff]  ;;  %v8575_v59 = vld [vmem:[#allocation11_spill] sm:$0xff] }
  0xbf   : > { %vm8384_vm13 = vcmp.eq.s32.totalorder %v6273_v43, %v6378_v55  ;;  %v3678_v51 = vsel %vm8380_vm12, 1.0, %v8523_v46  ;;  %4960 = vmatprep.subr.bf16.mxu0 %v8564_v25  ;;  %v8565_v0 = vand.u32 4294901760, %v6311_v42  ;;  %v3677_v28 = vsel %vm8383_vm14, 1.0, %v8523_v46  ;;  %5080 = vmatprep.subr.bf16.mxu1 %v5938_v3 }
  0xc0   : > { %v2340_v16 = vand.u32 4294901760, %v2339_v57  ;;  %v2347_v48 = vand.u32 4294901760, %v2346_v44  ;;  %v6416_v22 = vsub.f32 %v3676_v20, %v3676_v20  ;;  %vm8271_vm15 = vcmp.eq.s32.totalorder %v5838_v11, %v6378_v55  ;;  %4579 = vmatmul.mubr.f32.gmra.mrb[10].mxu1 %v707_v37  ;;  %4962 = vmatpush3.bf16.msra.mxu0 %v8564_v25 }
  0xc1   : > { %v726_v58 = vsub.f32 %v6311_v42, %v8565_v0  ;;  %v717_v41 = vand.u32 4294901760, %v716_v45  ;;  %v3680_v3 = vsel %vm8384_vm13, 1.0, %v8523_v46  ;;  %v6426_v57 = vsub.f32 %v3678_v51, %v3678_v51  ;;  %4675 = vmatprep.mubr.f32.mxu0 %v6041_v10  ;;  %5082 = vmatpush3.bf16.msra.mxu1 %v5940_v60  ;;  %v6430_v44 = vpop.permute.xlu0 %359  ;;  %v8571_v51 = vld [vmem:[#allocation5_spill] sm:$0xff] }
  0xc2   : > { %8567 = vst [vmem:[#allocation94_spill] sm:$0xff] %v6430_v44  ;;  %v8568_v20 = vand.u32 4294901760, %v5934_v34  ;;  %v8569_v45 = vand.u32 4294901760, %v5936_v27  ;;  %v6442_v0 = vsub.f32 %v3677_v28, %v3677_v28  ;;  %4964 = vmatprep.subr.bf16.mxu0 %v8571_v51  ;;  %v8572_v60 = vand.u32 4294901760, %v6211_v63  ;;  %5084 = vmatprep.subr.bf16.mxu1 %v5954_v49 }
  0xc3   : > { %8566 = vst [vmem:[#allocation32_spill] sm:$0xff] %v6426_v57  ;;  %4581 = vmatprep.mubr.f32.mxu1 %v717_v41  ;;  %v727_v18 = vand.u32 4294901760, %v726_v58  ;;  %v8574_v30 = vand.u32 4294901760, %v8573_v14  ;;  %v3679_v28 = vsel %vm8271_vm15, 1.0, %v8523_v46  ;;  %4676 = vmatmul.mubr.f32.vlgmr.msra.gmra.mrb[0].mxu0 %v6073_v61  ;;  %v6461_v58 = vpack.c.bf16 %v2221_v13, %v2214_v15  ;;  %v8582_v14 = vld [vmem:[#allocation7_spill] sm:$0xff]  ;;  %v8586_v13 = vld [vmem:[#allocation69_spill] sm:$0xff] }
  0xc4   : > { %v6435_v25 = vsub.f32 %v5934_v34, %v8568_v20  ;;  %v6440_v37 = vsub.f32 %v5936_v27, %v8569_v45  ;;  %8570 = vst [vmem:[#allocation95_spill] sm:$0xff] %v6442_v0  ;;  %v6447_v19 = vpack.c.bf16 %v2333_v4, %v8572_v60  ;;  %v8576_v20 = vand.u32 4294901760, %v8575_v59  ;;  %4678 = vmatprep.mubr.f32.mxu0 %v6039_v33 }
  0xc5   : > { %v8577_v60 = vand.u32 4294901760, %v5948_v56  ;;  %v8277_v59 = vand.u32 4294901760, %v5950_v40  ;;  %vm8276_vm10 = vcmp.eq.s32.totalorder %v6273_v43, %v6430_v44  ;;  %4582 = vmatmul.mubr.f32.gmra.mrb[12].mxu1 %v727_v18  ;;  %v8579_v4 = vand.u32 4294901760, %v6374_v31  ;;  %4966 = vmatpush3.bf16.msra.mxu0 %v8571_v51 }
  0xc6   : > { %v6453_v34 = vpack.c.bf16 %v8576_v20, %v8574_v30  ;;  %v6469_v30 = vsub.f32 %v3680_v3, %v3680_v3  ;;  %5086 = vmatpush3.bf16.msra.mxu1 %v5973_v9  ;;  %v6481_v3 = vpack.c.bf16 %v2347_v48, %v2340_v16  ;;  %v2228_v41 = vand.u32 4294901760, %v6435_v25  ;;  %4968 = vmatprep.subr.bf16.mxu0 %v8582_v14  ;;  %v8583_v25 = vld [vmem:[#allocation65_spill] sm:$0xff] }
  0xc7   : > { %v6466_v63 = vsub.f32 %v5948_v56, %v8577_v60  ;;  %v736_v15 = vsub.f32 %v6374_v31, %v8579_v4  ;;  %v2235_v18 = vand.u32 4294901760, %v6440_v37  ;;  %v6485_v45 = vsub.f32 %v3679_v28, %v3679_v28  ;;  %v6488_v60 = vpop.permute.xlu1 %362  ;;  %5088 = vmatprep.subr.bf16.mxu1 %v5988_v53  ;;  %4679 = vmatmul.mubr.f32.gmra.mrb[2].mxu0 %v6071_v50  ;;  %v8589_v56 = vld [vmem:[#allocation10_spill] sm:$0xff] }
  0xc8   : > { %8578 = vst [vmem:[#allocation5_spill] sm:$0xff] %v6469_v30  ;;  %8581 = vst [vmem:[#allocation11_spill] sm:$0xff] %v6488_v60  ;;  %vm8292_vm15 = vcmp.eq.s32.totalorder %v5838_v11, %v6430_v44  ;;  %v3682_v16 = vsel %vm8276_vm10, 1.0, %v8523_v46  ;;  %v2360_v48 = vsub.f32 %v5950_v40, %v8277_v59  ;;  %4681 = vmatprep.mubr.f32.mxu0 %v6120_v12  ;;  %v8587_v9 = vand.u32 4294901760, %v6442_v0  ;;  %v8590_v40 = vld [vmem:[#allocation33_spill] sm:$0xff] }
  0xc9   : > { %8580 = vst [vmem:[#allocation9_spill] sm:$0xff] %v6485_v45  ;;  %v737_v4 = vand.u32 4294901760, %v736_v15  ;;  %v8584_v15 = vand.u32 4294901760, %v6416_v22  ;;  %v2354_v53 = vand.u32 4294901760, %v6466_v63  ;;  %vm8303_vm10 = vcmp.eq.s32.totalorder %v6273_v43, %v6488_v60  ;;  %4970 = vmatpush3.bf16.msra.mxu0 %v8582_v14 }
  0xca   : > { %5090 = vmatpush3.bf16.msra.mxu1 %v5997_v21  ;;  %v1935_v28 = vsub.f32 %v6442_v0, %v8587_v9  ;;  %v6526_v37 = vsub.f32 %v3682_v16, %v3682_v16  ;;  %4972 = vmatprep.subr.bf16.mxu0 %v8589_v56  ;;  %v6531_v21 = vpop.permute.xlu0 %365  ;;  %v8592_v63 = vand.u32 4294901760, %v8583_v25  ;;  %v8593_v9 = vand.u32 4294901760, %v5962_v26 }
  0xcb   : > { %4584 = vmatprep.mubr.f32.mxu1 %v737_v4  ;;  %v746_v20 = vsub.f32 %v6416_v22, %v8584_v15  ;;  %v3681_v4 = vsel %vm8292_vm15, 1.0, %v8523_v46  ;;  %v8585_v15 = vand.u32 4294901760, %v6426_v57  ;;  %5092 = vmatprep.subr.bf16.mxu1 %v8590_v40  ;;  %8591 = vst [vmem:[#allocation10_spill] sm:$0xff] %v6531_v21  ;;  %v8594_v40 = vand.u32 4294901760, %v6469_v30 }
  0xcc   : > { %8588 = vst [vmem:[#allocation7_spill] sm:$0xff] %v6526_v37  ;;  %4682 = vmatmul.mubr.f32.gmra.mrb[4].mxu0 %v6118_v1  ;;  %v6544_v27 = vpack.c.bf16 %v2235_v18, %v2228_v41  ;;  %vm8304_vm15 = vcmp.eq.s32.totalorder %v5838_v11, %v6488_v60  ;;  %v8598_v41 = vand.u32 4294901760, %v8586_v13  ;;  %vm8305_vm11 = vcmp.eq.s32.totalorder %v6273_v43, %v6531_v21 }
  0xcd   : > { %v1929_v59 = vsub.f32 %v6426_v57, %v8585_v15  ;;  %v747_v49 = vand.u32 4294901760, %v746_v20  ;;  %v2361_v15 = vand.u32 4294901760, %v2360_v48  ;;  %v2241_v57 = vsub.f32 %v8583_v25, %v8592_v63  ;;  %4684 = vmatprep.mubr.f32.mxu0 %v6167_v36  ;;  %4974 = vmatpush3.bf16.msra.mxu0 %v8589_v56 }
  0xce   : > { %v2248_v20 = vsub.f32 %v5962_v26, %v8593_v9  ;;  %v1944_v16 = vsub.f32 %v6469_v30, %v8594_v40  ;;  %v6555_v63 = vsub.f32 %v3681_v4, %v3681_v4  ;;  %v6557_v9 = vpop.permute.xlu1 %368  ;;  %v2374_v18 = vsub.f32 %v8586_v13, %v8598_v41 }
  0xcf   : > { %v1930_v44 = vand.u32 4294901760, %v1929_v59  ;;  %4585 = vmatmul.mubr.f32.gmra.mrb[14].mxu1 %v747_v49  ;;  %v8595_v59 = vand.u32 4294901760, %v5964_v8  ;;  %v3684_v49 = vsel %vm8303_vm10, 1.0, %v8523_v46  ;;  %8597 = vst [vmem:[#allocation96_spill] sm:$0xff] %v6557_v9  ;;  %v1936_v40 = vand.u32 4294901760, %v1935_v28 }
  0xd0   : > { %8596 = vst [vmem:[#allocation33_spill] sm:$0xff] %v6555_v63  ;;  %v8600_v30 = vand.u32 4294901760, %v6485_v45  ;;  %v8307_v0 = vand.u32 4294901760, %v6526_v37  ;;  %4685 = vmatmul.mubr.f32.gmra.mrb[6].mxu0 %v6165_v32  ;;  %v2242_v26 = vand.u32 4294901760, %v2241_v57  ;;  %v2249_v25 = vand.u32 4294901760, %v2248_v20  ;;  %v6588_v57 = vpop.permute.xlu0 %371 }
  0xd1   : > { %v2367_v48 = vsub.f32 %v5964_v8, %v8595_v59  ;;  %1931 = vmatprep.mubr.f32.mxu1 %v1930_v44  ;;  %v8599_v59 = vld [vmem:[#allocation13_spill] sm:$0xff]  ;;  %v1945_v8 = vand.u32 4294901760, %v1944_v16  ;;  %v6571_v44 = vpack.c.bf16 %v2361_v15, %v2354_v53  ;;  %v3683_v28 = vsel %vm8304_vm15, 1.0, %v8523_v46  ;;  %4687 = vmatprep.mubr.f32.mxu0 %v6215_v62  ;;  %8602 = vst [vmem:[#allocation97_spill] sm:$0xff] %v6588_v57 }
  0xd2   : > { %4976 = vmatprep.subr.bf16.mxu0 %v8599_v59  ;;  %v1950_v4 = vsub.f32 %v6485_v45, %v8600_v30  ;;  %vm8316_vm10 = vcmp.eq.s32.totalorder %v6273_v43, %v6557_v9  ;;  %v6582_v41 = vsub.f32 %v3684_v49, %v3684_v49  ;;  %v3686_v53 = vsel %vm8305_vm11, 1.0, %v8523_v46 }
  0xd3   : > { %1937 = vmatmul.mubr.f32.vlgmr.msra.gmra.mrb[16].mxu1 %v1936_v40  ;;  %v8308_v15 = vand.u32 4294901760, %v6555_v63  ;;  %v2368_v20 = vand.u32 4294901760, %v2367_v48  ;;  %vm8309_vm15 = vcmp.eq.s32.totalorder %v5838_v11, %v6557_v9  ;;  %4978 = vmatpush3.bf16.msra.mxu0 %v8599_v59  ;;  %v1959_v40 = vsub.f32 %v6526_v37, %v8307_v0 }
  0xd4   : > { %8601 = vst [vmem:[#allocation13_spill] sm:$0xff] %v6582_v41  ;;  %5094 = vmatpush3.bf16.msra.mxu1 %v6053_v24  ;;  %1946 = vmatprep.mubr.f32.mxu1 %v1945_v8  ;;  %v1951_v49 = vand.u32 4294901760, %v1950_v4  ;;  %v2375_v16 = vand.u32 4294901760, %v2374_v18  ;;  %v6599_v30 = vsub.f32 %v3683_v28, %v3683_v28  ;;  %v3688_v8 = vsel %vm8316_vm10, 1.0, %v8523_v46  ;;  %v8604_v24 = vld [vmem:[#allocation15_spill] sm:$0xff] }
  0xd5   : > { %5096 = vmatprep.subr.bf16.mxu1 %v6088_v54  ;;  %vm8336_vm11 = vcmp.eq.s32.totalorder %v5838_v11, %v6531_v21  ;;  %4688 = vmatmul.mubr.f32.gmra.mrb[8].mxu0 %v6213_v35  ;;  %v6609_v48 = vpack.c.bf16 %v2249_v25, %v2242_v26  ;;  %v6611_v4 = vsub.f32 %v3686_v53, %v3686_v53  ;;  %v6613_v54 = vpop.permute.xlu1 %374  ;;  %v1960_v18 = vand.u32 4294901760, %v1959_v40 }
  0xd6   : > { %8603 = vst [vmem:[#allocation98_spill] sm:$0xff] %v6599_v30  ;;  %4980 = vmatprep.subr.bf16.mxu0 %v8604_v24  ;;  %8606 = vst [vmem:[#allocation99_spill] sm:$0xff] %v6613_v54  ;;  %vm8317_vm8 = vcmp.eq.s32.totalorder %v6273_v43, %v6588_v57  ;;  %4690 = vmatprep.mubr.f32.mxu0 %v6263_v7  ;;  %v1965_v28 = vsub.f32 %v6555_v63, %v8308_v15  ;;  %v3687_v26 = vsel %vm8309_vm15, 1.0, %v8523_v46 }
  0xd7   : > { %8605 = vst [vmem:[#allocation15_spill] sm:$0xff] %v6611_v4  ;;  %1952 = vmatmul.mubr.f32.gmra.mrb[18].mxu1 %v1951_v49  ;;  %v8607_v53 = vand.u32 4294901760, %v5978_v29  ;;  %v8608_v40 = vand.u32 4294901760, %v5980_v39  ;;  %v3685_v15 = vsel %vm8336_vm11, 1.0, %v8523_v46  ;;  %vm8330_vm15 = vcmp.eq.s32.totalorder %v5838_v11, %v6588_v57  ;;  %4982 = vmatpush3.bf16.msra.mxu0 %v8604_v24 }
  0xd8   : > { %5098 = vmatpush3.bf16.msra.mxu1 %v6090_v5  ;;  %1961 = vmatprep.mubr.f32.mxu1 %v1960_v18  ;;  %v1966_v5 = vand.u32 4294901760, %v1965_v28  ;;  %v6644_v25 = vpack.c.bf16 %v2375_v16, %v2368_v20  ;;  %v8610_v63 = vand.u32 4294901760, %v6582_v41  ;;  %v6657_v45 = vsub.f32 %v3687_v26, %v3687_v26  ;;  %v8612_v16 = vld [vmem:[#allocation21_spill] sm:$0xff]  ;;  %v6672_v26 = vpop.permute.xlu0 %377 }
  0xd9   : > { %v6630_v49 = vsub.f32 %v5978_v29, %v8607_v53  ;;  %v6635_v0 = vsub.f32 %v5980_v39, %v8608_v40  ;;  %v6646_v53 = vsub.f32 %v3688_v8, %v3688_v8  ;;  %v3690_v40 = vsel %vm8317_vm8, 1.0, %v8523_v46  ;;  %4691 = vmatmul.mubr.f32.gmra.mrb[10].mxu0 %v6261_v38  ;;  %4984 = vmatprep.subr.bf16.mxu0 %v8612_v16  ;;  %v6678_v8 = vpop.permute.xlu1 %380  ;;  %v8619_v29 = vld [vmem:[#allocation23_spill] sm:$0xff] }
  0xda   : > { %v1974_v37 = vsub.f32 %v6582_v41, %v8610_v63  ;;  %8611 = vst [vmem:[#allocation101_spill] sm:$0xff] %v6657_v45  ;;  %vm8327_vm10 = vcmp.eq.s32.totalorder %v6273_v43, %v6613_v54  ;;  %v8322_v20 = vand.u32 4294901760, %v6599_v30  ;;  %v6664_v28 = vsub.f32 %v3685_v15, %v3685_v15  ;;  %8614 = vst [vmem:[#allocation102_spill] sm:$0xff] %v6672_v26 }
  0xdb   : > { %8609 = vst [vmem:[#allocation100_spill] sm:$0xff] %v6646_v53  ;;  %1967 = vmatmul.mubr.f32.gmra.mrb[20].mxu1 %v1966_v5  ;;  %vm8331_vm8 = vcmp.eq.s32.totalorder %v5838_v11, %v6613_v54  ;;  %v3689_v63 = vsel %vm8330_vm15, 1.0, %v8523_v46  ;;  %4693 = vmatprep.mubr.f32.mxu0 %v6313_v6  ;;  %v6676_v5 = vsub.f32 %v3690_v40, %v3690_v40  ;;  %v8615_v41 = vand.u32 4294901760, %v6611_v4  ;;  %v8623_v54 = vld [vmem:[#allocation26_spill] sm:$0xff] }
  0xdc   : > { %8613 = vst [vmem:[#allocation21_spill] sm:$0xff] %v6664_v28  ;;  %v1975_v18 = vand.u32 4294901760, %v1974_v37  ;;  %5100 = vmatprep.subr.bf16.mxu1 %v6092_v2  ;;  %4986 = vmatpush3.bf16.msra.mxu0 %v8612_v16  ;;  %v1980_v15 = vsub.f32 %v6599_v30, %v8322_v20  ;;  %v3692_v2 = vsel %vm8327_vm10, 1.0, %v8523_v46  ;;  %v8616_v40 = vand.u32 4294901760, %v5990_v47 }
  0xdd   : > { %v1989_v39 = vsub.f32 %v6611_v4, %v8615_v41  ;;  %5102 = vmatpush3.bf16.msra.mxu1 %v6185_v52  ;;  %4694 = vmatmul.mubr.f32.gmra.mrb[12].mxu0 %v6311_v42  ;;  %v8617_v41 = vld [vmem:[#allocation77_spill] sm:$0xff]  ;;  %v3691_v52 = vsel %vm8331_vm8, 1.0, %v8523_v46  ;;  %v6705_v37 = vsub.f32 %v3689_v63, %v3689_v63  ;;  %vm8355_vm10 = vcmp.eq.s32.totalorder %v6273_v43, %v6672_v26 }
  0xde   : > { %1976 = vmatprep.mubr.f32.mxu1 %v1975_v18  ;;  %v6697_v20 = vsub.f32 %v5990_v47, %v8616_v40  ;;  %v1981_v18 = vand.u32 4294901760, %v1980_v15  ;;  %4988 = vmatprep.subr.bf16.mxu0 %v8619_v29  ;;  %vm8352_vm15 = vcmp.eq.s32.totalorder %v6273_v43, %v6678_v8  ;;  %v8337_v4 = vand.u32 4294901760, %v6664_v28  ;;  %v6751_v15 = vpop.permute.xlu0 %383 }
  0xdf   : > { %8618 = vst [vmem:[#allocation77_spill] sm:$0xff] %v6705_v37  ;;  %4696 = vmatprep.mubr.f32.mxu0 %v6374_v31  ;;  %v1990_v40 = vand.u32 4294901760, %v1989_v39  ;;  %v8338_v30 = vand.u32 4294901760, %v6646_v53  ;;  %5104 = vmatprep.subr.bf16.mxu1 %v6447_v19  ;;  %v6716_v63 = vsub.f32 %v3692_v2, %v3692_v2  ;;  %vm8353_vm8 = vcmp.eq.s32.totalorder %v5838_v11, %v6672_v26 }
  0xe0   : > { %1982 = vmatmul.mubr.f32.gmra.mrb[22].mxu1 %v1981_v18  ;;  %4990 = vmatpush3.bf16.msra.mxu0 %v8619_v29  ;;  %v3694_v39 = vsel %vm8355_vm10, 1.0, %v8523_v46  ;;  %v1995_v19 = vsub.f32 %v6664_v28, %v8337_v4  ;;  %v8621_v18 = vld [vmem:[#allocation80_spill] sm:$0xff]  ;;  %v6735_v47 = vsub.f32 %v3691_v52, %v3691_v52  ;;  %vm8354_vm11 = vcmp.eq.s32.totalorder %v5838_v11, %v6678_v8 }
  0xe1   : > { %8620 = vst [vmem:[#allocation23_spill] sm:$0xff] %v6716_v63  ;;  %1991 = vmatprep.mubr.f32.mxu1 %v1990_v40  ;;  %v2004_v2 = vsub.f32 %v6646_v53, %v8338_v30  ;;  %4697 = vmatmul.mubr.f32.gmra.mrb[14].mxu0 %v6416_v22  ;;  %v3696_v40 = vsel %vm8352_vm15, 1.0, %v8523_v46  ;;  %v8624_v4 = vand.u32 4294901760, %v6041_v10  ;;  %v2263_v30 = vand.u32 4294901760, %v6635_v0 }
  0xe2   : > { %8622 = vst [vmem:[#allocation80_spill] sm:$0xff] %v6735_v47  ;;  %4992 = vmatprep.subr.bf16.mxu0 %v8623_v54  ;;  %v3693_v52 = vsel %vm8353_vm8, 1.0, %v8523_v46  ;;  %v1996_v53 = vand.u32 4294901760, %v1995_v19  ;;  %v8625_v28 = vand.u32 4294901760, %v6657_v45  ;;  %5106 = vmatpush3.bf16.msra.mxu1 %v6461_v58  ;;  %v6758_v10 = vsub.f32 %v3694_v39, %v3694_v39 }
  0xe3   : > { %4731 = vmatprep.mubr.f32.mxu0 %v8624_v4  ;;  %v6760_v4 = vpop.permute.xlu1 %386  ;;  %v2005_v0 = vand.u32 4294901760, %v2004_v2  ;;  %v8626_v26 = vand.u32 4294901760, %v6676_v5  ;;  %5108 = vmatprep.subr.bf16.mxu1 %v6481_v3  ;;  %v2382_v58 = vand.u32 4294901760, %v6697_v20  ;;  %v8628_v2 = vand.u32 4294901760, %v8617_v41 }
  0xe4   : > { %v2010_v57 = vsub.f32 %v6657_v45, %v8625_v28  ;;  %4994 = vmatpush3.bf16.msra.mxu0 %v8623_v54  ;;  %1997 = vmatmul.mubr.f32.gmra.mrb[24].mxu1 %v1996_v53  ;;  %v8627_v28 = vand.u32 4294901760, %v5992_v17  ;;  %v8629_v45 = vand.u32 4294901760, %v8621_v18  ;;  %v3695_v3 = vsel %vm8354_vm11, 1.0, %v8523_v46 }
  0xe5   : > { %v2019_v9 = vsub.f32 %v6676_v5, %v8626_v26  ;;  %4996 = vmatprep.subr.bf16.mxu0 %v6141_v23  ;;  %v2269_v13 = vsub.f32 %v8617_v41, %v8628_v2  ;;  %v6783_v53 = vsub.f32 %v3696_v40, %v3696_v40  ;;  %v6785_v20 = vsub.f32 %v3693_v52, %v3693_v52 }
  0xe6   : > { %v2388_v39 = vsub.f32 %v5992_v17, %v8627_v28  ;;  %v2276_v26 = vsub.f32 %v8621_v18, %v8629_v45  ;;  %vm8365_vm15 = vcmp.eq.s32.totalorder %v6273_v43, %v6751_v15  ;;  %2006 = vmatprep.mubr.f32.mxu1 %v2005_v0  ;;  %vm8362_vm8 = vcmp.eq.s32.totalorder %v6273_v43, %v6760_v4 }
  0xe7   : > { %8630 = vst [vmem:[#allocation26_spill] sm:$0xff] %v6783_v53  ;;  %8631 = vst [vmem:[#allocation103_spill] sm:$0xff] %v6785_v20  ;;  %v2011_v28 = vand.u32 4294901760, %v2010_v57  ;;  %v8632_v2 = vand.u32 4294901760, %v6073_v61  ;;  %v8633_v45 = vand.u32 4294901760, %v6705_v37  ;;  %5110 = vmatpush3.bf16.msra.mxu1 %v6544_v27  ;;  %vm8363_vm11 = vcmp.eq.s32.totalorder %v5838_v11, %v6751_v15 }
  0xe8   : > { %v2020_v52 = vand.u32 4294901760, %v2019_v9  ;;  %v8634_v0 = vand.u32 4294901760, %v6039_v33  ;;  %v8635_v61 = vand.u32 4294901760, %v6716_v63  ;;  %v3698_v27 = vsel %vm8365_vm15, 1.0, %v8523_v46  ;;  %5112 = vmatprep.subr.bf16.mxu1 %v6571_v44 }
  0xe9   : > { %4732 = vmatmul.mubr.f32.vlgmr.msra.gmra.mrb[0].mxu0 %v8632_v2  ;;  %v2025_v19 = vsub.f32 %v6705_v37, %v8633_v45  ;;  %2012 = vmatmul.mubr.f32.gmra.mrb[26].mxu1 %v2011_v28  ;;  %v8636_v45 = vld [vmem:[#allocation31_spill] sm:$0xff]  ;;  %v2389_v9 = vand.u32 4294901760, %v2388_v39  ;;  %v2270_v40 = vand.u32 4294901760, %v2269_v13  ;;  %v2277_v33 = vand.u32 4294901760, %v2276_v26  ;;  %v6827_v39 = vpop.permute.xlu0 %389 }
  0xea   : > { %4734 = vmatprep.mubr.f32.mxu0 %v8634_v0  ;;  %4998 = vmatpush3.bf16.msra.mxu0 %v6141_v23  ;;  %v2034_v57 = vsub.f32 %v6716_v63, %v8635_v61  ;;  %v6812_v0 = vsub.f32 %v3695_v3, %v3695_v3  ;;  %vm8364_vm10 = vcmp.eq.s32.totalorder %v5838_v11, %v6760_v4  ;;  %v3700_v23 = vsel %vm8362_vm8, 1.0, %v8523_v46 }
  0xeb   : > { %5000 = vmatprep.subr.bf16.mxu0 %v8636_v45  ;;  %2021 = vmatprep.mubr.f32.mxu1 %v2020_v52  ;;  %v8638_v28 = vand.u32 4294901760, %v6630_v49  ;;  %v3697_v13 = vsel %vm8363_vm11, 1.0, %v8523_v46  ;;  %8639 = vst [vmem:[#allocation104_spill] sm:$0xff] %v6827_v39  ;;  %v2026_v26 = vand.u32 4294901760, %v2025_v19  ;;  %v8640_v3 = vand.u32 4294901760, %v6071_v50  ;;  %v6838_v49 = vpop.permute.xlu1 %392 }
  0xec   : > { %8637 = vst [vmem:[#allocation31_spill] sm:$0xff] %v6812_v0  ;;  %v8641_v2 = vand.u32 4294901760, %v6735_v47  ;;  %5114 = vmatpush3.bf16.msra.mxu1 %v6609_v48  ;;  %8643 = vst [vmem:[#allocation106_spill] sm:$0xff] %v6838_v49  ;;  %v8644_v63 = vand.u32 4294901760, %v6120_v12  ;;  %v8645_v50 = vand.u32 4294901760, %v6758_v10  ;;  %v8646_v48 = vld [vmem:[#allocation12_spill] sm:$0xff]  ;;  %v5121_v37 = vpack.c.bf16 %v2277_v33, %v2270_v40 }
  0xed   : > { %v5117_v61 = vpack.c.bf16 %v2263_v30, %v8638_v28  ;;  %4735 = vmatmul.mubr.f32.gmra.mrb[2].mxu0 %v8640_v3  ;;  %v6836_v30 = vsub.f32 %v3698_v27, %v3698_v27  ;;  %v2035_v28 = vand.u32 4294901760, %v2034_v57  ;;  %2027 = vmatmul.mubr.f32.gmra.mrb[28].mxu1 %v2026_v26  ;;  %v8647_v27 = vand.u32 4294901760, %v8646_v48  ;;  %v8648_v3 = vld [vmem:[#allocation14_spill] sm:$0xff] }
  0xee   : > { %v2040_v52 = vsub.f32 %v6735_v47, %v8641_v2  ;;  %4737 = vmatprep.mubr.f32.mxu0 %v8644_v63  ;;  %5002 = vmatpush3.bf16.msra.mxu0 %v8636_v45  ;;  %v2049_v19 = vsub.f32 %v6758_v10, %v8645_v50  ;;  %v8386_v2 = vand.u32 4294901760, %v6783_v53  ;;  %v8649_v44 = vand.u32 4294901760, %v8648_v3 }
  0xef   : > { %8642 = vst [vmem:[#allocation105_spill] sm:$0xff] %v6836_v30  ;;  %5004 = vmatprep.subr.bf16.mxu0 %v6453_v34  ;;  %v5119_v57 = vpack.c.bf16 %v2389_v9, %v2382_v58  ;;  %v3699_v12 = vsel %vm8364_vm10, 1.0, %v8523_v46  ;;  %v6856_v63 = vsub.f32 %v3700_v23, %v3700_v23  ;;  %v6858_v45 = vsub.f32 %v3697_v13, %v3697_v13 }
  0xf0   : > { %v5007_v47 = vpack.c.bf16 %v8649_v44, %v8647_v27  ;;  %vm8369_vm8 = vcmp.eq.s32.totalorder %v6273_v43, %v6827_v39  ;;  %2036 = vmatprep.mubr.f32.mxu1 %v2035_v28  ;;  %5116 = vmatprep.subr.bf16.mxu1 %v6644_v25  ;;  %vm8366_vm11 = vcmp.eq.s32.totalorder %v6273_v43, %v6838_v49  ;;  %v2041_v58 = vand.u32 4294901760, %v2040_v52  ;;  %v8655_v52 = vld [vmem:[#allocation16_spill] sm:$0xff]  ;;  %v8657_v28 = vld [vmem:[#allocation17_spill] sm:$0xff]  ;;  %v6900_v27 = vpop.permute.xlu0 %395 }
  0xf1   : > { %8650 = vst [vmem:[#allocation12_spill] sm:$0xff] %v6856_v63  ;;  %8651 = vst [vmem:[#allocation14_spill] sm:$0xff] %v6858_v45  ;;  %v8652_v40 = vand.u32 4294901760, %v6118_v1  ;;  %v8653_v9 = vand.u32 4294901760, %v6785_v20  ;;  %v8385_v23 = vand.u32 4294901760, %v6812_v0  ;;  %5118 = vmatpush3.bf16.msra.mxu1 %v5117_v61  ;;  %vm8368_vm10 = vcmp.eq.s32.totalorder %v5838_v11, %v6827_v39 }
  0xf2   : > { %v2050_v13 = vand.u32 4294901760, %v2049_v19  ;;  %v8654_v25 = vand.u32 4294901760, %v6167_v36  ;;  %5006 = vmatpush3.bf16.msra.mxu0 %v6453_v34  ;;  %v2064_v1 = vsub.f32 %v6783_v53, %v8386_v2  ;;  %v8382_v26 = vand.u32 4294901760, %v6836_v30  ;;  %2042 = vmatmul.mubr.f32.gmra.mrb[30].mxu1 %v2041_v58  ;;  %8660 = vst [vmem:[#allocation17_spill] sm:$0xff] %v6900_v27  ;;  %v8721_v2 = vld [vmem:[#allocation48_spill] sm:$0xff]  ;;  %v8762_v53 = vld [vmem:[#allocation71_spill] sm:$0xff] }
  0xf3   : > { %4738 = vmatmul.mubr.f32.gmra.mrb[4].mxu0 %v8652_v40  ;;  %v2055_v33 = vsub.f32 %v6785_v20, %v8653_v9  ;;  %v3702_v61 = vsel %vm8369_vm8, 1.0, %v8523_v46  ;;  %5008 = vmatprep.subr.bf16.mxu0 %v5007_v47  ;;  %v8656_v44 = vand.u32 4294901760, %v8655_v52  ;;  %v8658_v36 = vand.u32 4294901760, %v8657_v28  ;;  %v8765_v20 = vld [vmem:[#allocation40_spill] sm:$0xff] }
  0xf4   : > { %4740 = vmatprep.mubr.f32.mxu0 %v8654_v25  ;;  %v6888_v19 = vsub.f32 %v3699_v12, %v3699_v12  ;;  %vm8367_vm15 = vcmp.eq.s32.totalorder %v5838_v11, %v6838_v49  ;;  %v3704_v34 = vsel %vm8366_vm11, 1.0, %v8523_v46  ;;  %2051 = vmatprep.mubr.f32.mxu1 %v2050_v13  ;;  %v3701_v48 = vsel %vm8368_vm10, 1.0, %v8523_v46  ;;  %v8664_v25 = vld [vmem:[#allocation18_spill] sm:$0xff] }
  0xf5   : > { %v5011_v50 = vpack.c.bf16 %v8658_v36, %v8656_v44  ;;  %5120 = vmatprep.subr.bf16.mxu1 %v5119_v57  ;;  %v2056_v3 = vand.u32 4294901760, %v2055_v33  ;;  %v8661_v12 = vand.u32 4294901760, %v6165_v32  ;;  %v2070_v58 = vsub.f32 %v6812_v0, %v8385_v23  ;;  %v8666_v44 = vld [vmem:[#allocation19_spill] sm:$0xff] }
  0xf6   : > { %8659 = vst [vmem:[#allocation16_spill] sm:$0xff] %v6888_v19  ;;  %v8373_v40 = vand.u32 4294901760, %v6858_v45  ;;  %5122 = vmatpush3.bf16.msra.mxu1 %v5121_v37  ;;  %v6908_v9 = vsub.f32 %v3702_v61, %v3702_v61  ;;  %v2065_v57 = vand.u32 4294901760, %v2064_v1  ;;  %v8663_v13 = vand.u32 4294901760, %v6215_v62  ;;  %5010 = vmatpush3.bf16.msra.mxu0 %v5007_v47  ;;  %v8669_v47 = vld [vmem:[#allocation28_spill] sm:$0xff]  ;;  %v8670_v61 = vld [vmem:[#allocation27_spill] sm:$0xff] }
  0xf7   : > { %4741 = vmatmul.mubr.f32.gmra.mrb[6].mxu0 %v8661_v12  ;;  %v2079_v33 = vsub.f32 %v6836_v30, %v8382_v26  ;;  %v8371_v32 = vand.u32 4294901760, %v6856_v63  ;;  %2057 = vmatmul.mubr.f32.gmra.mrb[32].mxu1 %v2056_v3  ;;  %v8665_v52 = vand.u32 4294901760, %v8664_v25  ;;  %v8667_v28 = vand.u32 4294901760, %v8666_v44  ;;  %v6933_v12 = vpop.permute.xlu1 %398  ;;  %v8720_v23 = vld [vmem:[#allocation47_spill] sm:$0xff]  ;;  %v8756_v30 = vld [vmem:[#allocation69_spill] sm:$0xff] }
  0xf8   : > { %8662 = vst [vmem:[#allocation107_spill] sm:$0xff] %v6908_v9  ;;  %4743 = vmatprep.mubr.f32.mxu0 %v8663_v13  ;;  %5012 = vmatprep.subr.bf16.mxu0 %v5011_v50  ;;  %v3703_v62 = vsel %vm8367_vm15, 1.0, %v8523_v46  ;;  %v6924_v1 = vsub.f32 %v3704_v34, %v3704_v34  ;;  %vm429_vm11 = vcmp.eq.s32.totalorder %v6273_v43, %v6900_v27  ;;  %8673 = vst [vmem:[#allocation28_spill] sm:$0xff] %v6933_v12 }
  0xf9   : > { %v5015_v37 = vpack.c.bf16 %v8667_v28, %v8665_v52  ;;  %2066 = vmatprep.mubr.f32.mxu1 %v2065_v57  ;;  %v8671_v36 = vpack.c.bf16 %v8669_v47, %v8670_v61  ;;  %v6931_v3 = vsub.f32 %v3701_v48, %v3701_v48  ;;  %v2071_v13 = vand.u32 4294901760, %v2070_v58  ;;  %v8676_v28 = vld [vmem:[#allocation20_spill] sm:$0xff] }
  0xfa   : > { %8668 = vst [vmem:[#allocation18_spill] sm:$0xff] %v6924_v1  ;;  %v8674_v25 = vand.u32 4294901760, %v6213_v35  ;;  %v2085_v34 = vsub.f32 %v6858_v45, %v8373_v40  ;;  %v8370_v52 = vand.u32 4294901760, %v6888_v19  ;;  %vm428_vm15 = vcmp.eq.s32.totalorder %v5838_v11, %v6900_v27  ;;  %5014 = vmatpush3.bf16.msra.mxu0 %v5011_v50  ;;  %v8755_v45 = vld [vmem:[#allocation68_spill] sm:$0xff] }
  0xfb   : > { %5124 = vmatprep.subr.bf16.mxu1 %v8671_v36  ;;  %8672 = vst [vmem:[#allocation19_spill] sm:$0xff] %v6931_v3  ;;  %v2080_v57 = vand.u32 4294901760, %v2079_v33  ;;  %v8675_v44 = vand.u32 4294901760, %v6263_v7  ;;  %v2094_v48 = vsub.f32 %v6856_v63, %v8371_v32  ;;  %v8372_v35 = vand.u32 4294901760, %v6908_v9  ;;  %2072 = vmatmul.mubr.f32.gmra.mrb[34].mxu1 %v2071_v13  ;;  %v8678_v33 = vld [vmem:[#allocation22_spill] sm:$0xff]  ;;  %v8753_v63 = vld [vmem:[#allocation63_spill] sm:$0xff] }
  0xfc   : > { %4744 = vmatmul.mubr.f32.gmra.mrb[8].mxu0 %v8674_v25  ;;  %v3706_v58 = vsel %vm429_vm11, 1.0, %v8523_v46  ;;  %5016 = vmatprep.subr.bf16.mxu0 %v5015_v37  ;;  %v8677_v36 = vand.u32 4294901760, %v8676_v28  ;;  %v8679_v25 = vand.u32 4294901760, %v8678_v33  ;;  %vm8390_vm10 = vcmp.eq.s32.totalorder %v5838_v11, %v6933_v12 }
  0xfd   : > { %4746 = vmatprep.mubr.f32.mxu0 %v8675_v44  ;;  %v6957_v44 = vsub.f32 %v3703_v62, %v3703_v62  ;;  %vm431_vm8 = vcmp.eq.s32.totalorder %v6273_v43, %v6933_v12  ;;  %2081 = vmatprep.mubr.f32.mxu1 %v2080_v57  ;;  %v3705_v50 = vsel %vm428_vm15, 1.0, %v8523_v46  ;;  %v2086_v13 = vand.u32 4294901760, %v2085_v34 }
  0xfe   : > { %v5019_v7 = vpack.c.bf16 %v8679_v25, %v8677_v36  ;;  %v8681_v28 = vand.u32 4294901760, %v6261_v38  ;;  %v2100_v62 = vsub.f32 %v6888_v19, %v8370_v52  ;;  %v8381_v36 = vand.u32 4294901760, %v6931_v3  ;;  %5018 = vmatpush3.bf16.msra.mxu0 %v5015_v37 }
  0xff   : > { %8680 = vst [vmem:[#allocation27_spill] sm:$0xff] %v6957_v44  ;;  %v6973_v33 = vsub.f32 %v3706_v58, %v3706_v58  ;;  %v2095_v25 = vand.u32 4294901760, %v2094_v48  ;;  %v8683_v57 = vand.u32 4294901760, %v6313_v6  ;;  %v2109_v34 = vsub.f32 %v6908_v9, %v8372_v35  ;;  %2087 = vmatmul.mubr.f32.gmra.mrb[36].mxu1 %v2086_v13  ;;  %v8684_v58 = vld [vmem:[#allocation24_spill] sm:$0xff]  ;;  %v8686_v48 = vld [vmem:[#allocation25_spill] sm:$0xff] }
 0x100   : > { %4747 = vmatmul.mubr.f32.gmra.mrb[10].mxu0 %v8681_v28  ;;  %v8379_v38 = vand.u32 4294901760, %v6924_v1  ;;  %v3708_v28 = vsel %vm431_vm8, 1.0, %v8523_v46  ;;  %5020 = vmatprep.subr.bf16.mxu0 %v5019_v7  ;;  %v8685_v52 = vand.u32 4294901760, %v8684_v58  ;;  %v8687_v32 = vand.u32 4294901760, %v8686_v48  ;;  %v8748_v9 = vld [vmem:[#allocation96_spill] sm:$0xff] }
 0x101   : > { %8682 = vst [vmem:[#allocation20_spill] sm:$0xff] %v6973_v33  ;;  %4749 = vmatprep.mubr.f32.mxu0 %v8683_v57  ;;  %v3707_v37 = vsel %vm8390_vm10, 1.0, %v8523_v46  ;;  %2096 = vmatprep.mubr.f32.mxu1 %v2095_v25  ;;  %v6993_v57 = vsub.f32 %v3705_v50, %v3705_v50  ;;  %v2101_v35 = vand.u32 4294901760, %v2100_v62  ;;  %v8689_v40 = vand.u32 4294901760, %v6311_v42 }
 0x102   : > { %v5023_v6 = vpack.c.bf16 %v8687_v32, %v8685_v52  ;;  %v2115_v13 = vsub.f32 %v6931_v3, %v8381_v36  ;;  %v8378_v58 = vand.u32 4294901760, %v6957_v44  ;;  %v7001_v48 = vsub.f32 %v3708_v28, %v3708_v28  ;;  %5022 = vmatpush3.bf16.msra.mxu0 %v5019_v7  ;;  %v8714_v36 = vld [vmem:[#allocation45_spill] sm:$0xff]  ;;  %v8744_v3 = vld [vmem:[#allocation56_spill] sm:$0xff] }
 0x103   : > { %8688 = vst [vmem:[#allocation22_spill] sm:$0xff] %v6993_v57  ;;  %v2110_v32 = vand.u32 4294901760, %v2109_v34  ;;  %v8691_v52 = vand.u32 4294901760, %v6374_v31  ;;  %v2124_v46 = vsub.f32 %v6924_v1, %v8379_v38  ;;  %v8377_v42 = vand.u32 4294901760, %v6973_v33  ;;  %2102 = vmatmul.mubr.f32.gmra.mrb[38].mxu1 %v2101_v35  ;;  %v8711_v38 = vld [vmem:[#allocation87_spill] sm:$0xff]  ;;  %v8741_v1 = vld [vmem:[#allocation30_spill] sm:$0xff] }
 0x104   : > { %4750 = vmatmul.mubr.f32.gmra.mrb[12].mxu0 %v8689_v40  ;;  %8690 = vst [vmem:[#allocation24_spill] sm:$0xff] %v7001_v48  ;;  %5024 = vmatprep.subr.bf16.mxu0 %v5023_v6  ;;  %v7009_v40 = vsub.f32 %v3707_v37, %v3707_v37  ;;  %v2116_v50 = vand.u32 4294901760, %v2115_v13  ;;  %v8693_v62 = vand.u32 4294901760, %v6416_v22  ;;  %v2130_v31 = vsub.f32 %v6957_v44, %v8378_v58  ;;  %v8752_v28 = vld [vmem:[#allocation64_spill] sm:$0xff]  ;;  %v8759_v13 = vld [vmem:[#allocation38_spill] sm:$0xff] }
 0x105   : > { %4752 = vmatprep.mubr.f32.mxu0 %v8691_v52  ;;  %2111 = vmatprep.mubr.f32.mxu1 %v2110_v32  ;;  %v8376_v7 = vand.u32 4294901760, %v6993_v57  ;;  %v2125_v25 = vand.u32 4294901760, %v2124_v46  ;;  %v8694_v34 = vmov 1.0   ;;  %v2139_v35 = vsub.f32 %v6973_v33, %v8377_v42  ;;  %v8710_v42 = vld [vmem:[#allocation42_spill] sm:$0xff]  ;;  %v8735_v33 = vld [vmem:[#allocation93_spill] sm:$0xff] }
 0x106   : > { %8692 = vst [vmem:[#allocation25_spill] sm:$0xff] %v7009_v40  ;;  %5026 = vmatpush3.bf16.msra.mxu0 %v5023_v6  ;;  %v8375_v22 = vand.u32 4294901760, %v7001_v48  ;;  %v2131_v37 = vand.u32 4294901760, %v2130_v31  ;;  %v8374_v32 = vand.u32 4294901760, %v7009_v40  ;;  %vm8727_vm10 = vcmp.eq.s32.totalorder %v6273_v43, %v6488_v60  ;;  %v8764_v46 = vld [vmem:[#allocation74_spill] sm:$0xff] }
 0x107   : > { %2117 = vmatmul.mubr.f32.gmra.mrb[40].mxu1 %v2116_v50  ;;  %5028 = vmatprep.subr.bf16.mxu0 %v8571_v51  ;;  %v2145_v6 = vsub.f32 %v6993_v57, %v8376_v7  ;;  %v2140_v52 = vand.u32 4294901760, %v2139_v35  ;;  %v8733_v57 = vld [vmem:[#allocation50_spill] sm:$0xff]  ;;  %v5147_v0 = vpack.c.bf16 %v8756_v30, %v8755_v45  ;;  %v8763_v30 = vld [vmem:[#allocation72_spill] sm:$0xff]  ;;  %v5153_v31 = vpack.c.bf16 %v8621_v18, %v8617_v41 }
 0x108   : > { %4753 = vmatmul.mubr.f32.gmra.mrb[14].mxu0 %v8693_v62  ;;  %2126 = vmatprep.mubr.f32.mxu1 %v2125_v25  ;;  %v2154_v50 = vsub.f32 %v7001_v48, %v8375_v22  ;;  %v2160_v25 = vsub.f32 %v7009_v40, %v8374_v32  ;;  %v8706_v32 = vld [vmem:[#allocation37_spill] sm:$0xff]  ;;  %v8707_v22 = vld [vmem:[#allocation39_spill] sm:$0xff]  ;;  %v5149_v45 = vpack.c.bf16 %v8763_v30, %v8762_v53 }
 0x109   : > { %4787 = vmatprep.mubr.msk.f32.mxu0 %vm304_vm1, %v8694_v34  ;;  %v2146_v62 = vand.u32 4294901760, %v2145_v6  ;;  %v5127_v7 = vpack.c.bf16 %v8707_v22, %v8706_v32  ;;  %v8722_v40 = vld [vmem:[#allocation89_spill] sm:$0xff]  ;;  %v8730_v48 = vld [vmem:[#allocation91_spill] sm:$0xff] }
 0x10a   : > { %v2155_v35 = vand.u32 4294901760, %v2154_v50  ;;  %v8703_v50 = vld [vmem:[#allocation35_spill] sm:$0xff]  ;;  %v8774_v6 = vld [vmem:[#allocation49_spill] sm:$0xff] }
 0x10b   : > { %2132 = vmatmul.mubr.f32.gmra.mrb[42].mxu1 %v2131_v37  ;;  %v2161_v37 = vand.u32 4294901760, %v2160_v25 }
 0x10c   : > { %4788 = vmatmul.mubr.msk.f32.vlgmr.msra.gmra.mrb[0].mxu0 %vm305_vm3, %v8694_v34  ;;  %2141 = vmatprep.mubr.f32.mxu1 %v2140_v52  ;;  %v8785_v52 = vld [vmem:[#allocation61_spill] sm:$0xff] }
 0x10d   : > { %4790 = vmatprep.mubr.msk.f32.mxu0 %vm306_vm0, %v8694_v34  ;;  %5030 = vmatpush3.bf16.msra.mxu0 %v8571_v51  ;;  %v8770_v51 = vand.u32 4294901760, %v8670_v61  ;;  %v8779_v61 = vld [vmem:[#allocation55_spill] sm:$0xff] }
 0x10e   : > { %5032 = vmatprep.subr.bf16.mxu0 %v8582_v14 }
 0x10f   : > { %2147 = vmatmul.mubr.f32.gmra.mrb[44].mxu1 %v2146_v62  ;;  %v8704_v62 = vld [vmem:[#allocation36_spill] sm:$0xff] }
 0x110   : > { %4791 = vmatmul.mubr.msk.f32.gmra.mrb[2].mxu0 %vm307_vm2, %v8694_v34  ;;  %2156 = vmatprep.mubr.f32.mxu1 %v2155_v35  ;;  %v5125_v25 = vpack.c.bf16 %v8704_v62, %v8703_v50  ;;  %v8791_v35 = vld [vmem:[#allocation66_spill] sm:$0xff] }
 0x111   : > { %4793 = vmatprep.mubr.msk.f32.mxu0 %vm308_vm5, %v8694_v34  ;;  %5034 = vmatpush3.bf16.msra.mxu0 %v8582_v14  ;;  %v5133_v14 = vpack.c.bf16 %v8721_v2, %v8720_v23 }
 0x112   : > { %5036 = vmatprep.subr.bf16.mxu0 %v8589_v56 }
 0x113   : > { %2162 = vmatmul.mubr.f32.gmra.mrb[46].mxu1 %v2161_v37  ;;  %v8709_v37 = vld [vmem:[#allocation41_spill] sm:$0xff] }
 0x114   : > { %4794 = vmatmul.mubr.msk.f32.gmra.mrb[4].mxu0 %vm309_vm4, %v8694_v34  ;;  %3757 = vmatprep.mubr.msk.f32.mxu1 %vm8380_vm12, %v8694_v34  ;;  %v5129_v58 = vpack.c.bf16 %v8710_v42, %v8709_v37  ;;  %vm8712_vm12 = vcmp.eq.s32.totalorder %v5838_v11, %v8711_v38 }
 0x115   : > { %4796 = vmatprep.mubr.msk.f32.mxu0 %vm310_vm7, %v8694_v34  ;;  %5038 = vmatpush3.bf16.msra.mxu0 %v8589_v56  ;;  %v8797_v56 = vld [vmem:[#allocation73_spill] sm:$0xff] }
 0x116   : > { %5040 = vmatprep.subr.bf16.mxu0 %v8599_v59 }
 0x117   : > { %3758 = vmatmul.mubr.msk.f32.vlgmr.msra.gmra.mrb[48].mxu1 %vm8383_vm14, %v8694_v34 }
 0x118   : > { %4797 = vmatmul.mubr.msk.f32.gmra.mrb[6].mxu0 %vm311_vm6, %v8694_v34  ;;  %5126 = vmatpush3.bf16.msra.mxu1 %v5125_v25  ;;  %v8715_v25 = vld [vmem:[#allocation90_spill] sm:$0xff] }
 0x119   : > { %4799 = vmatprep.mubr.msk.f32.mxu0 %vm312_vm9, %v8694_v34  ;;  %5042 = vmatpush3.bf16.msra.mxu0 %v8599_v59  ;;  %v8713_v59 = vld [vmem:[#allocation44_spill] sm:$0xff]  ;;  %vm8716_vm14 = vcmp.eq.s32.totalorder %v5838_v11, %v8715_v25 }
 0x11a   : > { %5044 = vmatprep.subr.bf16.mxu0 %v8604_v24  ;;  %3759 = vmatprep.mubr.msk.f32.mxu1 %vm8384_vm13, %v8694_v34  ;;  %v5131_v26 = vpack.c.bf16 %v8714_v36, %v8713_v59  ;;  %vm8717_vm13 = vcmp.eq.s32.totalorder %v5838_v11, %v6378_v55 }
 0x11b   : > { %5128 = vmatprep.subr.bf16.mxu1 %v5127_v7  ;;  %3760 = vmatmul.mubr.msk.f32.gmra.mrb[50].mxu1 %vm8717_vm13, %v8694_v34  ;;  %v8718_v7 = vld [vmem:[#allocation94_spill] sm:$0xff] }
 0x11c   : > { %4800 = vmatmul.mubr.msk.f32.gmra.mrb[8].mxu0 %vm8712_vm12, %v8694_v34  ;;  %vm8719_vm12 = vcmp.eq.s32.totalorder %v6273_v43, %v8718_v7  ;;  %5130 = vmatpush3.bf16.msra.mxu1 %v5129_v58  ;;  %v8729_v58 = vld [vmem:[#allocation54_spill] sm:$0xff] }
 0x11d   : > { %4802 = vmatprep.mubr.msk.f32.mxu0 %vm8716_vm14, %v8694_v34  ;;  %5046 = vmatpush3.bf16.msra.mxu0 %v8604_v24  ;;  %vm8723_vm14 = vcmp.eq.s32.totalorder %v5838_v11, %v8722_v40  ;;  %v8724_v24 = vld [vmem:[#allocation92_spill] sm:$0xff] }
 0x11e   : > { %5048 = vmatprep.subr.bf16.mxu0 %v8612_v16  ;;  %3761 = vmatprep.mubr.msk.f32.mxu1 %vm8719_vm12, %v8694_v34  ;;  %vm8725_vm13 = vcmp.eq.s32.totalorder %v5838_v11, %v8724_v24  ;;  %vm8726_vm12 = vcmp.eq.s32.totalorder %v5838_v11, %v8718_v7 }
 0x11f   : > { %5132 = vmatprep.subr.bf16.mxu1 %v5131_v26  ;;  %3762 = vmatmul.mubr.msk.f32.gmra.mrb[52].mxu1 %vm8726_vm12, %v8694_v34  ;;  %v8728_v26 = vld [vmem:[#allocation53_spill] sm:$0xff]  ;;  %vm8738_vm12 = vcmp.eq.s32.totalorder %v6273_v43, %v6531_v21 }
 0x120   : > { %4803 = vmatmul.mubr.msk.f32.gmra.mrb[10].mxu0 %vm8723_vm14, %v8694_v34  ;;  %3763 = vmatprep.mubr.msk.f32.mxu1 %vm8727_vm10, %v8694_v34  ;;  %v5137_v55 = vpack.c.bf16 %v8729_v58, %v8728_v26  ;;  %vm8731_vm14 = vcmp.eq.s32.totalorder %v5838_v11, %v8730_v48  ;;  %vm8737_vm10 = vcmp.eq.s32.totalorder %v5838_v11, %v6488_v60 }
 0x121   : > { %4805 = vmatprep.mubr.msk.f32.mxu0 %vm8725_vm13, %v8694_v34  ;;  %5050 = vmatpush3.bf16.msra.mxu0 %v8612_v16  ;;  %v8732_v16 = vld [vmem:[#allocation51_spill] sm:$0xff]  ;;  %vm8736_vm13 = vcmp.eq.s32.totalorder %v5838_v11, %v8735_v33 }
 0x122   : > { %5052 = vmatprep.subr.bf16.mxu0 %v8619_v29  ;;  %5134 = vmatpush3.bf16.msra.mxu1 %v5133_v14  ;;  %v8734_v7 = vpack.c.bf16 %v8732_v16, %v8733_v57  ;;  %v8739_v14 = vld [vmem:[#allocation59_spill] sm:$0xff] }
 0x123   : > { %3764 = vmatmul.mubr.msk.f32.gmra.mrb[54].mxu1 %vm8737_vm10, %v8694_v34  ;;  %vm8749_vm10 = vcmp.eq.s32.totalorder %v6273_v43, %v8748_v9 }
 0x124   : > { %4806 = vmatmul.mubr.msk.f32.gmra.mrb[12].mxu0 %vm8731_vm14, %v8694_v34  ;;  %5136 = vmatprep.subr.bf16.mxu1 %v8734_v7  ;;  %v8740_v7 = vld [vmem:[#allocation60_spill] sm:$0xff]  ;;  %vm8742_vm14 = vcmp.eq.s32.totalorder %v5838_v11, %v8741_v1 }
 0x125   : > { %4808 = vmatprep.mubr.msk.f32.mxu0 %vm8736_vm13, %v8694_v34  ;;  %5054 = vmatpush3.bf16.msra.mxu0 %v8619_v29  ;;  %v5141_v44 = vpack.c.bf16 %v8740_v7, %v8739_v14  ;;  %v8743_v29 = vld [vmem:[#allocation57_spill] sm:$0xff]  ;;  %vm8746_vm13 = vcmp.eq.s32.totalorder %v5838_v11, %v6531_v21  ;;  %v8754_v21 = vpack.c.bf16 %v8752_v28, %v8753_v63 }
 0x126   : > { %5056 = vmatprep.subr.bf16.mxu0 %v8623_v54  ;;  %3765 = vmatprep.mubr.msk.f32.mxu1 %vm8738_vm12, %v8694_v34  ;;  %v8745_v60 = vpack.c.bf16 %v8743_v29, %v8744_v3  ;;  %vm8780_vm12 = vcmp.eq.s32.totalorder %v6273_v43, %v6678_v8 }
 0x127   : > { %5138 = vmatpush3.bf16.msra.mxu1 %v5137_v55  ;;  %v8747_v55 = vld [vmem:[#allocation29_spill] sm:$0xff] }
 0x128   : > { %4809 = vmatmul.mubr.msk.f32.gmra.mrb[14].mxu0 %vm8742_vm14, %v8694_v34  ;;  %5140 = vmatprep.subr.bf16.mxu1 %v8745_v60  ;;  %v8750_v60 = vld [vmem:[#allocation65_spill] sm:$0xff]  ;;  %vm8784_vm14 = vcmp.eq.s32.totalorder %v5838_v11, %v6678_v8 }
 0x129   : > { %5058 = vmatpush3.bf16.msra.mxu0 %v8623_v54  ;;  %4843 = vmatprep.mubr.msk.f32.mxu0 %vm304_vm1, %v8694_v34  ;;  %v8751_v54 = vld [vmem:[#allocation67_spill] sm:$0xff]  ;;  %vm8758_vm1 = vcmp.eq.s32.totalorder %v5838_v11, %v8748_v9  ;;  %v5151_v9 = vpack.c.bf16 %v5992_v17, %v8764_v46 }
 0x12a   : > { %3766 = vmatmul.mubr.msk.f32.gmra.mrb[56].mxu1 %vm8746_vm13, %v8694_v34  ;;  %5156 = vmatprep.subr.bf16.mxu0 %v8747_v55  ;;  %v5145_v19 = vpack.c.bf16 %v8751_v54, %v8750_v60  ;;  %vm8786_vm13 = vcmp.eq.s32.totalorder %v6273_v43, %v6751_v15 }
 0x12b   : > { %3767 = vmatprep.mubr.msk.f32.mxu1 %vm8749_vm10, %v8694_v34  ;;  %5142 = vmatpush3.bf16.msra.mxu1 %v5141_v44  ;;  %v8757_v44 = vld [vmem:[#allocation34_spill] sm:$0xff]  ;;  %vm8787_vm10 = vcmp.eq.s32.totalorder %v5838_v11, %v8722_v40 }
 0x12c   : > { %4844 = vmatmul.mubr.msk.f32.vlgmr.msra.gmra.mrb[0].mxu0 %vm305_vm3, %v8694_v34  ;;  %5144 = vmatprep.subr.bf16.mxu1 %v8754_v21  ;;  %v8760_v21 = vld [vmem:[#allocation97_spill] sm:$0xff]  ;;  %v8795_v40 = vld [vmem:[#allocation70_spill] sm:$0xff] }
 0x12d   : > { %4846 = vmatprep.mubr.msk.f32.mxu0 %vm306_vm0, %v8694_v34  ;;  %5158 = vmatpush3.bf16.msra.mxu0 %v8757_v44  ;;  %vm8761_vm3 = vcmp.eq.s32.totalorder %v6273_v43, %v8760_v21  ;;  %vm8766_vm0 = vcmp.eq.s32.totalorder %v5838_v11, %v8760_v21  ;;  %v8771_v21 = vand.u32 4294901760, %v8669_v47  ;;  %v8777_v47 = vld [vmem:[#allocation52_spill] sm:$0xff] }
 0x12e   : > { %3768 = vmatmul.mubr.msk.f32.gmra.mrb[58].mxu1 %vm8758_vm1, %v8694_v34  ;;  %5160 = vmatprep.subr.bf16.mxu0 %v8759_v13  ;;  %vm8788_vm1 = vcmp.eq.s32.totalorder %v5838_v11, %v8724_v24  ;;  %v8805_v24 = vld [vmem:[#allocation95_spill] sm:$0xff] }
 0x12f   : > { %3769 = vmatprep.mubr.msk.f32.mxu1 %vm8761_vm3, %v8694_v34  ;;  %5146 = vmatpush3.bf16.msra.mxu1 %v5145_v19  ;;  %v8767_v19 = vld [vmem:[#allocation43_spill] sm:$0xff]  ;;  %v5187_v17 = vpack.c.bf16 %v8771_v21, %v8770_v51  ;;  %vm8790_vm3 = vcmp.eq.s32.totalorder %v5838_v11, %v6751_v15  ;;  %v8807_v21 = vld [vmem:[#allocation5_spill] sm:$0xff] }
 0x130   : > { %4847 = vmatmul.mubr.msk.f32.gmra.mrb[2].mxu0 %vm307_vm2, %v8694_v34  ;;  %5148 = vmatprep.subr.bf16.mxu1 %v5147_v0  ;;  %v8768_v0 = vld [vmem:[#allocation99_spill] sm:$0xff] }
 0x131   : > { %4849 = vmatprep.mubr.msk.f32.mxu0 %vm308_vm5, %v8694_v34  ;;  %5162 = vmatpush3.bf16.msra.mxu0 %v8765_v20  ;;  %vm8769_vm2 = vcmp.eq.s32.totalorder %v6273_v43, %v8768_v0  ;;  %vm8773_vm5 = vcmp.eq.s32.totalorder %v5838_v11, %v8768_v0 }
 0x132   : > { %3770 = vmatmul.mubr.msk.f32.gmra.mrb[60].mxu1 %vm8766_vm0, %v8694_v34  ;;  %5164 = vmatprep.subr.bf16.mxu0 %v8767_v19  ;;  %vm8792_vm0 = vcmp.eq.s32.totalorder %v6273_v43, %v6760_v4 }
 0x133   : > { %3771 = vmatprep.mubr.msk.f32.mxu1 %vm8769_vm2, %v8694_v34  ;;  %5150 = vmatpush3.bf16.msra.mxu1 %v5149_v45  ;;  %v8772_v45 = vld [vmem:[#allocation46_spill] sm:$0xff]  ;;  %vm8793_vm2 = vcmp.eq.s32.totalorder %v5838_v11, %v8730_v48  ;;  %v8801_v48 = vld [vmem:[#allocation32_spill] sm:$0xff] }
 0x134   : > { %4850 = vmatmul.mubr.msk.f32.gmra.mrb[4].mxu0 %vm309_vm4, %v8694_v34  ;;  %5152 = vmatprep.subr.bf16.mxu1 %v5151_v9  ;;  %v8775_v9 = vld [vmem:[#allocation102_spill] sm:$0xff] }
 0x135   : > { %4852 = vmatprep.mubr.msk.f32.mxu0 %vm310_vm7, %v8694_v34  ;;  %5166 = vmatpush3.bf16.msra.mxu0 %v8772_v45  ;;  %vm8776_vm4 = vcmp.eq.s32.totalorder %v6273_v43, %v8775_v9  ;;  %vm8778_vm7 = vcmp.eq.s32.totalorder %v5838_v11, %v8775_v9 }
 0x136   : > { %3772 = vmatmul.mubr.msk.f32.gmra.mrb[62].mxu1 %vm8773_vm5, %v8694_v34  ;;  %5168 = vmatprep.subr.bf16.mxu0 %v8774_v6  ;;  %vm8794_vm5 = vcmp.eq.s32.totalorder %v5838_v11, %v8735_v33  ;;  %v8800_v33 = vld [vmem:[#allocation76_spill] sm:$0xff] }
 0x137   : > { %3773 = vmatprep.mubr.msk.f32.mxu1 %vm8776_vm4, %v8694_v34  ;;  %5154 = vmatpush3.bf16.msra.mxu1 %v5153_v31  ;;  %vm8796_vm4 = vcmp.eq.s32.totalorder %v5838_v11, %v6760_v4  ;;  %v8808_v31 = vand.u32 4294901760, %v8807_v21 }
 0x138   : > { %4853 = vmatmul.mubr.msk.f32.gmra.mrb[6].mxu0 %vm311_vm6, %v8694_v34  ;;  %5188 = vmatprep.subr.bf16.mxu1 %v5187_v17  ;;  %vm8781_vm6 = vcmp.eq.s32.totalorder %v5838_v11, %v8711_v38  ;;  %v8783_v17 = vld [vmem:[#allocation58_spill] sm:$0xff] }
 0x139   : > { %4855 = vmatprep.mubr.msk.f32.mxu0 %vm312_vm9, %v8694_v34  ;;  %5170 = vmatpush3.bf16.msra.mxu0 %v8777_v47  ;;  %vm8782_vm9 = vcmp.eq.s32.totalorder %v5838_v11, %v8715_v25  ;;  %v8789_v38 = vld [vmem:[#allocation62_spill] sm:$0xff]  ;;  %v8802_v25 = vand.u32 4294901760, %v8801_v48 }
 0x13a   : > { %3774 = vmatmul.mubr.msk.f32.gmra.mrb[64].mxu1 %vm8778_vm7, %v8694_v34  ;;  %5172 = vmatprep.subr.bf16.mxu0 %v8779_v61  ;;  %vm8798_vm7 = vcmp.eq.s32.totalorder %v6273_v43, %v6827_v39 }
 0x13b   : > { %3775 = vmatprep.mubr.msk.f32.mxu1 %vm8780_vm12, %v8694_v34  ;;  %vm8799_vm12 = vcmp.eq.s32.totalorder %v5838_v11, %v8741_v1  ;;  %v8806_v1 = vand.u32 4294901760, %v8805_v24 }
 0x13c   : > { %4856 = vmatmul.mubr.msk.f32.gmra.mrb[8].mxu0 %vm8781_vm6, %v8694_v34  ;;  %vm8803_vm6 = vcmp.eq.s32.totalorder %v5838_v11, %v6827_v39  ;;  %v8825_v39 = vld [vmem:[#allocation15_spill] sm:$0xff] }
 0x13d   : > { %4858 = vmatprep.mubr.msk.f32.mxu0 %vm8782_vm9, %v8694_v34  ;;  %5174 = vmatpush3.bf16.msra.mxu0 %v8783_v17  ;;  %vm8804_vm9 = vcmp.eq.s32.totalorder %v6273_v43, %v6838_v49 }
 0x13e   : > { %3776 = vmatmul.mubr.msk.f32.gmra.mrb[66].mxu1 %vm8784_vm14, %v8694_v34  ;;  %5176 = vmatprep.subr.bf16.mxu0 %v8785_v52  ;;  %vm8809_vm14 = vcmp.eq.s32.totalorder %v5838_v11, %v6838_v49 }
 0x13f   : > { %3777 = vmatprep.mubr.msk.f32.mxu1 %vm8786_vm13, %v8694_v34  ;;  %vm8818_vm13 = vcmp.eq.s32.totalorder %v5838_v11, %v6933_v12  ;;  %v8826_v12 = vand.u32 4294901760, %v8825_v39 }
 0x140   : > { %4859 = vmatmul.mubr.msk.f32.gmra.mrb[10].mxu0 %vm8787_vm10, %v8694_v34 }
 0x141   : > { %4861 = vmatprep.mubr.msk.f32.mxu0 %vm8788_vm1, %v8694_v34  ;;  %5178 = vmatpush3.bf16.msra.mxu0 %v8789_v38 }
 0x142   : > { %3778 = vmatmul.mubr.msk.f32.gmra.mrb[68].mxu1 %vm8790_vm3, %v8694_v34  ;;  %5180 = vmatprep.subr.bf16.mxu0 %v8791_v35 }
 0x143   : > { %3779 = vmatprep.mubr.msk.f32.mxu1 %vm8792_vm0, %v8694_v34 }
 0x144   : > { %4862 = vmatmul.mubr.msk.f32.gmra.mrb[12].mxu0 %vm8793_vm2, %v8694_v34 }
 0x145   : > { %4864 = vmatprep.mubr.msk.f32.mxu0 %vm8794_vm5, %v8694_v34  ;;  %5182 = vmatpush3.bf16.msra.mxu0 %v8795_v40 }
 0x146   : > { %3780 = vmatmul.mubr.msk.f32.gmra.mrb[70].mxu1 %vm8796_vm4, %v8694_v34  ;;  %5184 = vmatprep.subr.bf16.mxu0 %v8797_v56 }
 0x147   : > { %3781 = vmatprep.mubr.msk.f32.mxu1 %vm8798_vm7, %v8694_v34 }
 0x148   : > { %4865 = vmatmul.mubr.msk.f32.gmra.mrb[14].mxu0 %vm8799_vm12, %v8694_v34 }
 0x149   : > { %5186 = vmatpush3.bf16.msra.mxu0 %v8800_v33  ;;  %2876 = vmatprep.mubr.f32.mxu0 %v8802_v25  ;;  %v8812_v25 = vld [vmem:[#allocation7_spill] sm:$0xff] }
 0x14a   : > { %3782 = vmatmul.mubr.msk.f32.gmra.mrb[72].mxu1 %vm8803_vm6, %v8694_v34  ;;  %5220 = vmatprep.subr.bf16.mxu0 %v8747_v55  ;;  %v8810_v55 = vld [vmem:[#allocation9_spill] sm:$0xff] }
 0x14b   : > { %3783 = vmatprep.mubr.msk.f32.mxu1 %vm8804_vm9, %v8694_v34  ;;  %v8811_v51 = vand.u32 4294901760, %v8810_v55 }
 0x14c   : > { %2880 = vmatmul.mubr.f32.vlgmr.msra.gmra.mrb[16].mxu0 %v8806_v1  ;;  %v8813_v1 = vand.u32 4294901760, %v8812_v25 }
 0x14d   : > { %2887 = vmatprep.mubr.f32.mxu0 %v8808_v31  ;;  %5222 = vmatpush3.bf16.msra.mxu0 %v8757_v44  ;;  %v8814_v44 = vld [vmem:[#allocation33_spill] sm:$0xff] }
 0x14e   : > { %3784 = vmatmul.mubr.msk.f32.gmra.mrb[74].mxu1 %vm8809_vm14, %v8694_v34  ;;  %5224 = vmatprep.subr.bf16.mxu0 %v8759_v13  ;;  %v8815_v13 = vand.u32 4294901760, %v8814_v44  ;;  %v8816_v31 = vld [vmem:[#allocation13_spill] sm:$0xff] }
 0x14f   : > { %3785 = vmatprep.mubr.msk.f32.mxu1 %vm429_vm11, %v8694_v34 }
 0x150   : > { %2891 = vmatmul.mubr.f32.gmra.mrb[18].mxu0 %v8811_v51  ;;  %v8817_v51 = vand.u32 4294901760, %v8816_v31 }
 0x151   : > { %2898 = vmatprep.mubr.f32.mxu0 %v8813_v1  ;;  %5226 = vmatpush3.bf16.msra.mxu0 %v8765_v20  ;;  %v8819_v20 = vand.u32 4294901760, %v8703_v50  ;;  %v8827_v50 = vand.u32 4294901760, %v8709_v37 }
 0x152   : > { %3786 = vmatmul.mubr.msk.f32.gmra.mrb[76].mxu1 %vm428_vm15, %v8694_v34  ;;  %5228 = vmatprep.subr.bf16.mxu0 %v8767_v19  ;;  %v8820_v19 = vand.u32 4294901760, %v8704_v62  ;;  %v8829_v62 = vld [vmem:[#allocation21_spill] sm:$0xff] }
 0x153   : > { %3787 = vmatprep.mubr.msk.f32.mxu1 %vm431_vm8, %v8694_v34 }
 0x154   : > { %2902 = vmatmul.mubr.f32.gmra.mrb[20].mxu0 %v8815_v13  ;;  %v5189_v1 = vpack.c.bf16 %v8820_v19, %v8819_v20  ;;  %v8821_v13 = vld [vmem:[#allocation98_spill] sm:$0xff] }
 0x155   : > { %2909 = vmatprep.mubr.f32.mxu0 %v8817_v51  ;;  %5230 = vmatpush3.bf16.msra.mxu0 %v8772_v45  ;;  %v8822_v27 = vand.u32 4294901760, %v8821_v13  ;;  %v8823_v51 = vand.u32 4294901760, %v8706_v32  ;;  %v8824_v45 = vand.u32 4294901760, %v8707_v22  ;;  %v8830_v22 = vand.u32 4294901760, %v8829_v62 }
 0x156   : > { %3788 = vmatmul.mubr.msk.f32.gmra.mrb[78].mxu1 %vm8818_vm13, %v8694_v34  ;;  %5232 = vmatprep.subr.bf16.mxu0 %v8774_v6  ;;  %v8832_v6 = vand.u32 4294901760, %v8714_v36 }
 0x157   : > { %2634 = vmatprep.mubr.f32.mxu1 %v8801_v48  ;;  %v5191_v49 = vpack.c.bf16 %v8824_v45, %v8823_v51  ;;  %v8833_v48 = vld [vmem:[#allocation100_spill] sm:$0xff]  ;;  %v8863_v45 = vld [vmem:[#allocation69_spill] sm:$0xff] }
 0x158   : > { %2913 = vmatmul.mubr.f32.gmra.mrb[22].mxu0 %v8822_v27  ;;  %v8828_v27 = vand.u32 4294901760, %v8710_v42  ;;  %v8835_v42 = vand.u32 4294901760, %v8720_v23  ;;  %v8843_v23 = vand.u32 4294901760, %v8729_v58  ;;  %v8851_v58 = vand.u32 4294901760, %v8740_v7 }
 0x159   : > { %2920 = vmatprep.mubr.f32.mxu0 %v8826_v12  ;;  %5234 = vmatpush3.bf16.msra.mxu0 %v8777_v47  ;;  %v8831_v12 = vand.u32 4294901760, %v8713_v59  ;;  %v8837_v59 = vld [vmem:[#allocation101_spill] sm:$0xff] }
 0x15a   : > { %2637 = vmatmul.mubr.f32.vlgmr.msra.gmra.mrb[80].mxu1 %v8805_v24  ;;  %5236 = vmatprep.subr.bf16.mxu0 %v8779_v61  ;;  %v5193_v32 = vpack.c.bf16 %v8828_v27, %v8827_v50  ;;  %v8834_v24 = vand.u32 4294901760, %v8833_v48  ;;  %v8838_v36 = vand.u32 4294901760, %v8837_v59  ;;  %v8839_v61 = vand.u32 4294901760, %v8733_v57 }
 0x15b   : > { %5190 = vmatpush3.bf16.msra.mxu1 %v5189_v1  ;;  %2643 = vmatprep.mubr.f32.mxu1 %v8807_v21  ;;  %v5195_v47 = vpack.c.bf16 %v8832_v6, %v8831_v12  ;;  %v8864_v50 = vand.u32 4294901760, %v8863_v45  ;;  %v8871_v6 = vand.u32 4294901760, %v8764_v46  ;;  %v8880_v46 = vld [vmem:[#allocation12_spill] sm:$0xff] }
 0x15c   : > { %2924 = vmatmul.mubr.f32.gmra.mrb[24].mxu0 %v8830_v22  ;;  %5192 = vmatprep.subr.bf16.mxu1 %v5191_v49  ;;  %v8836_v49 = vand.u32 4294901760, %v8721_v2  ;;  %v8842_v2 = vand.u32 4294901760, %v8728_v26  ;;  %v8850_v26 = vand.u32 4294901760, %v8739_v14  ;;  %v8858_v14 = vand.u32 4294901760, %v8751_v54  ;;  %v8869_v22 = vld [vmem:[#allocation31_spill] sm:$0xff] }
 0x15d   : > { %2931 = vmatprep.mubr.f32.mxu0 %v8834_v24  ;;  %5238 = vmatpush3.bf16.msra.mxu0 %v8783_v17  ;;  %v8840_v17 = vand.u32 4294901760, %v8732_v16  ;;  %v8868_v54 = vand.u32 4294901760, %v8763_v30  ;;  %v8870_v12 = vand.u32 4294901760, %v8869_v22 }
 0x15e   : > { %2646 = vmatmul.mubr.f32.gmra.mrb[82].mxu1 %v8810_v55  ;;  %5240 = vmatprep.subr.bf16.mxu0 %v8785_v52  ;;  %v5197_v37 = vpack.c.bf16 %v8836_v49, %v8835_v42  ;;  %v8841_v55 = vand.u32 4294901760, %v6676_v5  ;;  %v5201_v57 = vpack.c.bf16 %v8843_v23, %v8842_v2  ;;  %v8844_v52 = vld [vmem:[#allocation77_spill] sm:$0xff]  ;;  %v8888_v2 = vld [vmem:[#allocation18_spill] sm:$0xff] }
 0x15f   : > { %2652 = vmatprep.mubr.f32.mxu1 %v8812_v25  ;;  %5194 = vmatpush3.bf16.msra.mxu1 %v5193_v32  ;;  %v5199_v21 = vpack.c.bf16 %v8840_v17, %v8839_v61  ;;  %v8845_v16 = vand.u32 4294901760, %v8844_v52  ;;  %v8846_v25 = vand.u32 4294901760, %v8744_v3  ;;  %v5205_v3 = vpack.c.bf16 %v8851_v58, %v8850_v26  ;;  %v8874_v42 = vld [vmem:[#allocation105_spill] sm:$0xff]  ;;  %v8882_v61 = vld [vmem:[#allocation16_spill] sm:$0xff] }
 0x160   : > { %2935 = vmatmul.mubr.f32.gmra.mrb[26].mxu0 %v8838_v36  ;;  %5196 = vmatprep.subr.bf16.mxu1 %v5195_v47  ;;  %v8872_v47 = vld [vmem:[#allocation75_spill] sm:$0xff]  ;;  %v8875_v49 = vand.u32 4294901760, %v8874_v42  ;;  %v8881_v36 = vand.u32 4294901760, %v8880_v46  ;;  %v8883_v17 = vand.u32 4294901760, %v8882_v61  ;;  %v8889_v23 = vand.u32 4294901760, %v8888_v2  ;;  %v8898_v58 = vld [vmem:[#allocation25_spill] sm:$0xff] }
 0x161   : > { %2942 = vmatprep.mubr.f32.mxu0 %v8841_v55  ;;  %5242 = vmatpush3.bf16.msra.mxu0 %v8789_v38  ;;  %v8847_v38 = vand.u32 4294901760, %v8743_v29 }
 0x162   : > { %2655 = vmatmul.mubr.f32.gmra.mrb[84].mxu1 %v8814_v44  ;;  %5244 = vmatprep.subr.bf16.mxu0 %v8791_v35  ;;  %v8848_v44 = vld [vmem:[#allocation23_spill] sm:$0xff]  ;;  %v8852_v35 = vld [vmem:[#allocation80_spill] sm:$0xff] }
 0x163   : > { %2661 = vmatprep.mubr.f32.mxu1 %v8816_v31  ;;  %5198 = vmatpush3.bf16.msra.mxu1 %v5197_v37  ;;  %v5203_v20 = vpack.c.bf16 %v8847_v38, %v8846_v25  ;;  %v8849_v19 = vand.u32 4294901760, %v8848_v44  ;;  %v8853_v29 = vand.u32 4294901760, %v8852_v35  ;;  %v8854_v31 = vand.u32 4294901760, %v8753_v63  ;;  %v8878_v37 = vld [vmem:[#allocation14_spill] sm:$0xff] }
 0x164   : > { %2946 = vmatmul.mubr.f32.gmra.mrb[28].mxu0 %v8845_v16  ;;  %5200 = vmatprep.subr.bf16.mxu1 %v5199_v21  ;;  %v8884_v21 = vld [vmem:[#allocation107_spill] sm:$0xff]  ;;  %v8894_v25 = vld [vmem:[#allocation22_spill] sm:$0xff] }
 0x165   : > { %2953 = vmatprep.mubr.f32.mxu0 %v8849_v19  ;;  %5246 = vmatpush3.bf16.msra.mxu0 %v8795_v40  ;;  %v8855_v40 = vand.u32 4294901760, %v8752_v28  ;;  %v8861_v28 = vld [vmem:[#allocation68_spill] sm:$0xff]  ;;  %v8895_v38 = vand.u32 4294901760, %v8894_v25 }
 0x166   : > { %2664 = vmatmul.mubr.f32.gmra.mrb[86].mxu1 %v8821_v13  ;;  %5248 = vmatprep.subr.bf16.mxu0 %v8797_v56  ;;  %v8856_v13 = vand.u32 4294901760, %v6758_v10  ;;  %v8859_v56 = vld [vmem:[#allocation103_spill] sm:$0xff]  ;;  %v8862_v51 = vand.u32 4294901760, %v8861_v28 }
 0x167   : > { %2670 = vmatprep.mubr.f32.mxu1 %v8825_v39  ;;  %5202 = vmatpush3.bf16.msra.mxu1 %v5201_v57  ;;  %v5207_v1 = vpack.c.bf16 %v8855_v40, %v8854_v31  ;;  %v8857_v39 = vand.u32 4294901760, %v8750_v60  ;;  %v8860_v63 = vand.u32 4294901760, %v8859_v56  ;;  %v8867_v60 = vand.u32 4294901760, %v8762_v53  ;;  %v8903_v40 = vld [vmem:[#allocation6_spill] sm:$0xff] }
 0x168   : > { %2957 = vmatmul.mubr.f32.gmra.mrb[30].mxu0 %v8853_v29  ;;  %5204 = vmatprep.subr.bf16.mxu1 %v5203_v20  ;;  %v5211_v27 = vpack.c.bf16 %v8864_v50, %v8862_v51  ;;  %v8877_v53 = vand.u32 4294901760, %v8621_v18  ;;  %v8886_v18 = vld [vmem:[#allocation19_spill] sm:$0xff]  ;;  %v8896_v20 = vld [vmem:[#allocation24_spill] sm:$0xff]  ;;  %vm8904_vm3 = vcmp.eq.s32.totalorder %v6273_v43, %v8903_v40  ;;  %vm8905_vm0 = vcmp.eq.s32.totalorder %v5838_v11, %v8903_v40  ;;  %v8913_v51 = vld [vmem:[#allocation10_spill] sm:$0xff] }
 0x169   : > { %2964 = vmatprep.mubr.f32.mxu0 %v8856_v13  ;;  %5250 = vmatpush3.bf16.msra.mxu0 %v8800_v33  ;;  %v5209_v7 = vpack.c.bf16 %v8858_v14, %v8857_v39  ;;  %v8865_v33 = vld [vmem:[#allocation26_spill] sm:$0xff]  ;;  %v8887_v55 = vand.u32 4294901760, %v8886_v18  ;;  %vm8914_vm6 = vcmp.eq.s32.totalorder %v6273_v43, %v8913_v51  ;;  %vm8916_vm14 = vmmov %vm8904_vm3  ;;  %vm8917_vm13 = vcmp.eq.s32.totalorder %v5838_v11, %v8913_v51 }
 0x16a   : > { %2673 = vmatmul.mubr.f32.gmra.mrb[88].mxu1 %v8829_v62  ;;  %v8866_v32 = vand.u32 4294901760, %v8865_v33  ;;  %v5213_v62 = vpack.c.bf16 %v8868_v54, %v8867_v60  ;;  %v8906_v39 = vld [vmem:[#allocation94_spill] sm:$0xff]  ;;  %v8923_v60 = vld [vmem:[#allocation97_spill] sm:$0xff] }
 0x16b   : > { %2679 = vmatprep.mubr.f32.mxu1 %v8833_v48  ;;  %5206 = vmatpush3.bf16.msra.mxu1 %v5205_v3  ;;  %v8873_v48 = vand.u32 4294901760, %v8872_v47  ;;  %v8899_v3 = vand.u32 4294901760, %v8898_v58  ;;  %vm8907_vm2 = vcmp.eq.s32.totalorder %v6273_v43, %v8906_v39  ;;  %vm8908_vm5 = vcmp.eq.s32.totalorder %v5838_v11, %v8906_v39 }
 0x16c   : > { %2968 = vmatmul.mubr.f32.gmra.mrb[32].mxu0 %v8860_v63  ;;  %5208 = vmatprep.subr.bf16.mxu1 %v5207_v1 }
 0x16d   : > { %2975 = vmatprep.mubr.f32.mxu0 %v8866_v32  ;;  %v5215_v24 = vpack.c.bf16 %v8873_v48, %v8871_v6 }
 0x16e   : > { %2682 = vmatmul.mubr.f32.gmra.mrb[90].mxu1 %v8837_v59  ;;  %v8879_v59 = vand.u32 4294901760, %v8878_v37 }
 0x16f   : > { %2688 = vmatprep.mubr.f32.mxu1 %v6676_v5  ;;  %5210 = vmatpush3.bf16.msra.mxu1 %v5209_v7  ;;  %v8876_v5 = vand.u32 4294901760, %v8617_v41  ;;  %v8885_v41 = vand.u32 4294901760, %v8884_v21 }
 0x170   : > { %2979 = vmatmul.mubr.f32.gmra.mrb[34].mxu0 %v8870_v12  ;;  %5212 = vmatprep.subr.bf16.mxu1 %v5211_v27  ;;  %v8918_v27 = vld [vmem:[#allocation96_spill] sm:$0xff] }
 0x171   : > { %2986 = vmatprep.mubr.f32.mxu0 %v8875_v49  ;;  %v5217_v30 = vpack.c.bf16 %v8877_v53, %v8876_v5 }
 0x172   : > { %2691 = vmatmul.mubr.f32.gmra.mrb[92].mxu1 %v8844_v52  ;;  %v8892_v52 = vld [vmem:[#allocation20_spill] sm:$0xff] }
 0x173   : > { %2697 = vmatprep.mubr.f32.mxu1 %v8848_v44  ;;  %5214 = vmatpush3.bf16.msra.mxu1 %v5213_v62  ;;  %v8893_v16 = vand.u32 4294901760, %v8892_v52  ;;  %v8897_v44 = vand.u32 4294901760, %v8896_v20 }
 0x174   : > { %2990 = vmatmul.mubr.f32.gmra.mrb[36].mxu0 %v8879_v59  ;;  %5216 = vmatprep.subr.bf16.mxu1 %v5215_v24 }
 0x175   : > { %2997 = vmatprep.mubr.f32.mxu0 %v8881_v36 }
 0x176   : > { %2700 = vmatmul.mubr.f32.gmra.mrb[94].mxu1 %v8852_v35  ;;  %v8900_v35 = vld [vmem:[#allocation8_spill] sm:$0xff] }
 0x177   : > { %2706 = vmatprep.mubr.f32.mxu1 %v6758_v10  ;;  %5218 = vmatpush3.bf16.msra.mxu1 %v5217_v30  ;;  %v8890_v10 = vld [vmem:[#allocation27_spill] sm:$0xff]  ;;  %vm8901_vm10 = vcmp.eq.s32.totalorder %v6273_v43, %v8900_v35  ;;  %vm8902_vm1 = vcmp.eq.s32.totalorder %v5838_v11, %v8900_v35 }
 0x178   : > { %3001 = vmatmul.mubr.f32.gmra.mrb[38].mxu0 %v8883_v17  ;;  %v8891_v57 = vand.u32 4294901760, %v8890_v10  ;;  %vm8911_vm7 = vmmov %vm8901_vm10 }
 0x179   : > { %3008 = vmatprep.mubr.f32.mxu0 %v8885_v41  ;;  %vm8915_vm9 = vmmov %vm8902_vm1 }
 0x17a   : > { %2709 = vmatmul.mubr.f32.gmra.mrb[96].mxu1 %v8859_v56  ;;  %v8909_v56 = vld [vmem:[#allocation11_spill] sm:$0xff] }
 0x17b   : > { %2715 = vmatprep.mubr.f32.mxu1 %v8865_v33  ;;  %vm8910_vm4 = vcmp.eq.s32.totalorder %v6273_v43, %v8909_v56  ;;  %vm8912_vm12 = vcmp.eq.s32.totalorder %v5838_v11, %v8909_v56 }
 0x17c   : > { %3012 = vmatmul.mubr.f32.gmra.mrb[40].mxu0 %v8887_v55 }
 0x17d   : > { %3019 = vmatprep.mubr.f32.mxu0 %v8889_v23 }
 0x17e   : > { %2718 = vmatmul.mubr.f32.gmra.mrb[98].mxu1 %v8869_v22 }
 0x17f   : > { %2724 = vmatprep.mubr.f32.mxu1 %v8874_v42  ;;  %v7517_v19 = vpop.f32.mrb[0].mxu1 }
 0x180   : > { %3023 = vmatmul.mubr.f32.gmra.mrb[42].mxu0 %v8891_v57  ;;  %v7520_v26 = vpop.f32.mrb[1].mxu1 }
 0x181   : > { %3030 = vmatprep.mubr.f32.mxu0 %v8893_v16 }
 0x182   : > { %2727 = vmatmul.mubr.f32.gmra.mrb[100].mxu1 %v8878_v37  ;;  %v8946_v37 = vld [vmem:[#allocation104_spill] sm:$0xff] }
 0x183   : > { %2733 = vmatprep.mubr.f32.mxu1 %v8880_v46  ;;  %v7529_v29 = vpop.f32.mrb[2].mxu1  ;;  %v8951_v46 = vld [vmem:[#allocation106_spill] sm:$0xff] }
 0x184   : > { %3034 = vmatmul.mubr.f32.gmra.mrb[44].mxu0 %v8895_v38  ;;  %v7532_v31 = vpop.f32.mrb[3].mxu1 }
 0x185   : > { %3041 = vmatprep.mubr.f32.mxu0 %v8897_v44 }
 0x186   : > { %2736 = vmatmul.mubr.f32.gmra.mrb[102].mxu1 %v8882_v61 }
 0x187   : > { %2742 = vmatprep.mubr.f32.mxu1 %v8884_v21  ;;  %v7543_v1 = vpop.f32.mrb[4].mxu1 }
 0x188   : > { %3045 = vmatmul.mubr.f32.gmra.mrb[46].mxu0 %v8899_v3  ;;  %v7546_v13 = vpop.f32.mrb[5].mxu1 }
 0x189   : > { %3821 = vmatprep.mubr.msk.f32.mxu0 %vm8901_vm10, %v8694_v34  ;;  %vm8919_vm10 = vcmp.eq.s32.totalorder %v6273_v43, %v8918_v27 }
 0x18a   : > { %2745 = vmatmul.mubr.f32.gmra.mrb[104].mxu1 %v8886_v18  ;;  %v8957_v18 = vld [vmem:[#allocation28_spill] sm:$0xff] }
 0x18b   : > { %2751 = vmatprep.mubr.f32.mxu1 %v8888_v2  ;;  %v7557_v14 = vpop.f32.mrb[6].mxu1 }
 0x18c   : > { %3822 = vmatmul.mubr.msk.f32.vlgmr.msra.gmra.mrb[48].mxu0 %vm8902_vm1, %v8694_v34  ;;  %v7560_v7 = vpop.f32.mrb[7].mxu1  ;;  %vm8920_vm1 = vmmov %vm8905_vm0 }
 0x18d   : > { %3823 = vmatprep.mubr.msk.f32.mxu0 %vm8904_vm3, %v8694_v34  ;;  %vm8921_vm3 = vmmov %vm8907_vm2 }
 0x18e   : > { %2754 = vmatmul.mubr.f32.gmra.mrb[106].mxu1 %v8890_v10 }
 0x18f   : > { %2760 = vmatprep.mubr.f32.mxu1 %v8892_v52  ;;  %v7571_v63 = vpop.f32.mrb[8].mxu1 }
 0x190   : > { %3824 = vmatmul.mubr.msk.f32.gmra.mrb[50].mxu0 %vm8905_vm0, %v8694_v34  ;;  %v7574_v28 = vpop.f32.mrb[9].mxu1  ;;  %vm8922_vm0 = vcmp.eq.s32.totalorder %v5838_v11, %v8918_v27 }
 0x191   : > { %3825 = vmatprep.mubr.msk.f32.mxu0 %vm8907_vm2, %v8694_v34  ;;  %vm8924_vm2 = vcmp.eq.s32.totalorder %v6273_v43, %v8923_v60 }
 0x192   : > { %2763 = vmatmul.mubr.f32.gmra.mrb[108].mxu1 %v8894_v25 }
 0x193   : > { %2769 = vmatprep.mubr.f32.mxu1 %v8896_v20  ;;  %v7592_v45 = vpop.f32.mrb[10].mxu1 }
 0x194   : > { %3826 = vmatmul.mubr.msk.f32.gmra.mrb[52].mxu0 %vm8908_vm5, %v8694_v34  ;;  %v7598_v50 = vpop.f32.mrb[11].mxu1 }
 0x195   : > { %3827 = vmatprep.mubr.msk.f32.mxu0 %vm8910_vm4, %v8694_v34 }
 0x196   : > { %2772 = vmatmul.mubr.f32.gmra.mrb[110].mxu1 %v8898_v58 }
 0x197   : > { %3789 = vmatprep.mubr.msk.f32.mxu1 %vm8911_vm7, %v8694_v34  ;;  %vm8925_vm7 = vcmp.eq.s32.totalorder %v5838_v11, %v8923_v60 }
 0x198   : > { %3828 = vmatmul.mubr.msk.f32.gmra.mrb[54].mxu0 %vm8912_vm12, %v8694_v34  ;;  %v7612_v33 = vpop.f32.mrb[12].mxu1  ;;  %vm8926_vm12 = vcmp.eq.s32.totalorder %v6273_v43, %v8768_v0 }
 0x199   : > { %3829 = vmatprep.mubr.msk.f32.mxu0 %vm8914_vm6, %v8694_v34  ;;  %v7618_v32 = vpop.f32.mrb[13].mxu1  ;;  %vm8927_vm6 = vcmp.eq.s32.totalorder %v5838_v11, %v8909_v56 }
 0x19a   : > { %3790 = vmatmul.mubr.msk.f32.vlgmr.msra.gmra.mrb[112].mxu1 %vm8915_vm9, %v8694_v34  ;;  %vm8928_vm9 = vcmp.eq.s32.totalorder %v6273_v43, %v8913_v51 }
 0x19b   : > { %3791 = vmatprep.mubr.msk.f32.mxu1 %vm8916_vm14, %v8694_v34  ;;  %vm8929_vm14 = vcmp.eq.s32.totalorder %v5838_v11, %v8768_v0 }
 0x19c   : > { %3830 = vmatmul.mubr.msk.f32.gmra.mrb[56].mxu0 %vm8917_vm13, %v8694_v34  ;;  %vm8930_vm13 = vcmp.eq.s32.totalorder %v6273_v43, %v8775_v9 }
 0x19d   : > { %3831 = vmatprep.mubr.msk.f32.mxu0 %vm8919_vm10, %v8694_v34  ;;  %vm8931_vm10 = vcmp.eq.s32.totalorder %v5838_v11, %v8913_v51 }
 0x19e   : > { %3792 = vmatmul.mubr.msk.f32.gmra.mrb[114].mxu1 %vm8920_vm1, %v8694_v34  ;;  %vm8932_vm1 = vcmp.eq.s32.totalorder %v6273_v43, %v8918_v27 }
 0x19f   : > { %3793 = vmatprep.mubr.msk.f32.mxu1 %vm8921_vm3, %v8694_v34  ;;  %vm8933_vm3 = vcmp.eq.s32.totalorder %v5838_v11, %v8775_v9 }
 0x1a0   : > { %3832 = vmatmul.mubr.msk.f32.gmra.mrb[58].mxu0 %vm8922_vm0, %v8694_v34  ;;  %vm8934_vm0 = vcmp.eq.s32.totalorder %v6273_v43, %v6678_v8 }
 0x1a1   : > { %3833 = vmatprep.mubr.msk.f32.mxu0 %vm8924_vm2, %v8694_v34  ;;  %vm8935_vm2 = vcmp.eq.s32.totalorder %v5838_v11, %v8918_v27 }
 0x1a2   : > { %3794 = vmatmul.mubr.msk.f32.gmra.mrb[116].mxu1 %vm8908_vm5, %v8694_v34  ;;  %v7648_v54 = vpop.f32.mrb[14].mxu1  ;;  %vm8936_vm5 = vcmp.eq.s32.totalorder %v6273_v43, %v8923_v60 }
 0x1a3   : > { %3795 = vmatprep.mubr.msk.f32.mxu1 %vm8910_vm4, %v8694_v34  ;;  %v7654_v62 = vpop.f32.mrb[15].mxu1  ;;  %vm8937_vm4 = vcmp.eq.s32.totalorder %v5838_v11, %v6678_v8 }
 0x1a4   : > { %3834 = vmatmul.mubr.msk.f32.gmra.mrb[60].mxu0 %vm8925_vm7, %v8694_v34  ;;  %vm8938_vm7 = vcmp.eq.s32.totalorder %v6273_v43, %v6751_v15 }
 0x1a5   : > { %3835 = vmatprep.mubr.msk.f32.mxu0 %vm8926_vm12, %v8694_v34  ;;  %vm8939_vm12 = vcmp.eq.s32.totalorder %v5838_v11, %v8923_v60 }
 0x1a6   : > { %3796 = vmatmul.mubr.msk.f32.gmra.mrb[118].mxu1 %vm8927_vm6, %v8694_v34  ;;  %v4083_v22 = vpop.f32.mrb[16].mxu1  ;;  %vm8940_vm6 = vcmp.eq.s32.totalorder %v6273_v43, %v8768_v0 }
 0x1a7   : > { %3797 = vmatprep.mubr.msk.f32.mxu1 %vm8928_vm9, %v8694_v34  ;;  %v4084_v12 = vpop.f32.mrb[17].mxu1  ;;  %vm8941_vm9 = vcmp.eq.s32.totalorder %v5838_v11, %v6751_v15 }
 0x1a8   : > { %3836 = vmatmul.mubr.msk.f32.gmra.mrb[62].mxu0 %vm8929_vm14, %v8694_v34  ;;  %v7672_v6 = vadd.f32 %v4084_v12, %v4083_v22  ;;  %vm8942_vm14 = vcmp.eq.s32.totalorder %v6273_v43, %v6760_v4 }
 0x1a9   : > { %3837 = vmatprep.mubr.msk.f32.mxu0 %vm8930_vm13, %v8694_v34  ;;  %vm8943_vm13 = vcmp.eq.s32.totalorder %v5838_v11, %v8768_v0 }
 0x1aa   : > { %3798 = vmatmul.mubr.msk.f32.gmra.mrb[120].mxu1 %vm8931_vm10, %v8694_v34  ;;  %v4086_v47 = vpop.f32.mrb[18].mxu1  ;;  %vm8944_vm10 = vcmp.eq.s32.totalorder %v6273_v43, %v8775_v9 }
 0x1ab   : > { %3799 = vmatprep.mubr.msk.f32.mxu1 %vm8932_vm1, %v8694_v34  ;;  %v4087_v48 = vpop.f32.mrb[19].mxu1  ;;  %vm8945_vm1 = vcmp.eq.s32.totalorder %v5838_v11, %v6760_v4 }
 0x1ac   : > { %3838 = vmatmul.mubr.msk.f32.gmra.mrb[64].mxu0 %vm8933_vm3, %v8694_v34  ;;  %v7690_v24 = vadd.f32 %v4087_v48, %v4086_v47  ;;  %vm8947_vm3 = vcmp.eq.s32.totalorder %v6273_v43, %v8946_v37 }
 0x1ad   : > { %3839 = vmatprep.mubr.msk.f32.mxu0 %vm8934_vm0, %v8694_v34  ;;  %vm8948_vm0 = vcmp.eq.s32.totalorder %v5838_v11, %v8775_v9 }
 0x1ae   : > { %3800 = vmatmul.mubr.msk.f32.gmra.mrb[122].mxu1 %vm8935_vm2, %v8694_v34  ;;  %v4089_v42 = vpop.f32.mrb[20].mxu1  ;;  %vm8949_vm2 = vcmp.eq.s32.totalorder %v6273_v43, %v6678_v8 }
 0x1af   : > { %3801 = vmatprep.mubr.msk.f32.mxu1 %vm8936_vm5, %v8694_v34  ;;  %v4090_v49 = vpop.f32.mrb[21].mxu1  ;;  %vm8950_vm5 = vcmp.eq.s32.totalorder %v5838_v11, %v8946_v37 }
 0x1b0   : > { %3840 = vmatmul.mubr.msk.f32.gmra.mrb[66].mxu0 %vm8937_vm4, %v8694_v34  ;;  %v7708_v5 = vadd.f32 %v4090_v49, %v4089_v42  ;;  %vm8952_vm4 = vcmp.eq.s32.totalorder %v6273_v43, %v8951_v46 }
 0x1b1   : > { %3841 = vmatprep.mubr.msk.f32.mxu0 %vm8938_vm7, %v8694_v34  ;;  %vm8953_vm7 = vcmp.eq.s32.totalorder %v5838_v11, %v6678_v8 }
 0x1b2   : > { %3802 = vmatmul.mubr.msk.f32.gmra.mrb[124].mxu1 %vm8939_vm12, %v8694_v34  ;;  %vm8954_vm12 = vcmp.eq.s32.totalorder %v6273_v43, %v6751_v15 }
 0x1b3   : > { %3803 = vmatprep.mubr.msk.f32.mxu1 %vm8940_vm6, %v8694_v34  ;;  %v4092_v53 = vpop.f32.mrb[22].mxu1  ;;  %vm8955_vm6 = vcmp.eq.s32.totalorder %v5838_v11, %v8951_v46 }
 0x1b4   : > { %3842 = vmatmul.mubr.msk.f32.gmra.mrb[68].mxu0 %vm8941_vm9, %v8694_v34  ;;  %v4093_v30 = vpop.f32.mrb[23].mxu1 }
 0x1b5   : > { %3843 = vmatprep.mubr.msk.f32.mxu0 %vm8942_vm14, %v8694_v34  ;;  %v7734_v59 = vadd.f32 %v4093_v30, %v4092_v53 }
 0x1b6   : > { %3804 = vmatmul.mubr.msk.f32.gmra.mrb[126].mxu1 %vm8943_vm13, %v8694_v34  ;;  %vm8958_vm13 = vmmov %vm8945_vm1 }
 0x1b7   : > { %3805 = vmatprep.mubr.msk.f32.mxu1 %vm8944_vm10, %v8694_v34  ;;  %v4095_v0 = vpop.f32.mrb[24].mxu1  ;;  %vm8959_vm10 = vmmov %vm8947_vm3 }
 0x1b8   : > { %3844 = vmatmul.mubr.msk.f32.gmra.mrb[70].mxu0 %vm8945_vm1, %v8694_v34  ;;  %v4096_v36 = vpop.f32.mrb[25].mxu1  ;;  %vm8960_vm1 = vcmp.eq.s32.totalorder %v5838_v11, %v8957_v18 }
 0x1b9   : > { %3845 = vmatprep.mubr.msk.f32.mxu0 %vm8947_vm3, %v8694_v34  ;;  %v7756_v9 = vadd.f32 %v4096_v36, %v4095_v0  ;;  %vm8961_vm3 = vmmov %vm8950_vm5 }
 0x1ba   : > { %3806 = vmatmul.mubr.msk.f32.gmra.mrb[128].mxu1 %vm8948_vm0, %v8694_v34  ;;  %vm8962_vm0 = vmmov %vm8952_vm4 }
 0x1bb   : > { %3807 = vmatprep.mubr.msk.f32.mxu1 %vm8949_vm2, %v8694_v34  ;;  %vm8963_vm2 = vmmov %vm8955_vm6 }
 0x1bc   : > { %3846 = vmatmul.mubr.msk.f32.gmra.mrb[72].mxu0 %vm8950_vm5, %v8694_v34  ;;  %v4098_v61 = vpop.f32.mrb[26].mxu1 }
 0x1bd   : > { %3847 = vmatprep.mubr.msk.f32.mxu0 %vm8952_vm4, %v8694_v34  ;;  %v4099_v8 = vpop.f32.mrb[27].mxu1 }
 0x1be   : > { %3808 = vmatmul.mubr.msk.f32.gmra.mrb[130].mxu1 %vm8953_vm7, %v8694_v34  ;;  %v7774_v21 = vadd.f32 %v4099_v8, %v4098_v61 }
 0x1bf   : > { %3809 = vmatprep.mubr.msk.f32.mxu1 %vm8954_vm12, %v8694_v34 }
 0x1c0   : > { %3848 = vmatmul.mubr.msk.f32.gmra.mrb[74].mxu0 %vm8955_vm6, %v8694_v34  ;;  %v4101_v41 = vpop.f32.mrb[28].mxu1 }
 0x1c1   : > { %3849 = vmatprep.mubr.msk.f32.mxu0 %vm429_vm11, %v8694_v34  ;;  %v4102_v15 = vpop.f32.mrb[29].mxu1 }
 0x1c2   : > { %3810 = vmatmul.mubr.msk.f32.gmra.mrb[132].mxu1 %vm8941_vm9, %v8694_v34  ;;  %v7792_v55 = vadd.f32 %v4102_v15, %v4101_v41 }
 0x1c3   : > { %3811 = vmatprep.mubr.msk.f32.mxu1 %vm8942_vm14, %v8694_v34 }
 0x1c4   : > { %3850 = vmatmul.mubr.msk.f32.gmra.mrb[76].mxu0 %vm428_vm15, %v8694_v34 }
 0x1c5   : > { %3851 = vmatprep.mubr.msk.f32.mxu0 %vm431_vm8, %v8694_v34  ;;  %v4104_v2 = vpop.f32.mrb[30].mxu1 }
 0x1c6   : > { %3812 = vmatmul.mubr.msk.f32.gmra.mrb[134].mxu1 %vm8958_vm13, %v8694_v34  ;;  %v4105_v23 = vpop.f32.mrb[31].mxu1 }
 0x1c7   : > { %3813 = vmatprep.mubr.msk.f32.mxu1 %vm8959_vm10, %v8694_v34  ;;  %v7806_v4 = vadd.f32 %v4105_v23, %v4104_v2 }
 0x1c8   : > { %3852 = vmatmul.mubr.msk.f32.gmra.mrb[78].mxu0 %vm8960_vm1, %v8694_v34 }
 0x1ca   : > { %3814 = vmatmul.mubr.msk.f32.gmra.mrb[136].mxu1 %vm8961_vm3, %v8694_v34  ;;  %v4107_v10 = vpop.f32.mrb[32].mxu1 }
 0x1cb   : > { %3815 = vmatprep.mubr.msk.f32.mxu1 %vm8962_vm0, %v8694_v34  ;;  %v4108_v57 = vpop.f32.mrb[33].mxu1 }
 0x1cc   : > { %v7816_v52 = vadd.f32 %v4108_v57, %v4107_v10 }
 0x1ce   : > { %3816 = vmatmul.mubr.msk.f32.gmra.mrb[138].mxu1 %vm8963_vm2, %v8694_v34  ;;  %v4110_v16 = vpop.f32.mrb[34].mxu1 }
 0x1cf   : > { %3817 = vmatprep.mubr.msk.f32.mxu1 %vm429_vm11, %v8694_v34  ;;  %v4111_v25 = vpop.f32.mrb[35].mxu1  ;;  %vm8964_vm11 = vmmov %vm8960_vm1 }
 0x1d0   : > { %v7826_v38 = vadd.f32 %v4111_v25, %v4110_v16 }
 0x1d2   : > { %3818 = vmatmul.mubr.msk.f32.gmra.mrb[140].mxu1 %vm428_vm15, %v8694_v34  ;;  %v4113_v20 = vpop.f32.mrb[36].mxu1 }
 0x1d3   : > { %3819 = vmatprep.mubr.msk.f32.mxu1 %vm431_vm8, %v8694_v34  ;;  %v4114_v44 = vpop.f32.mrb[37].mxu1 }
 0x1d4   : > { %v7836_v58 = vadd.f32 %v4114_v44, %v4113_v20 }
 0x1d6   : > { %3820 = vmatmul.mubr.msk.f32.gmra.mrb[142].mxu1 %vm8964_vm11, %v8694_v34  ;;  %v4116_v3 = vpop.f32.mrb[38].mxu1 }
 0x1d7   : > { %v4117_v35 = vpop.f32.mrb[39].mxu1 }
 0x1d8   : > { %v7838_v40 = vadd.f32 %v4117_v35, %v4116_v3 }
 0x1da   : > { %v4119_v39 = vpop.f32.mrb[40].mxu1 }
 0x1db   : > { %v4120_v56 = vpop.f32.mrb[41].mxu1 }
 0x1dc   : > { %v7840_v51 = vadd.f32 %v4120_v56, %v4119_v39 }
 0x1de   : > { %v4122_v27 = vpop.f32.mrb[42].mxu1 }
 0x1df   : > { %v4123_v43 = vpop.f32.mrb[43].mxu1 }
 0x1e0   : > { %v7842_v60 = vadd.f32 %v4123_v43, %v4122_v27 }
 0x1e2   : > { %v4125_v22 = vpop.f32.mrb[44].mxu1 }
 0x1e3   : > { %v4126_v12 = vpop.f32.mrb[45].mxu1 }
 0x1e4   : > { %v7844_v47 = vadd.f32 %v4126_v12, %v4125_v22 }
 0x1e6   : > { %v4128_v11 = vpop.f32.mrb[46].mxu1 }
 0x1e7   : > { %v4129_v34 = vpop.f32.mrb[47].mxu1 }
 0x1e8   : > { %v7846_v48 = vadd.f32 %v4129_v34, %v4128_v11 }
 0x1ea   : > { %v4163_v42 = vpop.f32.mrb[48].mxu1 }
 0x1eb   : > { %v4164_v49 = vpop.f32.mrb[49].mxu1 }
 0x1ec   : > { %v4165_v53 = vadd.f32 %v4164_v49, %v4163_v42 }
 0x1ee   : > { %v7849_v30 = vadd.f32 %v4165_v53, %v7672_v6  ;;  %v4166_v37 = vpop.f32.mrb[50].mxu1 }
 0x1ef   : > { %v4167_v0 = vpop.f32.mrb[51].mxu1 }
 0x1f0   : > { %v4168_v46 = vadd.f32 %v4167_v0, %v4166_v37 }
 0x1f2   : > { %v7852_v36 = vadd.f32 %v4168_v46, %v7690_v24  ;;  %v4169_v61 = vpop.f32.mrb[52].mxu1 }
 0x1f3   : > { %v4170_v17 = vpop.f32.mrb[53].mxu1 }
 0x1f4   : > { %v4171_v8 = vadd.f32 %v4170_v17, %v4169_v61 }
 0x1f6   : > { %v7855_v41 = vadd.f32 %v4171_v8, %v7708_v5  ;;  %v4172_v18 = vpop.f32.mrb[54].mxu1 }
 0x1f7   : > { %v4173_v15 = vpop.f32.mrb[55].mxu1 }
 0x1f8   : > { %v4174_v2 = vadd.f32 %v4173_v15, %v4172_v18 }
 0x1fa   : > { %v7858_v23 = vadd.f32 %v4174_v2, %v7734_v59 }
 0x1fd   : > { %v4175_v6 = vpop.f32.mrb[56].mxu1 }
 0x1fe   : > { %v4176_v10 = vpop.f32.mrb[57].mxu1 }
 0x1ff   : > { %v4177_v57 = vadd.f32 %v4176_v10, %v4175_v6  ;;  %v4845_v16 = vpop.f32.mrb[0].mxu0 }
 0x200   : > { %v7861_v25 = vadd.f32 %v4845_v16, %v7517_v19  ;;  %v1704_v24 = vpop.f32.mrb[1].mxu0 }
 0x201   : > { %v7864_v20 = vadd.f32 %v4177_v57, %v7756_v9  ;;  %v4178_v44 = vpop.f32.mrb[58].mxu1  ;;  %v7867_v5 = vadd.f32 %v1704_v24, %v7520_v26 }
 0x202   : > { %v4179_v3 = vpop.f32.mrb[59].mxu1 }
 0x203   : > { %v4180_v35 = vadd.f32 %v4179_v3, %v4178_v44  ;;  %v4848_v39 = vpop.f32.mrb[2].mxu0 }
 0x204   : > { %v7870_v59 = vadd.f32 %v4848_v39, %v7529_v29  ;;  %v1716_v56 = vpop.f32.mrb[3].mxu0 }
 0x205   : > { %v7873_v27 = vadd.f32 %v4180_v35, %v7774_v21  ;;  %v4181_v19 = vpop.f32.mrb[60].mxu1  ;;  %v7876_v43 = vadd.f32 %v1716_v56, %v7532_v31 }
 0x206   : > { %v4182_v9 = vpop.f32.mrb[61].mxu1 }
 0x207   : > { %v4183_v22 = vadd.f32 %v4182_v9, %v4181_v19  ;;  %v4851_v12 = vpop.f32.mrb[4].mxu0 }
 0x208   : > { %v7879_v26 = vadd.f32 %v4851_v12, %v7543_v1  ;;  %v1728_v11 = vpop.f32.mrb[5].mxu0 }
 0x209   : > { %v7882_v34 = vadd.f32 %v4183_v22, %v7792_v55  ;;  %v4184_v29 = vpop.f32.mrb[62].mxu1  ;;  %v7885_v42 = vadd.f32 %v1728_v11, %v7546_v13 }
 0x20a   : > { %v4185_v21 = vpop.f32.mrb[63].mxu1 }
 0x20b   : > { %v4186_v49 = vadd.f32 %v4185_v21, %v4184_v29  ;;  %v4854_v53 = vpop.f32.mrb[6].mxu0 }
 0x20c   : > { %v7888_v31 = vadd.f32 %v4854_v53, %v7557_v14  ;;  %v1740_v37 = vpop.f32.mrb[7].mxu0 }
 0x20d   : > { %v7891_v0 = vadd.f32 %v4186_v49, %v7806_v4  ;;  %v4187_v1 = vpop.f32.mrb[64].mxu1  ;;  %v7894_v46 = vadd.f32 %v1740_v37, %v7560_v7 }
 0x20e   : > { %v4188_v55 = vpop.f32.mrb[65].mxu1 }
 0x20f   : > { %v4189_v61 = vadd.f32 %v4188_v55, %v4187_v1  ;;  %v4857_v17 = vpop.f32.mrb[8].mxu0 }
 0x210   : > { %v7897_v13 = vadd.f32 %v4857_v17, %v7571_v63  ;;  %v1752_v8 = vpop.f32.mrb[9].mxu0 }
 0x211   : > { %v7900_v18 = vadd.f32 %v4189_v61, %v7816_v52  ;;  %v4190_v14 = vpop.f32.mrb[66].mxu1  ;;  %v7903_v15 = vadd.f32 %v1752_v8, %v7574_v28 }
 0x212   : > { %v4191_v4 = vpop.f32.mrb[67].mxu1 }
 0x213   : > { %v4192_v2 = vadd.f32 %v4191_v4, %v4190_v14  ;;  %v4860_v6 = vpop.f32.mrb[10].mxu0 }
 0x214   : > { %v7906_v7 = vadd.f32 %v4860_v6, %v7592_v45  ;;  %v1764_v10 = vpop.f32.mrb[11].mxu0 }
 0x215   : > { %v7909_v57 = vadd.f32 %v4192_v2, %v7826_v38  ;;  %v4193_v63 = vpop.f32.mrb[68].mxu1  ;;  %v7912_v16 = vadd.f32 %v1764_v10, %v7598_v50 }
 0x216   : > { %v4194_v52 = vpop.f32.mrb[69].mxu1 }
 0x217   : > { %v4195_v24 = vadd.f32 %v4194_v52, %v4193_v63  ;;  %v4863_v44 = vpop.f32.mrb[12].mxu0 }
 0x218   : > { %v7915_v28 = vadd.f32 %v4863_v44, %v7612_v33  ;;  %v1776_v3 = vpop.f32.mrb[13].mxu0 }
 0x219   : > { %v7918_v35 = vadd.f32 %v4195_v24, %v7836_v58  ;;  %v4196_v45 = vpop.f32.mrb[70].mxu1  ;;  %v7921_v39 = vadd.f32 %v1776_v3, %v7618_v32 }
 0x21a   : > { %v4197_v38 = vpop.f32.mrb[71].mxu1 }
 0x21b   : > { %v4198_v56 = vadd.f32 %v4197_v38, %v4196_v45  ;;  %v4866_v19 = vpop.f32.mrb[14].mxu0 }
 0x21c   : > { %v7924_v50 = vadd.f32 %v4866_v19, %v7648_v54  ;;  %v1788_v9 = vpop.f32.mrb[15].mxu0 }
 0x21d   : > { %v7927_v22 = vadd.f32 %v4198_v56, %v7838_v40  ;;  %v4199_v33 = vpop.f32.mrb[72].mxu1  ;;  %v7930_v12 = vadd.f32 %v1788_v9, %v7654_v62 }
 0x21e   : > { %v4200_v58 = vpop.f32.mrb[73].mxu1 }
 0x21f   : > { %v4201_v11 = vadd.f32 %v4200_v58, %v4199_v33  ;;  %v4323_v29 = vpop.f32.mrb[16].mxu0 }
 0x220   : > { %v4324_v21 = vpop.f32.mrb[17].mxu0 }
 0x221   : > { %v7933_v32 = vadd.f32 %v4201_v11, %v7840_v51  ;;  %v4202_v49 = vpop.f32.mrb[74].mxu1  ;;  %v4325_v53 = vadd.f32 %v4324_v21, %v4323_v29 }
 0x222   : > { %v4203_v37 = vpop.f32.mrb[75].mxu1 }
 0x223   : > { %v4204_v54 = vadd.f32 %v4203_v37, %v4202_v49  ;;  %v4326_v1 = vpop.f32.mrb[18].mxu0 }
 0x224   : > { %v4327_v55 = vpop.f32.mrb[19].mxu0 }
 0x225   : > { %v7936_v40 = vadd.f32 %v4204_v54, %v7842_v60  ;;  %v4205_v61 = vpop.f32.mrb[76].mxu1  ;;  %v4328_v17 = vadd.f32 %v4327_v55, %v4326_v1 }
 0x226   : > { %v4206_v62 = vpop.f32.mrb[77].mxu1 }
 0x227   : > { %v4207_v8 = vadd.f32 %v4206_v62, %v4205_v61  ;;  %v4329_v14 = vpop.f32.mrb[20].mxu0 }
 0x228   : > { %v4330_v4 = vpop.f32.mrb[21].mxu0 }
 0x229   : > { %v7939_v2 = vadd.f32 %v4207_v8, %v7844_v47  ;;  %v4208_v51 = vpop.f32.mrb[78].mxu1  ;;  %v4331_v6 = vadd.f32 %v4330_v4, %v4329_v14 }
 0x22a   : > { %v4209_v10 = vpop.f32.mrb[79].mxu1 }
 0x22b   : > { %v4210_v63 = vadd.f32 %v4209_v10, %v4208_v51  ;;  %v4332_v52 = vpop.f32.mrb[22].mxu0 }
 0x22c   : > { %v4333_v24 = vpop.f32.mrb[23].mxu0 }
 0x22d   : > { %v7942_v44 = vadd.f32 %v4210_v63, %v7846_v48  ;;  %v4243_v60 = vpop.f32.mrb[80].mxu1  ;;  %v4334_v3 = vadd.f32 %v4333_v24, %v4332_v52 }
 0x22e   : > { %v4244_v45 = vpop.f32.mrb[81].mxu1 }
 0x22f   : > { %v4245_v38 = vadd.f32 %v4244_v45, %v4243_v60  ;;  %v4335_v56 = vpop.f32.mrb[24].mxu0 }
 0x230   : > { %v4336_v19 = vpop.f32.mrb[25].mxu0 }
 0x231   : > { %v2639_v9 = vadd.f32 %v4245_v38, %v7849_v30  ;;  %v4246_v33 = vpop.f32.mrb[82].mxu1  ;;  %v4337_v47 = vadd.f32 %v4336_v19, %v4335_v56 }
 0x232   : > { %v4247_v58 = vpop.f32.mrb[83].mxu1 }
 0x233   : > { %v4248_v11 = vadd.f32 %v4247_v58, %v4246_v33  ;;  %v4338_v29 = vpop.f32.mrb[26].mxu0  ;;  %v7945_v21 = vadd.f32 %v4325_v53, %v2639_v9 }
 0x234   : > { %v4339_v49 = vpop.f32.mrb[27].mxu0 }
 0x235   : > { %v2648_v37 = vadd.f32 %v4248_v11, %v7852_v36  ;;  %v4249_v48 = vpop.f32.mrb[84].mxu1  ;;  %v4340_v54 = vadd.f32 %v4339_v49, %v4338_v29 }
 0x236   : > { %v4250_v1 = vpop.f32.mrb[85].mxu1 }
 0x237   : > { %v4251_v55 = vadd.f32 %v4250_v1, %v4249_v48  ;;  %v4341_v61 = vpop.f32.mrb[28].mxu0  ;;  %v7948_v62 = vadd.f32 %v4328_v17, %v2648_v37 }
 0x238   : > { %v4342_v8 = vpop.f32.mrb[29].mxu0 }
 0x239   : > { %v2657_v30 = vadd.f32 %v4251_v55, %v7855_v41  ;;  %v4252_v14 = vpop.f32.mrb[86].mxu1  ;;  %v4343_v4 = vadd.f32 %v4342_v8, %v4341_v61 }
 0x23a   : > { %v4253_v51 = vpop.f32.mrb[87].mxu1 }
 0x23b   : > { %v4254_v10 = vadd.f32 %v4253_v51, %v4252_v14  ;;  %v4344_v63 = vpop.f32.mrb[30].mxu0  ;;  %v7951_v53 = vadd.f32 %v4331_v6, %v2657_v30 }
 0x23c   : > { %v4345_v52 = vpop.f32.mrb[31].mxu0 }
 0x23d   : > { %v2666_v36 = vadd.f32 %v4254_v10, %v7858_v23  ;;  %v4255_v24 = vpop.f32.mrb[88].mxu1  ;;  %v4346_v60 = vadd.f32 %v4345_v52, %v4344_v63 }
 0x23e   : > { %v4256_v45 = vpop.f32.mrb[89].mxu1 }
 0x23f   : > { %v4257_v38 = vadd.f32 %v4256_v45, %v4255_v24  ;;  %v4347_v56 = vpop.f32.mrb[32].mxu0  ;;  %v7954_v17 = vadd.f32 %v4334_v3, %v2666_v36 }
 0x240   : > { %v4348_v19 = vpop.f32.mrb[33].mxu0 }
 0x241   : > { %v2675_v41 = vadd.f32 %v4257_v38, %v7864_v20  ;;  %v4258_v9 = vpop.f32.mrb[90].mxu1  ;;  %v4349_v33 = vadd.f32 %v4348_v19, %v4347_v56 }
 0x242   : > { %v4259_v58 = vpop.f32.mrb[91].mxu1 }
 0x243   : > { %v4260_v11 = vadd.f32 %v4259_v58, %v4258_v9  ;;  %v4350_v29 = vpop.f32.mrb[34].mxu0  ;;  %v7957_v6 = vadd.f32 %v4337_v47, %v2675_v41 }
 0x244   : > { %v4351_v49 = vpop.f32.mrb[35].mxu0 }
 0x245   : > { %v2684_v23 = vadd.f32 %v4260_v11, %v7873_v27  ;;  %v4261_v37 = vpop.f32.mrb[92].mxu1  ;;  %v4352_v48 = vadd.f32 %v4351_v49, %v4350_v29 }
 0x246   : > { %v4262_v1 = vpop.f32.mrb[93].mxu1 }
 0x247   : > { %v4263_v55 = vadd.f32 %v4262_v1, %v4261_v37  ;;  %v4353_v61 = vpop.f32.mrb[36].mxu0  ;;  %v7960_v3 = vadd.f32 %v4340_v54, %v2684_v23 }
 0x248   : > { %v4354_v8 = vpop.f32.mrb[37].mxu0 }
 0x249   : > { %v2693_v20 = vadd.f32 %v4263_v55, %v7882_v34  ;;  %v4264_v30 = vpop.f32.mrb[94].mxu1  ;;  %v4355_v14 = vadd.f32 %v4354_v8, %v4353_v61 }
 0x24a   : > { %v4265_v51 = vpop.f32.mrb[95].mxu1 }
 0x24b   : > { %v4266_v10 = vadd.f32 %v4265_v51, %v4264_v30  ;;  %v4356_v63 = vpop.f32.mrb[38].mxu0  ;;  %v7963_v47 = vadd.f32 %v4343_v4, %v2693_v20 }
 0x24c   : > { %v4357_v52 = vpop.f32.mrb[39].mxu0 }
 0x24d   : > { %v2702_v27 = vadd.f32 %v4266_v10, %v7891_v0  ;;  %v4267_v36 = vpop.f32.mrb[96].mxu1  ;;  %v4358_v24 = vadd.f32 %v4357_v52, %v4356_v63 }
 0x24e   : > { %v4268_v45 = vpop.f32.mrb[97].mxu1 }
 0x24f   : > { %v4269_v38 = vadd.f32 %v4268_v45, %v4267_v36  ;;  %v4359_v56 = vpop.f32.mrb[40].mxu0  ;;  %v7966_v54 = vadd.f32 %v4346_v60, %v2702_v27 }
 0x250   : > { %v4360_v19 = vpop.f32.mrb[41].mxu0 }
 0x251   : > { %v2711_v34 = vadd.f32 %v4269_v38, %v7900_v18  ;;  %v4270_v41 = vpop.f32.mrb[98].mxu1  ;;  %v4361_v9 = vadd.f32 %v4360_v19, %v4359_v56 }
 0x252   : > { %v4271_v58 = vpop.f32.mrb[99].mxu1 }
 0x253   : > { %v4272_v11 = vadd.f32 %v4271_v58, %v4270_v41  ;;  %v4362_v29 = vpop.f32.mrb[42].mxu0  ;;  %v7969_v4 = vadd.f32 %v4349_v33, %v2711_v34 }
 0x254   : > { %v4363_v49 = vpop.f32.mrb[43].mxu0 }
 0x255   : > { %v2720_v0 = vadd.f32 %v4272_v11, %v7909_v57  ;;  %v4273_v23 = vpop.f32.mrb[100].mxu1  ;;  %v4364_v37 = vadd.f32 %v4363_v49, %v4362_v29 }
 0x256   : > { %v4274_v1 = vpop.f32.mrb[101].mxu1 }
 0x257   : > { %v4275_v55 = vadd.f32 %v4274_v1, %v4273_v23  ;;  %v4365_v61 = vpop.f32.mrb[44].mxu0  ;;  %v7972_v60 = vadd.f32 %v4352_v48, %v2720_v0 }
 0x258   : > { %v4366_v8 = vpop.f32.mrb[45].mxu0 }
 0x259   : > { %v2729_v18 = vadd.f32 %v4275_v55, %v7918_v35  ;;  %v4276_v20 = vpop.f32.mrb[102].mxu1  ;;  %v4367_v30 = vadd.f32 %v4366_v8, %v4365_v61 }
 0x25a   : > { %v4277_v51 = vpop.f32.mrb[103].mxu1 }
 0x25b   : > { %v4278_v10 = vadd.f32 %v4277_v51, %v4276_v20  ;;  %v4368_v63 = vpop.f32.mrb[46].mxu0  ;;  %v7975_v33 = vadd.f32 %v4355_v14, %v2729_v18 }
 0x25c   : > { %v4369_v52 = vpop.f32.mrb[47].mxu0 }
 0x25d   : > { %v2738_v57 = vadd.f32 %v4278_v10, %v7927_v22  ;;  %v4279_v27 = vpop.f32.mrb[104].mxu1  ;;  %v4370_v36 = vadd.f32 %v4369_v52, %v4368_v63 }
 0x25e   : > { %v4280_v45 = vpop.f32.mrb[105].mxu1 }
 0x25f   : > { %v4281_v38 = vadd.f32 %v4280_v45, %v4279_v27  ;;  %v4483_v56 = vpop.f32.mrb[48].mxu0  ;;  %v7978_v48 = vadd.f32 %v4358_v24, %v2738_v57 }
 0x260   : > { %v4484_v19 = vpop.f32.mrb[49].mxu0 }
 0x261   : > { %v2747_v35 = vadd.f32 %v4281_v38, %v7933_v32  ;;  %v4282_v34 = vpop.f32.mrb[106].mxu1  ;;  %v4485_v41 = vadd.f32 %v4484_v19, %v4483_v56 }
 0x262   : > { %v4283_v58 = vpop.f32.mrb[107].mxu1 }
 0x263   : > { %v4284_v11 = vadd.f32 %v4283_v58, %v4282_v34  ;;  %v4486_v29 = vpop.f32.mrb[50].mxu0  ;;  %v7981_v14 = vadd.f32 %v4361_v9, %v2747_v35 }
 0x264   : > { %v4487_v49 = vpop.f32.mrb[51].mxu0 }
 0x265   : > { %v2756_v22 = vadd.f32 %v4284_v11, %v7936_v40  ;;  %v4285_v0 = vpop.f32.mrb[108].mxu1  ;;  %v4488_v23 = vadd.f32 %v4487_v49, %v4486_v29 }
 0x266   : > { %v4286_v1 = vpop.f32.mrb[109].mxu1 }
 0x267   : > { %v4287_v55 = vadd.f32 %v4286_v1, %v4285_v0  ;;  %v4489_v24 = vpop.f32.mrb[52].mxu0  ;;  %v7984_v61 = vadd.f32 %v4364_v37, %v2756_v22 }
 0x268   : > { %v4490_v8 = vpop.f32.mrb[53].mxu0 }
 0x269   : > { %v2765_v32 = vadd.f32 %v4287_v55, %v7939_v2  ;;  %v4288_v18 = vpop.f32.mrb[110].mxu1  ;;  %v4491_v20 = vadd.f32 %v4490_v8, %v4489_v24 }
 0x26a   : > { %v4289_v51 = vpop.f32.mrb[111].mxu1 }
 0x26b   : > { %v4290_v9 = vadd.f32 %v4289_v51, %v4288_v18  ;;  %v4492_v10 = vpop.f32.mrb[54].mxu0  ;;  %v7987_v63 = vadd.f32 %v4367_v30, %v2765_v32 }
 0x26c   : > { %v4493_v40 = vpop.f32.mrb[55].mxu0 }
 0x26d   : > { %v2774_v52 = vadd.f32 %v4290_v9, %v7942_v44  ;;  %v4403_v57 = vpop.f32.mrb[112].mxu1  ;;  %v4494_v27 = vadd.f32 %v4493_v40, %v4492_v10 }
 0x26e   : > { %v4404_v45 = vpop.f32.mrb[113].mxu1 }
 0x26f   : > { %v4405_v37 = vadd.f32 %v4404_v45, %v4403_v57  ;;  %v4495_v38 = vpop.f32.mrb[56].mxu0  ;;  %v7991_v56 = vadd.f32 %v4370_v36, %v2774_v52 }
 0x270   : > { %v4496_v2 = vpop.f32.mrb[57].mxu0 }
 0x271   : > { %v3215_v19 = vadd.f32 %v4405_v37, %v7945_v21  ;;  %v4406_v35 = vpop.f32.mrb[114].mxu1  ;;  %v4497_v34 = vadd.f32 %v4496_v2, %v4495_v38 }
 0x272   : > { %v4407_v30 = vpop.f32.mrb[115].mxu1 }
 0x273   : > { %v3424_v58 = vadd.f32 %v4485_v41, %v3215_v19  ;;  %v4408_v11 = vadd.f32 %v4407_v30, %v4406_v35  ;;  %v4498_v29 = vpop.f32.mrb[58].mxu0 }
 0x274   : > { %v4499_v44 = vpop.f32.mrb[59].mxu0 }
 0x275   : > { %v3532_v49 = vmul.f32 %v7867_v5, %v3424_v58  ;;  %v3222_v22 = vadd.f32 %v4408_v11, %v7948_v62  ;;  %v4409_v0 = vpop.f32.mrb[116].mxu1  ;;  %v4500_v1 = vadd.f32 %v4499_v44, %v4498_v29 }
 0x276   : > { %v4410_v36 = vpop.f32.mrb[117].mxu1 }
 0x277   : > { %3548 = vst [vmem:[%s7998_s9] sm:$0xff] %v3532_v49  ;;  %v3431_v21 = vadd.f32 %v4488_v23, %v3222_v22  ;;  %v4411_v55 = vadd.f32 %v4410_v36, %v4409_v0  ;;  %v4501_v24 = vpop.f32.mrb[60].mxu0 }
 0x278   : > { %v4502_v8 = vpop.f32.mrb[61].mxu0 }
 0x279   : > { %v3533_v41 = vmul.f32 %v7861_v25, %v3431_v21  ;;  %v3229_v32 = vadd.f32 %v4411_v55, %v7951_v53  ;;  %v4412_v5 = vpop.f32.mrb[118].mxu1  ;;  %v4503_v18 = vadd.f32 %v4502_v8, %v4501_v24 }
 0x27a   : > { %v4413_v62 = vpop.f32.mrb[119].mxu1 }
 0x27b   : > { %3549 = vst [vmem:[%s7998_s9 + $0x8] sm:$0xff] %v3533_v41  ;;  %v3438_v51 = vadd.f32 %v4491_v20, %v3229_v32  ;;  %v4414_v9 = vadd.f32 %v4413_v62, %v4412_v5  ;;  %v4504_v10 = vpop.f32.mrb[62].mxu0 }
 0x27c   : > { %v4505_v40 = vpop.f32.mrb[63].mxu0 }
 0x27d   : > { %v3534_v52 = vmul.f32 %v7876_v43, %v3438_v51  ;;  %v3236_v23 = vadd.f32 %v4414_v9, %v7954_v17  ;;  %v4415_v57 = vpop.f32.mrb[120].mxu1  ;;  %v4506_v45 = vadd.f32 %v4505_v40, %v4504_v10 }
 0x27e   : > { %v4416_v37 = vpop.f32.mrb[121].mxu1 }
 0x27f   : > { %3550 = vst [vmem:[%s7998_s9 + $0x10] sm:$0xff] %v3534_v52  ;;  %v3445_v25 = vadd.f32 %v4494_v27, %v3236_v23  ;;  %v4417_v38 = vadd.f32 %v4416_v37, %v4415_v57  ;;  %v4507_v53 = vpop.f32.mrb[64].mxu0 }
 0x280   : > { %v4508_v2 = vpop.f32.mrb[65].mxu0 }
 0x281   : > { %v3535_v19 = vmul.f32 %v7870_v59, %v3445_v25  ;;  %v3243_v20 = vadd.f32 %v4417_v38, %v7957_v6  ;;  %v4418_v35 = vpop.f32.mrb[122].mxu1  ;;  %v4509_v30 = vadd.f32 %v4508_v2, %v4507_v53 }
 0x282   : > { %v4419_v58 = vpop.f32.mrb[123].mxu1 }
 0x283   : > { %3551 = vst [vmem:[%s7998_s9 + $0x18] sm:$0xff] %v3535_v19  ;;  %v3452_v43 = vadd.f32 %v4497_v34, %v3243_v20  ;;  %v4420_v11 = vadd.f32 %v4419_v58, %v4418_v35  ;;  %v4510_v17 = vpop.f32.mrb[66].mxu0 }
 0x284   : > { %v4511_v29 = vpop.f32.mrb[67].mxu0 }
 0x285   : > { %v3536_v44 = vmul.f32 %v7885_v42, %v3452_v43  ;;  %v3250_v27 = vadd.f32 %v4420_v11, %v7960_v3  ;;  %v4421_v49 = vpop.f32.mrb[124].mxu1  ;;  %v4512_v22 = vadd.f32 %v4511_v29, %v4510_v17 }
 0x286   : > { %v4422_v0 = vpop.f32.mrb[125].mxu1 }
 0x287   : > { %3552 = vst [vmem:[%s7998_s9 + $0x20] sm:$0xff] %v3536_v44  ;;  %v3459_v59 = vadd.f32 %v4500_v1, %v3250_v27  ;;  %v4423_v36 = vadd.f32 %v4422_v0, %v4421_v49  ;;  %v4513_v6 = vpop.f32.mrb[68].mxu0 }
 0x288   : > { %v4514_v21 = vpop.f32.mrb[69].mxu0 }
 0x289   : > { %v3537_v55 = vmul.f32 %v7879_v26, %v3459_v59  ;;  %v3257_v34 = vadd.f32 %v4423_v36, %v7963_v47  ;;  %v4424_v24 = vpop.f32.mrb[126].mxu1  ;;  %v4515_v8 = vadd.f32 %v4514_v21, %v4513_v6 }
 0x28a   : > { %v4425_v41 = vpop.f32.mrb[127].mxu1 }
 0x28b   : > { %3553 = vst [vmem:[%s7998_s9 + $0x28] sm:$0xff] %v3537_v55  ;;  %v3466_v42 = vadd.f32 %v4503_v18, %v3257_v34  ;;  %v4426_v32 = vadd.f32 %v4425_v41, %v4424_v24  ;;  %v4516_v3 = vpop.f32.mrb[70].mxu0 }
 0x28c   : > { %v4517_v5 = vpop.f32.mrb[71].mxu0 }
 0x28d   : > { %v3538_v62 = vmul.f32 %v7894_v46, %v3466_v42  ;;  %v3264_v1 = vadd.f32 %v4426_v32, %v7966_v54  ;;  %v4427_v51 = vpop.f32.mrb[128].mxu1  ;;  %v4518_v9 = vadd.f32 %v4517_v5, %v4516_v3 }
 0x28e   : > { %v4428_v10 = vpop.f32.mrb[129].mxu1 }
 0x28f   : > { %3554 = vst [vmem:[%s7998_s9 + $0x30] sm:$0xff] %v3538_v62  ;;  %v3473_v26 = vadd.f32 %v4506_v45, %v3264_v1  ;;  %v4429_v40 = vadd.f32 %v4428_v10, %v4427_v51  ;;  %v4519_v47 = vpop.f32.mrb[72].mxu0 }
 0x290   : > { %v4520_v52 = vpop.f32.mrb[73].mxu0 }
 0x291   : > { %v3539_v23 = vmul.f32 %v7888_v31, %v3473_v26  ;;  %v3271_v18 = vadd.f32 %v4429_v40, %v7969_v4  ;;  %v4430_v57 = vpop.f32.mrb[130].mxu1  ;;  %v4521_v37 = vadd.f32 %v4520_v52, %v4519_v47 }
 0x292   : > { %v4431_v25 = vpop.f32.mrb[131].mxu1 }
 0x293   : > { %3555 = vst [vmem:[%s7998_s9 + $0x38] sm:$0xff] %v3539_v23  ;;  %v3480_v46 = vadd.f32 %v4509_v30, %v3271_v18  ;;  %v4432_v38 = vadd.f32 %v4431_v25, %v4430_v57  ;;  %v4522_v54 = vpop.f32.mrb[74].mxu0 }
 0x294   : > { %v4523_v53 = vpop.f32.mrb[75].mxu0 }
 0x295   : > { %v3540_v2 = vmul.f32 %v7903_v15, %v3480_v46  ;;  %v3278_v45 = vadd.f32 %v4432_v38, %v7972_v60  ;;  %v4433_v19 = vpop.f32.mrb[132].mxu1  ;;  %v4524_v20 = vadd.f32 %v4523_v53, %v4522_v54 }
 0x296   : > { %v4434_v35 = vpop.f32.mrb[133].mxu1 }
 0x297   : > { %3556 = vst [vmem:[%s7998_s9 + $0x40] sm:$0xff] %v3540_v2  ;;  %v3487_v31 = vadd.f32 %v4512_v22, %v3278_v45  ;;  %v4435_v58 = vadd.f32 %v4434_v35, %v4433_v19  ;;  %v4525_v4 = vpop.f32.mrb[76].mxu0 }
 0x298   : > { %v4526_v43 = vpop.f32.mrb[77].mxu0 }
 0x299   : > { %v3541_v11 = vmul.f32 %v7897_v13, %v3487_v31  ;;  %v3285_v30 = vadd.f32 %v4435_v58, %v7975_v33  ;;  %v4436_v17 = vpop.f32.mrb[134].mxu1  ;;  %v4527_v29 = vadd.f32 %v4526_v43, %v4525_v4 }
 0x29a   : > { %v4437_v44 = vpop.f32.mrb[135].mxu1 }
 0x29b   : > { %3557 = vst [vmem:[%s7998_s9 + $0x48] sm:$0xff] %v3541_v11  ;;  %v3494_v15 = vadd.f32 %v4515_v8, %v3285_v30  ;;  %v4438_v60 = vadd.f32 %v4437_v44, %v4436_v17  ;;  %v4528_v27 = vpop.f32.mrb[78].mxu0 }
 0x29c   : > { %v4529_v49 = vpop.f32.mrb[79].mxu0 }
 0x29d   : > { %v3542_v0 = vmul.f32 %v7912_v16, %v3494_v15  ;;  %v3292_v22 = vadd.f32 %v4438_v60, %v7978_v48  ;;  %v4439_v59 = vpop.f32.mrb[136].mxu1  ;;  %v4530_v36 = vadd.f32 %v4529_v49, %v4528_v27 }
 0x29e   : > { %v4440_v6 = vpop.f32.mrb[137].mxu1 }
 0x29f   : > { %3558 = vst [vmem:[%s7998_s9 + $0x50] sm:$0xff] %v3542_v0  ;;  %v3501_v13 = vadd.f32 %v4518_v9, %v3292_v22  ;;  %v4441_v33 = vadd.f32 %v4440_v6, %v4439_v59 }
 0x2a1   : > { %v3543_v21 = vmul.f32 %v7906_v7, %v3501_v13  ;;  %v3299_v55 = vadd.f32 %v4441_v33, %v7981_v14  ;;  %v4442_v34 = vpop.f32.mrb[138].mxu1 }
 0x2a2   : > { %v4443_v24 = vpop.f32.mrb[139].mxu1 }
 0x2a3   : > { %3559 = vst [vmem:[%s7998_s9 + $0x58] sm:$0xff] %v3543_v21  ;;  %v3508_v8 = vadd.f32 %v4521_v37, %v3299_v55  ;;  %v4444_v41 = vadd.f32 %v4443_v24, %v4442_v34 }
 0x2a5   : > { %v3544_v16 = vmul.f32 %v7921_v39, %v3508_v8  ;;  %v3306_v48 = vadd.f32 %v4444_v41, %v7984_v61  ;;  %v4445_v42 = vpop.f32.mrb[140].mxu1 }
 0x2a6   : > { %v4446_v32 = vpop.f32.mrb[141].mxu1 }
 0x2a7   : > { %3560 = vst [vmem:[%s7998_s9 + $0x60] sm:$0xff] %v3544_v16  ;;  %v3515_v3 = vadd.f32 %v4524_v20, %v3306_v48  ;;  %v4447_v7 = vadd.f32 %v4446_v32, %v4445_v42 }
 0x2a9   : > { %v3545_v14 = vmul.f32 %v7915_v28, %v3515_v3  ;;  %v3313_v5 = vadd.f32 %v4447_v7, %v7987_v63  ;;  %v4448_v62 = vpop.f32.mrb[142].mxu1 }
 0x2aa   : > { %v4449_v1 = vpop.f32.mrb[143].mxu1 }
 0x2ab   : > { %3561 = vst [vmem:[%s7998_s9 + $0x68] sm:$0xff] %v3545_v14  ;;  %v3522_v39 = vadd.f32 %v4527_v29, %v3313_v5  ;;  %v4450_v51 = vadd.f32 %v4449_v1, %v4448_v62 }
 0x2ad   : > { %v3546_v61 = vmul.f32 %v7930_v12, %v3522_v39  ;;  %v3320_v9 = vadd.f32 %v4450_v51, %v7991_v56 }
 0x2af   : > { %3562 = vst [vmem:[%s7998_s9 + $0x70] sm:$0xff] %v3546_v61  ;;  %v3529_v10 = vadd.f32 %v4530_v36, %v3320_v9 }
 0x2b1   : > { %v3547_v28 = vmul.f32 %v7924_v50, %v3529_v10 }
 0x2b3   : > { %3563 = vst [vmem:[%s7998_s9 + $0x78] sm:$0xff] %v3547_v28 }
 0x2b4   : > { %5390 = shalt.err (!%p5387_p3)
}
 0x2b5   : > { %s5391_s22 = scalar_lea.hbm %s8048_s14, 2048  ;;  %s5395_s30 = scalar_lea.hbm %s8101_s4, 8192 }
 0x2b6   : > { %p5392_p4 = scmp.ne.s32.totalorder %s8048_s14, %s5391_s22  ;;  %p5396_p9 = scmp.lt.u32.totalorder %s8048_s14, %s8101_s4 }
 0x2b7   : > { %p5397_p10 = scmp.lt.u32.totalorder %s5395_s30, %s5391_s22  ;;  %p5399_p12 = scmp.lt.u32.totalorder %s5391_s22, %s8048_s14 }
 0x2b8   : > { %p5393_p7 = pnand %p5392_p4, %p5510_p5 }
 0x2b9   : > { %p5398_p11 = por %p5397_p10, %p5396_p9 }
 0x2ba   : > { %p5394_p8 = pneg %p5393_p7 }
 0x2bb   : > { %p5400_p13 = por %p5399_p12, %p5398_p11 }
 0x2bd   : > { %p5401_p0 = pnand %p5400_p13, %p5394_p8 }
 0x2bf   : > { %5404 = shalt.err (!%p5401_p0)
}
 0x2c0   : > { %s5445_s8 = smov 128   ;;  %s5446_s9 = smov 8  }
 0x2c1   : > { %5331 = dma.vmem_to_hbm [thread:$0]  (%p5510_p5), %s8050_s11, 2048, %s8048_s14, %s8056_s27, %s5445_s8, %s5445_s8, %s5446_s9  }
 0x2c2 PF: > { %p5337_p1 = scmp.ge.s32.totalorder %s5439_s18, 2  ;;  %s3593_s10 = sand.u32 1, %s5427_s15  }
 0x2c3   : > { %s3594_s12 = scalar_lea.sflag [#allocation3], %s3593_s10 }
 0x2c4   : > { %p5334_p2 = pnand %p5337_p1, %p5514_p6 }
 0x2c6   : > { %5422 = dma.done.wait (!%p5334_p2), %s3594_s12, 2048  }
 0x2c7   : > { %5424 = vsyncadd (!%p5334_p2), %s3594_s12, 4294965248  ;;  %p14_p3 = scmp.ge.s32.totalorder %s5497_s21, 6   ;;  %s8965_s15 = smov %s5431_s16 }
 0x2c8   : > { %s8966_s16 = smov %s5435_s17  ;;  %s8967_s17 = smov %s5508_s24 }
 0x2c9   : > { %s8968_s18 = smov %s5497_s21  ;;  %16 = sbr.rel (!%p14_p3) target bundleno = 3 (0x3), region = 74 }
 0x2d0   :  { %3599 = vsyncpa [#allocation3], 1 }
 0x2d1   :  { %3601 = vsyncpa [#allocation3 + $0x1], 1 }

</bundles_post_ra>
